<compile_context>
chip_gen: v7x
topology: tpu7x:2x2x1
jax: 0.10.0
libtpu: 0.0.40
codegen_flags: <defaults>
</compile_context>

<pallas_src>
import jax
import jax.numpy as jnp
from jax.experimental import pallas as pl
from jax.experimental.pallas import tpu as pltpu


# ----------------------------------------------------------------------------
# Parameter preparation (hoisted out of the per-call path)
# ----------------------------------------------------------------------------

def fuse_linear_bn(w_t, b, gamma, beta, mean, var, eps=1e-5):
    """Fold eval-mode BatchNorm1d into the preceding Linear.

    w_t: (in, out) pre-transposed linear weight. Returns (w_fused, b_fused)."""
    scale = gamma / jnp.sqrt(var + eps)
    return w_t * scale[None, :], (b - mean) * scale + beta


def _pack_small(named_vecs):
    """Pack 1-D fp32 params into one (1, N) slab with 128-aligned segments."""
    offsets = {}
    segs = []
    off = 0
    for name, v in named_vecs:
        v = jnp.asarray(v, jnp.float32).reshape(-1)
        n = int(v.shape[0])
        pad = (-n) % 128
        offsets[name] = (off, n)
        segs.append(v)
        if pad:
            segs.append(jnp.zeros((pad,), jnp.float32))
        off += n + pad
    return jnp.concatenate(segs).reshape(1, -1), offsets


def prepare_params(raw, channels=128):
    """One-time weight prep: BN already folded in `raw`.  Here we
    - fuse q/k/v into one projection (with 1/sqrt(d) folded into q),
    - fuse fc25|fc3 into one projection,
    - cast every matmul weight to bf16 (fp32 accumulation in-kernel),
    - pack all tiny 1-D params into a single lane-aligned slab."""
    bf16 = jnp.bfloat16
    inv_sqrt_d = 1.0 / float(channels) ** 0.5
    wq = raw["wq"] * inv_sqrt_d
    bq = raw["bq"] * inv_sqrt_d

    weights = {
        "a1wa": raw["a1wa"], "a1wb": raw["a1wb"],
        "a2wa": raw["a2wa"], "a2wb": raw["a2wb"],
        "wqkv": jnp.concatenate([wq, raw["wk"], raw["wv"]], axis=1),
        "wo": raw["wo"],
        "wf1": raw["wf1"], "wf2": raw["wf2"],
        "fc1w": raw["fc1w"], "fc2w": raw["fc2w"],
        "fc25_3w": jnp.concatenate([raw["fc25w"], raw["fc3w"]], axis=1),
    }
    weights = {k: v.astype(bf16) for k, v in weights.items()}

    small, offsets = _pack_small([
        ("a1ba", raw["a1ba"]), ("a1bb", raw["a1bb"]),
        ("a2ba", raw["a2ba"]), ("a2bb", raw["a2bb"]),
        ("bqkv", jnp.concatenate([bq, raw["bk"], raw["bv"]])),
        ("bo", raw["bo"]),
        ("ln1g", raw["ln1g"]), ("ln1b", raw["ln1b"]),
        ("bf1", raw["bf1"]), ("bf2", raw["bf2"]),
        ("ln2g", raw["ln2g"]), ("ln2b", raw["ln2b"]),
        ("fc1b", raw["fc1b"]), ("fc2b", raw["fc2b"]),
        ("fc25_3b", jnp.concatenate([raw["fc25b"], raw["fc3b"]])),
    ])

    dims = {
        "channels": channels,
        "fc2": int(raw["fc2w"].shape[1]),
        "fc3": int(raw["fc3w"].shape[1]),
    }
    return {"weights": weights, "small": small, "offsets": offsets, "dims": dims}


W_ORDER = ["a1wa", "a1wb", "a2wa", "a2wb", "wqkv", "wo",
           "wf1", "wf2", "fc1w", "fc2w", "fc25_3w"]


# ----------------------------------------------------------------------------
# Kernel
# ----------------------------------------------------------------------------

def make_dtf_kernel(tile_g, b_rows, channels, offsets, out_width, fc2_dim, fc3_dim):
    rows = tile_g * b_rows

    def kernel(fd_ref, fp_ref, small_ref,
               a1wa_ref, a1wb_ref, a2wa_ref, a2wb_ref,
               wqkv_ref, wo_ref, wf1_ref, wf2_ref,
               fc1w_ref, fc2w_ref, fc25_3w_ref,
               out_ref):
        fd = fd_ref[...].reshape(rows, channels)
        fp = fp_ref[...].reshape(rows, channels)

        def sp(name):
            off, n = offsets[name]
            return small_ref[:, off:off + n]            # (1, n), fp32

        def lin(x, w_ref, bias_name):
            # bf16 x bf16 MXU matmul with fp32 accumulation + fp32 bias.
            return (jnp.dot(x.astype(jnp.bfloat16), w_ref[...],
                            preferred_element_type=jnp.float32)
                    + sp(bias_name))

        def att_block(x, wa_ref, ba_name, wb_ref, bb_name):
            h = jnp.maximum(lin(x, wa_ref, ba_name), 0.0)   # Linear+BN(eval)+ReLU
            return jax.nn.sigmoid(lin(h, wb_ref, bb_name))  # Linear+BN(eval)+sigmoid

        # --- attentional feature fusion ---
        s = fd + fp
        w1 = att_block(s, a1wa_ref, "a1ba", a1wb_ref, "a1bb")
        fout1 = fd * w1 + fp * (1.0 - w1)
        w2 = att_block(fout1, a2wa_ref, "a2ba", a2wb_ref, "a2bb")
        x = fd * w2 + fp * (1.0 - w2)

        # --- TransformerEncoderLayer (nhead=1, post-norm, dropout=identity) ---
        # Attention is block-diagonal per original B-row DTF call: each group
        # of b_rows rows attends only within itself (matches PyTorch (S,N=1,E)).
        qkv = lin(x, wqkv_ref, "bqkv")                   # (rows, 3*channels)
        q = qkv[:, :channels].reshape(tile_g, b_rows, channels)     # pre-scaled
        k = qkv[:, channels:2 * channels].reshape(tile_g, b_rows, channels)
        v = qkv[:, 2 * channels:].reshape(tile_g, b_rows, channels)

        scores = jnp.einsum("gqd,gkd->gqk", q, k,
                            preferred_element_type=jnp.float32)
        scores = scores - jnp.max(scores, axis=-1, keepdims=True)
        p = jnp.exp(scores)
        attn = p / jnp.sum(p, axis=-1, keepdims=True)    # exact (only b_rows wide)
        ao = jnp.einsum("gqk,gkd->gqd", attn, v,
                        preferred_element_type=jnp.float32)
        ao = lin(ao.reshape(rows, channels), wo_ref, "bo")

        def layernorm(y, g_name, b_name, eps=1e-5):
            mu = jnp.mean(y, axis=-1, keepdims=True)
            var = jnp.mean((y - mu) * (y - mu), axis=-1, keepdims=True)
            return (y - mu) * jax.lax.rsqrt(var + eps) * sp(g_name) + sp(b_name)

        x = layernorm(x + ao, "ln1g", "ln1b")
        ff = jnp.maximum(lin(x, wf1_ref, "bf1"), 0.0)
        ff = lin(ff, wf2_ref, "bf2")
        x = layernorm(x + ff, "ln2g", "ln2b")

        # --- head MLP (dropout = identity in eval mode) ---
        x = jnp.maximum(lin(x, fc1w_ref, "fc1b"), 0.0)
        x = lin(x, fc2w_ref, "fc2b")
        x_fusion = jnp.maximum(x, 0.0)

        # fc25 and fc3 both consume x_fusion -> single fused matmul, then split.
        head = lin(x_fusion, fc25_3w_ref, "fc25_3b")     # (rows, 128 + fc3)
        x_number = jnp.maximum(head[:, :128], 0.0)
        x_out = jax.nn.sigmoid(head[:, 128:128 + fc3_dim])

        # Single lane-dense output slab: [x_number | x_fusion | x_out | 0-pad]
        parts = [x_number, x_fusion, x_out]
        pad_w = out_width - (128 + fc2_dim + fc3_dim)
        if pad_w > 0:
            parts.append(jnp.zeros((rows, pad_w), jnp.float32))
        out = jnp.concatenate(parts, axis=-1)
        out_ref[...] = out.reshape(tile_g, b_rows, out_width)

    return kernel


# ----------------------------------------------------------------------------
# Wrapper
# ----------------------------------------------------------------------------

def dtf_forward(fd, fp, params, groups_per_tile=None):
    """fd, fp: (G, B, channels) — G independent DTF calls of B rows each.
    Returns (x_out, x_fusion, x_number) with shapes (G,B,fc3), (G,B,fc2), (G,B,128)."""
    G, B, C = fd.shape
    dims = params["dims"]
    assert C == dims["channels"]
    fc2, fc3 = dims["fc2"], dims["fc3"]
    out_width = ((128 + fc2 + fc3 + 127) // 128) * 128

    if groups_per_tile is None:
        # Target ~256 activation rows per grid step to fill the MXU.
        groups_per_tile = max(1, min(G, 256 // B))

    n_tiles = pl.cdiv(G, groups_per_tile)
    G_pad = n_tiles * groups_per_tile
    if G_pad != G:
        reps = G_pad - G
        fd = jnp.concatenate([fd, jnp.tile(fd[-1:], (reps, 1, 1))], axis=0)
        fp = jnp.concatenate([fp, jnp.tile(fp[-1:], (reps, 1, 1))], axis=0)

    kernel = make_dtf_kernel(groups_per_tile, B, C, params["offsets"],
                             out_width, fc2, fc3)

    act_spec = pl.BlockSpec((groups_per_tile, B, C), lambda g: (g, 0, 0))
    in_specs = [act_spec, act_spec,
                pl.BlockSpec(params["small"].shape, lambda g: (0, 0))]
    in_specs += [pl.BlockSpec(params["weights"][n].shape, lambda g: (0, 0))
                 for n in W_ORDER]

    out = pl.pallas_call(
        kernel,
        out_shape=jax.ShapeDtypeStruct((G_pad, B, out_width), jnp.float32),
        grid=(n_tiles,),
        in_specs=in_specs,
        out_specs=pl.BlockSpec((groups_per_tile, B, out_width),
                               lambda g: (g, 0, 0)),
        compiler_params=pltpu.CompilerParams(
            dimension_semantics=("parallel",)),   # shards across TCs on v7x
    )(fd, fp, params["small"], *[params["weights"][n] for n in W_ORDER])

    out = out[:G]
    x_number = out[..., :128]
    x_fusion = out[..., 128:128 + fc2]
    x_out = out[..., 128 + fc2:128 + fc2 + fc3]
    return x_out, x_fusion, x_number


# ----------------------------------------------------------------------------
# Pure-JAX reference (fp32, unfused) for validation
# ----------------------------------------------------------------------------

def dtf_reference(fd, fp, raw):
    G, B, C = fd.shape
    fd2, fp2 = fd.reshape(G * B, C), fp.reshape(G * B, C)

    def lin(x, w, b):
        return x @ w + b

    def att(x, pre):
        h = jnp.maximum(lin(x, raw[pre + "wa"], raw[pre + "ba"]), 0.0)
        return jax.nn.sigmoid(lin(h, raw[pre + "wb"], raw[pre + "bb"]))

    s = fd2 + fp2
    w1 = att(s, "a1")
    fout1 = fd2 * w1 + fp2 * (1.0 - w1)
    w2 = att(fout1, "a2")
    x = fd2 * w2 + fp2 * (1.0 - w2)

    q = lin(x, raw["wq"], raw["bq"]).reshape(G, B, C)
    k = lin(x, raw["wk"], raw["bk"]).reshape(G, B, C)
    v = lin(x, raw["wv"], raw["bv"]).reshape(G, B, C)
    scores = jnp.einsum("gqd,gkd->gqk", q, k) / jnp.sqrt(jnp.float32(C))
    attn = jax.nn.softmax(scores, axis=-1)
    ao = jnp.einsum("gqk,gkd->gqd", attn, v).reshape(G * B, C)
    ao = lin(ao, raw["wo"], raw["bo"])

    def ln(y, g_, b_, eps=1e-5):
        mu = y.mean(-1, keepdims=True)
        var = ((y - mu) ** 2).mean(-1, keepdims=True)
        return (y - mu) / jnp.sqrt(var + eps) * g_ + b_

    x = ln(x + ao, raw["ln1g"], raw["ln1b"])
    ff = jnp.maximum(lin(x, raw["wf1"], raw["bf1"]), 0.0)
    ff = lin(ff, raw["wf2"], raw["bf2"])
    x = ln(x + ff, raw["ln2g"], raw["ln2b"])

    x = jnp.maximum(lin(x, raw["fc1w"], raw["fc1b"]), 0.0)
    x = lin(x, raw["fc2w"], raw["fc2b"])
    x_fusion = jnp.maximum(x, 0.0)
    x_number = jnp.maximum(lin(x_fusion, raw["fc25w"], raw["fc25b"]), 0.0)
    x_out = jax.nn.sigmoid(lin(x_fusion, raw["fc3w"], raw["fc3b"]))
    return (x_out.reshape(G, B, -1), x_fusion.reshape(G, B, -1),
            x_number.reshape(G, B, -1))


# ----------------------------------------------------------------------------
# Demo / self-test
# ----------------------------------------------------------------------------

if __name__ == "__main__":
    # channels=128 is fixed by DTF's attention blocks (input_dim[0] must be 128).
    G = 8            # independent DTF calls batched into one pallas_call
    B = 8            # per-call batch (rows coupled by the transformer attention)
    channels = 128
    r = 4
    inter = channels // r                     # 32
    fc_1_dim, fc_2_dim, fc_3_dim = 64, 32, 16
    d_ff = 2048                               # PyTorch TransformerEncoderLayer default

    key = jax.random.PRNGKey(0)
    keys = iter(jax.random.split(key, 96))

    def nrm(shape, scale=0.05):
        return scale * jax.random.normal(next(keys), shape, dtype=jnp.float32)

    def make_att():
        wa = nrm((channels, inter))
        ba = nrm((inter,))
        wa_f, ba_f = fuse_linear_bn(
            wa, ba,
            gamma=1.0 + nrm((inter,)), beta=nrm((inter,)),
            mean=nrm((inter,)), var=1.0 + jnp.abs(nrm((inter,))))
        wb = nrm((inter, channels))
        bb = nrm((channels,))
        wb_f, bb_f = fuse_linear_bn(
            wb, bb,
            gamma=1.0 + nrm((channels,)), beta=nrm((channels,)),
            mean=nrm((channels,)), var=1.0 + jnp.abs(nrm((channels,))))
        return wa_f, ba_f, wb_f, bb_f

    raw = {}
    raw["a1wa"], raw["a1ba"], raw["a1wb"], raw["a1bb"] = make_att()
    raw["a2wa"], raw["a2ba"], raw["a2wb"], raw["a2bb"] = make_att()

    # single-head self attention (in_proj split into q/k/v, weights pre-transposed)
    for name in ("q", "k", "v", "o"):
        raw["w" + name] = nrm((channels, channels))
        raw["b" + name] = nrm((channels,))

    raw["ln1g"] = 1.0 + nrm((channels,))
    raw["ln1b"] = nrm((channels,))
    raw["wf1"] = nrm((channels, d_ff))
    raw["bf1"] = nrm((d_ff,))
    raw["wf2"] = nrm((d_ff, channels))
    raw["bf2"] = nrm((channels,))
    raw["ln2g"] = 1.0 + nrm((channels,))
    raw["ln2b"] = nrm((channels,))

    raw["fc1w"] = nrm((channels, fc_1_dim))
    raw["fc1b"] = nrm((fc_1_dim,))
    raw["fc2w"] = nrm((fc_1_dim, fc_2_dim))
    raw["fc2b"] = nrm((fc_2_dim,))
    raw["fc25w"] = nrm((fc_2_dim, 128))
    raw["fc25b"] = nrm((128,))
    raw["fc3w"] = nrm((fc_2_dim, fc_3_dim))
    raw["fc3b"] = nrm((fc_3_dim,))

    # one-time weight fusion / bf16 cast / small-param packing
    params = prepare_params(raw, channels=channels)

    fd = jax.random.normal(next(keys), (G, B, channels), dtype=jnp.float32)
    fp = jax.random.normal(next(keys), (G, B, channels), dtype=jnp.float32)

    # groups_per_tile=4 -> 32-row tiles, grid of 2 "parallel" steps.
    x_out, x_fusion, x_number = dtf_forward(fd, fp, params, groups_per_tile=4)
    jax.block_until_ready((x_out, x_fusion, x_number))

    assert x_out.shape == (G, B, fc_3_dim)
    assert x_fusion.shape == (G, B, fc_2_dim)
    assert x_number.shape == (G, B, 128)
    assert bool(jnp.all(jnp.isfinite(x_out)))
    assert bool(jnp.all(jnp.isfinite(x_fusion)))
    assert bool(jnp.all(jnp.isfinite(x_number)))

    # Validate against the fp32 pure-JAX reference (bf16 weights -> loose tol).
    r_out, r_fusion, r_number = dtf_reference(fd, fp, raw)
    for got, ref in ((x_out, r_out), (x_fusion, r_fusion), (x_number, r_number)):
        assert float(jnp.max(jnp.abs(got - ref))) < 5e-2

    print("KERNEL_OK")
</pallas_src>

<mosaic_0001>
module attributes {stable_mosaic.version = 11 : i64} {
  func.func @kernel(%arg0: i32, %arg1: memref<4x8x128xf32, #tpu.memory_space<vmem>>, %arg2: memref<4x8x128xf32, #tpu.memory_space<vmem>>, %arg3: memref<1x4224xf32, #tpu.memory_space<vmem>>, %arg4: memref<128x32xbf16, #tpu.memory_space<vmem>>, %arg5: memref<32x128xbf16, #tpu.memory_space<vmem>>, %arg6: memref<128x32xbf16, #tpu.memory_space<vmem>>, %arg7: memref<32x128xbf16, #tpu.memory_space<vmem>>, %arg8: memref<128x384xbf16, #tpu.memory_space<vmem>>, %arg9: memref<128x128xbf16, #tpu.memory_space<vmem>>, %arg10: memref<128x2048xbf16, #tpu.memory_space<vmem>>, %arg11: memref<2048x128xbf16, #tpu.memory_space<vmem>>, %arg12: memref<128x64xbf16, #tpu.memory_space<vmem>>, %arg13: memref<64x32xbf16, #tpu.memory_space<vmem>>, %arg14: memref<32x144xbf16, #tpu.memory_space<vmem>>, %arg15: memref<4x8x256xf32, #tpu.memory_space<vmem>>) attributes {dimension_semantics = [#tpu.dimension_semantics<parallel>], iteration_bounds = array<i64: 2>, scalar_prefetch = 0 : i64, scratch_operands = 0 : i64, tpu.core_type = #tpu.core_type<tc>, window_params = [{transform_indices = @transform_0, window_bounds = array<i64: 4, 8, 128>}, {transform_indices = @transform_1, window_bounds = array<i64: 4, 8, 128>}, {pipeline_mode = #tpu.pipeline_mode<synchronous>, transform_indices = @transform_2, window_bounds = array<i64: 1, 4224>}, {pipeline_mode = #tpu.pipeline_mode<synchronous>, transform_indices = @transform_3, window_bounds = array<i64: 128, 32>}, {pipeline_mode = #tpu.pipeline_mode<synchronous>, transform_indices = @transform_4, window_bounds = array<i64: 32, 128>}, {pipeline_mode = #tpu.pipeline_mode<synchronous>, transform_indices = @transform_5, window_bounds = array<i64: 128, 32>}, {pipeline_mode = #tpu.pipeline_mode<synchronous>, transform_indices = @transform_6, window_bounds = array<i64: 32, 128>}, {pipeline_mode = #tpu.pipeline_mode<synchronous>, transform_indices = @transform_7, window_bounds = array<i64: 128, 384>}, {pipeline_mode = #tpu.pipeline_mode<synchronous>, transform_indices = @transform_8, window_bounds = array<i64: 128, 128>}, {pipeline_mode = #tpu.pipeline_mode<synchronous>, transform_indices = @transform_9, window_bounds = array<i64: 128, 2048>}, {pipeline_mode = #tpu.pipeline_mode<synchronous>, transform_indices = @transform_10, window_bounds = array<i64: 2048, 128>}, {pipeline_mode = #tpu.pipeline_mode<synchronous>, transform_indices = @transform_11, window_bounds = array<i64: 128, 64>}, {pipeline_mode = #tpu.pipeline_mode<synchronous>, transform_indices = @transform_12, window_bounds = array<i64: 64, 32>}, {pipeline_mode = #tpu.pipeline_mode<synchronous>, transform_indices = @transform_13, window_bounds = array<i64: 32, 144>}, {transform_indices = @transform_14, window_bounds = array<i64: 4, 8, 256>}]} {
    %c0 = arith.constant 0 : index
    %c0_0 = arith.constant 0 : index
    %c0_1 = arith.constant 0 : index
    %0 = vector.load %arg1[%c0, %c0_0, %c0_1] : memref<4x8x128xf32, #tpu.memory_space<vmem>>, vector<4x8x128xf32>
    %1 = vector.shape_cast %0 : vector<4x8x128xf32> to vector<32x128xf32>
    %c0_2 = arith.constant 0 : index
    %c0_3 = arith.constant 0 : index
    %c0_4 = arith.constant 0 : index
    %2 = vector.load %arg2[%c0_2, %c0_3, %c0_4] : memref<4x8x128xf32, #tpu.memory_space<vmem>>, vector<4x8x128xf32>
    %3 = vector.shape_cast %2 : vector<4x8x128xf32> to vector<32x128xf32>
    %4 = arith.addf %1, %3 : vector<32x128xf32>
    %5 = arith.truncf %4 : vector<32x128xf32> to vector<32x128xbf16>
    %c0_5 = arith.constant 0 : index
    %c0_6 = arith.constant 0 : index
    %6 = vector.load %arg4[%c0_5, %c0_6] : memref<128x32xbf16, #tpu.memory_space<vmem>>, vector<128x32xbf16>
    %cst = arith.constant dense<0.000000e+00> : vector<32x32xf32>
    %7 = tpu.matmul %5, %6, %cst {dimension_numbers = #tpu.dot_dimension_numbers<[1], [0], [0], [1], [0, 0, 1, 1], [], []>} : vector<32x128xbf16>, vector<128x32xbf16>, vector<32x32xf32> -> vector<32x32xf32>
    %c0_7 = arith.constant 0 : index
    %c0_8 = arith.constant 0 : index
    %8 = vector.load %arg3[%c0_7, %c0_8] : memref<1x4224xf32, #tpu.memory_space<vmem>>, vector<1x32xf32>
    %9 = vector.broadcast %8 : vector<1x32xf32> to vector<32x32xf32>
    %10 = arith.addf %7, %9 : vector<32x32xf32>
    %cst_9 = arith.constant 0.000000e+00 : f32
    %11 = vector.broadcast %cst_9 : f32 to vector<32x32xf32>
    %12 = arith.maximumf %10, %11 : vector<32x32xf32>
    %13 = arith.truncf %12 : vector<32x32xf32> to vector<32x32xbf16>
    %c0_10 = arith.constant 0 : index
    %c0_11 = arith.constant 0 : index
    %14 = vector.load %arg5[%c0_10, %c0_11] : memref<32x128xbf16, #tpu.memory_space<vmem>>, vector<32x128xbf16>
    %cst_12 = arith.constant dense<0.000000e+00> : vector<32x128xf32>
    %15 = tpu.matmul %13, %14, %cst_12 {dimension_numbers = #tpu.dot_dimension_numbers<[1], [0], [0], [1], [0, 0, 1, 1], [], []>} : vector<32x32xbf16>, vector<32x128xbf16>, vector<32x128xf32> -> vector<32x128xf32>
    %c0_13 = arith.constant 0 : index
    %c128 = arith.constant 128 : index
    %16 = vector.load %arg3[%c0_13, %c128] : memref<1x4224xf32, #tpu.memory_space<vmem>>, vector<1x128xf32>
    %17 = vector.broadcast %16 : vector<1x128xf32> to vector<32x128xf32>
    %18 = arith.addf %15, %17 : vector<32x128xf32>
    %19 = arith.negf %18 : vector<32x128xf32>
    %20 = math.exp %19 : vector<32x128xf32>
    %cst_14 = arith.constant 1.000000e+00 : f32
    %21 = vector.broadcast %cst_14 : f32 to vector<32x128xf32>
    %22 = arith.addf %21, %20 : vector<32x128xf32>
    %23 = arith.divf %21, %22 : vector<32x128xf32>
    %24 = arith.mulf %1, %23 : vector<32x128xf32>
    %cst_15 = arith.constant 1.000000e+00 : f32
    %25 = vector.broadcast %cst_15 : f32 to vector<32x128xf32>
    %26 = arith.subf %25, %23 : vector<32x128xf32>
    %27 = arith.mulf %3, %26 : vector<32x128xf32>
    %28 = arith.addf %24, %27 : vector<32x128xf32>
    %29 = arith.truncf %28 : vector<32x128xf32> to vector<32x128xbf16>
    %c0_16 = arith.constant 0 : index
    %c0_17 = arith.constant 0 : index
    %30 = vector.load %arg6[%c0_16, %c0_17] : memref<128x32xbf16, #tpu.memory_space<vmem>>, vector<128x32xbf16>
    %cst_18 = arith.constant dense<0.000000e+00> : vector<32x32xf32>
    %31 = tpu.matmul %29, %30, %cst_18 {dimension_numbers = #tpu.dot_dimension_numbers<[1], [0], [0], [1], [0, 0, 1, 1], [], []>} : vector<32x128xbf16>, vector<128x32xbf16>, vector<32x32xf32> -> vector<32x32xf32>
    %c0_19 = arith.constant 0 : index
    %c256 = arith.constant 256 : index
    %32 = vector.load %arg3[%c0_19, %c256] : memref<1x4224xf32, #tpu.memory_space<vmem>>, vector<1x32xf32>
    %33 = vector.broadcast %32 : vector<1x32xf32> to vector<32x32xf32>
    %34 = arith.addf %31, %33 : vector<32x32xf32>
    %cst_20 = arith.constant 0.000000e+00 : f32
    %35 = vector.broadcast %cst_20 : f32 to vector<32x32xf32>
    %36 = arith.maximumf %34, %35 : vector<32x32xf32>
    %37 = arith.truncf %36 : vector<32x32xf32> to vector<32x32xbf16>
    %c0_21 = arith.constant 0 : index
    %c0_22 = arith.constant 0 : index
    %38 = vector.load %arg7[%c0_21, %c0_22] : memref<32x128xbf16, #tpu.memory_space<vmem>>, vector<32x128xbf16>
    %cst_23 = arith.constant dense<0.000000e+00> : vector<32x128xf32>
    %39 = tpu.matmul %37, %38, %cst_23 {dimension_numbers = #tpu.dot_dimension_numbers<[1], [0], [0], [1], [0, 0, 1, 1], [], []>} : vector<32x32xbf16>, vector<32x128xbf16>, vector<32x128xf32> -> vector<32x128xf32>
    %c0_24 = arith.constant 0 : index
    %c384 = arith.constant 384 : index
    %40 = vector.load %arg3[%c0_24, %c384] : memref<1x4224xf32, #tpu.memory_space<vmem>>, vector<1x128xf32>
    %41 = vector.broadcast %40 : vector<1x128xf32> to vector<32x128xf32>
    %42 = arith.addf %39, %41 : vector<32x128xf32>
    %43 = arith.negf %42 : vector<32x128xf32>
    %44 = math.exp %43 : vector<32x128xf32>
    %cst_25 = arith.constant 1.000000e+00 : f32
    %45 = vector.broadcast %cst_25 : f32 to vector<32x128xf32>
    %46 = arith.addf %45, %44 : vector<32x128xf32>
    %47 = arith.divf %45, %46 : vector<32x128xf32>
    %48 = arith.mulf %1, %47 : vector<32x128xf32>
    %cst_26 = arith.constant 1.000000e+00 : f32
    %49 = vector.broadcast %cst_26 : f32 to vector<32x128xf32>
    %50 = arith.subf %49, %47 : vector<32x128xf32>
    %51 = arith.mulf %3, %50 : vector<32x128xf32>
    %52 = arith.addf %48, %51 : vector<32x128xf32>
    %53 = arith.truncf %52 : vector<32x128xf32> to vector<32x128xbf16>
    %c0_27 = arith.constant 0 : index
    %c0_28 = arith.constant 0 : index
    %54 = vector.load %arg8[%c0_27, %c0_28] : memref<128x384xbf16, #tpu.memory_space<vmem>>, vector<128x384xbf16>
    %cst_29 = arith.constant dense<0.000000e+00> : vector<32x384xf32>
    %55 = tpu.matmul %53, %54, %cst_29 {dimension_numbers = #tpu.dot_dimension_numbers<[1], [0], [0], [1], [0, 0, 1, 1], [], []>} : vector<32x128xbf16>, vector<128x384xbf16>, vector<32x384xf32> -> vector<32x384xf32>
    %c0_30 = arith.constant 0 : index
    %c512 = arith.constant 512 : index
    %56 = vector.load %arg3[%c0_30, %c512] : memref<1x4224xf32, #tpu.memory_space<vmem>>, vector<1x384xf32>
    %57 = vector.broadcast %56 : vector<1x384xf32> to vector<32x384xf32>
    %58 = arith.addf %55, %57 : vector<32x384xf32>
    %59 = vector.extract_strided_slice %58 {offsets = [0, 0], sizes = [32, 128], strides = [1, 1]} : vector<32x384xf32> to vector<32x128xf32>
    %60 = vector.shape_cast %59 : vector<32x128xf32> to vector<4x8x128xf32>
    %61 = vector.extract_strided_slice %58 {offsets = [0, 128], sizes = [32, 128], strides = [1, 1]} : vector<32x384xf32> to vector<32x128xf32>
    %62 = vector.shape_cast %61 : vector<32x128xf32> to vector<4x8x128xf32>
    %63 = vector.extract_strided_slice %58 {offsets = [0, 256], sizes = [32, 128], strides = [1, 1]} : vector<32x384xf32> to vector<32x128xf32>
    %64 = vector.shape_cast %63 : vector<32x128xf32> to vector<4x8x128xf32>
    "tpu.trace_start"() <{level = 10 : i32, message = "gqd,gkd->gqk"}> : () -> ()
    %cst_31 = arith.constant dense<0.000000e+00> : vector<4x8x8xf32>
    %65 = tpu.matmul %60, %62, %cst_31 {dimension_numbers = #tpu.dot_dimension_numbers<[2], [2], [1], [1], [0, 0, 0, 1, 1, 1], [0], [0]>} : vector<4x8x128xf32>, vector<4x8x128xf32>, vector<4x8x8xf32> -> vector<4x8x8xf32>
    "tpu.trace_stop"() : () -> ()
    %cst_32 = arith.constant dense<0xFF800000> : vector<4x8xf32>
    %66 = vector.multi_reduction <maximumf>, %65, %cst_32 [2] : vector<4x8x8xf32> to vector<4x8xf32>
    %67 = vector.shape_cast %66 : vector<4x8xf32> to vector<4x8x1xf32>
    %68 = vector.broadcast %67 : vector<4x8x1xf32> to vector<4x8x8xf32>
    %69 = arith.subf %65, %68 : vector<4x8x8xf32>
    %70 = math.exp %69 : vector<4x8x8xf32>
    %cst_33 = arith.constant dense<0.000000e+00> : vector<4x8xf32>
    %71 = vector.multi_reduction <add>, %70, %cst_33 [2] : vector<4x8x8xf32> to vector<4x8xf32>
    %72 = vector.shape_cast %71 : vector<4x8xf32> to vector<4x8x1xf32>
    %73 = vector.broadcast %72 : vector<4x8x1xf32> to vector<4x8x8xf32>
    %74 = arith.divf %70, %73 : vector<4x8x8xf32>
    "tpu.trace_start"() <{level = 10 : i32, message = "gqk,gkd->gqd"}> : () -> ()
    %cst_34 = arith.constant dense<0.000000e+00> : vector<4x8x128xf32>
    %75 = tpu.matmul %74, %64, %cst_34 {dimension_numbers = #tpu.dot_dimension_numbers<[2], [1], [1], [2], [0, 0, 0, 1, 1, 2], [0], [0]>} : vector<4x8x8xf32>, vector<4x8x128xf32>, vector<4x8x128xf32> -> vector<4x8x128xf32>
    "tpu.trace_stop"() : () -> ()
    %76 = vector.shape_cast %75 : vector<4x8x128xf32> to vector<32x128xf32>
    %77 = arith.truncf %76 : vector<32x128xf32> to vector<32x128xbf16>
    %c0_35 = arith.constant 0 : index
    %c0_36 = arith.constant 0 : index
    %78 = vector.load %arg9[%c0_35, %c0_36] : memref<128x128xbf16, #tpu.memory_space<vmem>>, vector<128x128xbf16>
    %cst_37 = arith.constant dense<0.000000e+00> : vector<32x128xf32>
    %79 = tpu.matmul %77, %78, %cst_37 {dimension_numbers = #tpu.dot_dimension_numbers<[1], [0], [0], [1], [0, 0, 1, 1], [], []>} : vector<32x128xbf16>, vector<128x128xbf16>, vector<32x128xf32> -> vector<32x128xf32>
    %c0_38 = arith.constant 0 : index
    %c896 = arith.constant 896 : index
    %80 = vector.load %arg3[%c0_38, %c896] : memref<1x4224xf32, #tpu.memory_space<vmem>>, vector<1x128xf32>
    %81 = vector.broadcast %80 : vector<1x128xf32> to vector<32x128xf32>
    %82 = arith.addf %79, %81 : vector<32x128xf32>
    %83 = arith.addf %52, %82 : vector<32x128xf32>
    %cst_39 = arith.constant dense<0.000000e+00> : vector<32xf32>
    %84 = vector.multi_reduction <add>, %83, %cst_39 [1] : vector<32x128xf32> to vector<32xf32>
    %85 = vector.shape_cast %84 : vector<32xf32> to vector<32x1xf32>
    %cst_40 = arith.constant 1.280000e+02 : f32
    %86 = vector.broadcast %cst_40 : f32 to vector<32x1xf32>
    %87 = arith.divf %85, %86 : vector<32x1xf32>
    %88 = vector.broadcast %87 : vector<32x1xf32> to vector<32x128xf32>
    %89 = arith.subf %83, %88 : vector<32x128xf32>
    %90 = vector.broadcast %87 : vector<32x1xf32> to vector<32x128xf32>
    %91 = arith.subf %83, %90 : vector<32x128xf32>
    %92 = arith.mulf %89, %91 : vector<32x128xf32>
    %cst_41 = arith.constant dense<0.000000e+00> : vector<32xf32>
    %93 = vector.multi_reduction <add>, %92, %cst_41 [1] : vector<32x128xf32> to vector<32xf32>
    %94 = vector.shape_cast %93 : vector<32xf32> to vector<32x1xf32>
    %cst_42 = arith.constant 1.280000e+02 : f32
    %95 = vector.broadcast %cst_42 : f32 to vector<32x1xf32>
    %96 = arith.divf %94, %95 : vector<32x1xf32>
    %97 = vector.broadcast %87 : vector<32x1xf32> to vector<32x128xf32>
    %98 = arith.subf %83, %97 : vector<32x128xf32>
    %cst_43 = arith.constant 9.99999974E-6 : f32
    %99 = vector.broadcast %cst_43 : f32 to vector<32x1xf32>
    %100 = arith.addf %96, %99 : vector<32x1xf32>
    %101 = math.rsqrt %100 : vector<32x1xf32>
    %102 = vector.broadcast %101 : vector<32x1xf32> to vector<32x128xf32>
    %103 = arith.mulf %98, %102 : vector<32x128xf32>
    %c0_44 = arith.constant 0 : index
    %c1024 = arith.constant 1024 : index
    %104 = vector.load %arg3[%c0_44, %c1024] : memref<1x4224xf32, #tpu.memory_space<vmem>>, vector<1x128xf32>
    %105 = vector.broadcast %104 : vector<1x128xf32> to vector<32x128xf32>
    %106 = arith.mulf %103, %105 : vector<32x128xf32>
    %c0_45 = arith.constant 0 : index
    %c1152 = arith.constant 1152 : index
    %107 = vector.load %arg3[%c0_45, %c1152] : memref<1x4224xf32, #tpu.memory_space<vmem>>, vector<1x128xf32>
    %108 = vector.broadcast %107 : vector<1x128xf32> to vector<32x128xf32>
    %109 = arith.addf %106, %108 : vector<32x128xf32>
    %110 = arith.truncf %109 : vector<32x128xf32> to vector<32x128xbf16>
    %c0_46 = arith.constant 0 : index
    %c0_47 = arith.constant 0 : index
    %111 = vector.load %arg10[%c0_46, %c0_47] : memref<128x2048xbf16, #tpu.memory_space<vmem>>, vector<128x2048xbf16>
    %cst_48 = arith.constant dense<0.000000e+00> : vector<32x2048xf32>
    %112 = tpu.matmul %110, %111, %cst_48 {dimension_numbers = #tpu.dot_dimension_numbers<[1], [0], [0], [1], [0, 0, 1, 1], [], []>} : vector<32x128xbf16>, vector<128x2048xbf16>, vector<32x2048xf32> -> vector<32x2048xf32>
    %c0_49 = arith.constant 0 : index
    %c1280 = arith.constant 1280 : index
    %113 = vector.load %arg3[%c0_49, %c1280] : memref<1x4224xf32, #tpu.memory_space<vmem>>, vector<1x2048xf32>
    %114 = vector.broadcast %113 : vector<1x2048xf32> to vector<32x2048xf32>
    %115 = arith.addf %112, %114 : vector<32x2048xf32>
    %cst_50 = arith.constant 0.000000e+00 : f32
    %116 = vector.broadcast %cst_50 : f32 to vector<32x2048xf32>
    %117 = arith.maximumf %115, %116 : vector<32x2048xf32>
    %118 = arith.truncf %117 : vector<32x2048xf32> to vector<32x2048xbf16>
    %c0_51 = arith.constant 0 : index
    %c0_52 = arith.constant 0 : index
    %119 = vector.load %arg11[%c0_51, %c0_52] : memref<2048x128xbf16, #tpu.memory_space<vmem>>, vector<2048x128xbf16>
    %cst_53 = arith.constant dense<0.000000e+00> : vector<32x128xf32>
    %120 = tpu.matmul %118, %119, %cst_53 {dimension_numbers = #tpu.dot_dimension_numbers<[1], [0], [0], [1], [0, 0, 1, 1], [], []>} : vector<32x2048xbf16>, vector<2048x128xbf16>, vector<32x128xf32> -> vector<32x128xf32>
    %c0_54 = arith.constant 0 : index
    %c3328 = arith.constant 3328 : index
    %121 = vector.load %arg3[%c0_54, %c3328] : memref<1x4224xf32, #tpu.memory_space<vmem>>, vector<1x128xf32>
    %122 = vector.broadcast %121 : vector<1x128xf32> to vector<32x128xf32>
    %123 = arith.addf %120, %122 : vector<32x128xf32>
    %124 = arith.addf %109, %123 : vector<32x128xf32>
    %cst_55 = arith.constant dense<0.000000e+00> : vector<32xf32>
    %125 = vector.multi_reduction <add>, %124, %cst_55 [1] : vector<32x128xf32> to vector<32xf32>
    %126 = vector.shape_cast %125 : vector<32xf32> to vector<32x1xf32>
    %cst_56 = arith.constant 1.280000e+02 : f32
    %127 = vector.broadcast %cst_56 : f32 to vector<32x1xf32>
    %128 = arith.divf %126, %127 : vector<32x1xf32>
    %129 = vector.broadcast %128 : vector<32x1xf32> to vector<32x128xf32>
    %130 = arith.subf %124, %129 : vector<32x128xf32>
    %131 = vector.broadcast %128 : vector<32x1xf32> to vector<32x128xf32>
    %132 = arith.subf %124, %131 : vector<32x128xf32>
    %133 = arith.mulf %130, %132 : vector<32x128xf32>
    %cst_57 = arith.constant dense<0.000000e+00> : vector<32xf32>
    %134 = vector.multi_reduction <add>, %133, %cst_57 [1] : vector<32x128xf32> to vector<32xf32>
    %135 = vector.shape_cast %134 : vector<32xf32> to vector<32x1xf32>
    %cst_58 = arith.constant 1.280000e+02 : f32
    %136 = vector.broadcast %cst_58 : f32 to vector<32x1xf32>
    %137 = arith.divf %135, %136 : vector<32x1xf32>
    %138 = vector.broadcast %128 : vector<32x1xf32> to vector<32x128xf32>
    %139 = arith.subf %124, %138 : vector<32x128xf32>
    %cst_59 = arith.constant 9.99999974E-6 : f32
    %140 = vector.broadcast %cst_59 : f32 to vector<32x1xf32>
    %141 = arith.addf %137, %140 : vector<32x1xf32>
    %142 = math.rsqrt %141 : vector<32x1xf32>
    %143 = vector.broadcast %142 : vector<32x1xf32> to vector<32x128xf32>
    %144 = arith.mulf %139, %143 : vector<32x128xf32>
    %c0_60 = arith.constant 0 : index
    %c3456 = arith.constant 3456 : index
    %145 = vector.load %arg3[%c0_60, %c3456] : memref<1x4224xf32, #tpu.memory_space<vmem>>, vector<1x128xf32>
    %146 = vector.broadcast %145 : vector<1x128xf32> to vector<32x128xf32>
    %147 = arith.mulf %144, %146 : vector<32x128xf32>
    %c0_61 = arith.constant 0 : index
    %c3584 = arith.constant 3584 : index
    %148 = vector.load %arg3[%c0_61, %c3584] : memref<1x4224xf32, #tpu.memory_space<vmem>>, vector<1x128xf32>
    %149 = vector.broadcast %148 : vector<1x128xf32> to vector<32x128xf32>
    %150 = arith.addf %147, %149 : vector<32x128xf32>
    %151 = arith.truncf %150 : vector<32x128xf32> to vector<32x128xbf16>
    %c0_62 = arith.constant 0 : index
    %c0_63 = arith.constant 0 : index
    %152 = vector.load %arg12[%c0_62, %c0_63] : memref<128x64xbf16, #tpu.memory_space<vmem>>, vector<128x64xbf16>
    %cst_64 = arith.constant dense<0.000000e+00> : vector<32x64xf32>
    %153 = tpu.matmul %151, %152, %cst_64 {dimension_numbers = #tpu.dot_dimension_numbers<[1], [0], [0], [1], [0, 0, 1, 1], [], []>} : vector<32x128xbf16>, vector<128x64xbf16>, vector<32x64xf32> -> vector<32x64xf32>
    %c0_65 = arith.constant 0 : index
    %c3712 = arith.constant 3712 : index
    %154 = vector.load %arg3[%c0_65, %c3712] : memref<1x4224xf32, #tpu.memory_space<vmem>>, vector<1x64xf32>
    %155 = vector.broadcast %154 : vector<1x64xf32> to vector<32x64xf32>
    %156 = arith.addf %153, %155 : vector<32x64xf32>
    %cst_66 = arith.constant 0.000000e+00 : f32
    %157 = vector.broadcast %cst_66 : f32 to vector<32x64xf32>
    %158 = arith.maximumf %156, %157 : vector<32x64xf32>
    %159 = arith.truncf %158 : vector<32x64xf32> to vector<32x64xbf16>
    %c0_67 = arith.constant 0 : index
    %c0_68 = arith.constant 0 : index
    %160 = vector.load %arg13[%c0_67, %c0_68] : memref<64x32xbf16, #tpu.memory_space<vmem>>, vector<64x32xbf16>
    %cst_69 = arith.constant dense<0.000000e+00> : vector<32x32xf32>
    %161 = tpu.matmul %159, %160, %cst_69 {dimension_numbers = #tpu.dot_dimension_numbers<[1], [0], [0], [1], [0, 0, 1, 1], [], []>} : vector<32x64xbf16>, vector<64x32xbf16>, vector<32x32xf32> -> vector<32x32xf32>
    %c0_70 = arith.constant 0 : index
    %c3840 = arith.constant 3840 : index
    %162 = vector.load %arg3[%c0_70, %c3840] : memref<1x4224xf32, #tpu.memory_space<vmem>>, vector<1x32xf32>
    %163 = vector.broadcast %162 : vector<1x32xf32> to vector<32x32xf32>
    %164 = arith.addf %161, %163 : vector<32x32xf32>
    %cst_71 = arith.constant 0.000000e+00 : f32
    %165 = vector.broadcast %cst_71 : f32 to vector<32x32xf32>
    %166 = arith.maximumf %164, %165 : vector<32x32xf32>
    %167 = arith.truncf %166 : vector<32x32xf32> to vector<32x32xbf16>
    %c0_72 = arith.constant 0 : index
    %c0_73 = arith.constant 0 : index
    %168 = vector.load %arg14[%c0_72, %c0_73] : memref<32x144xbf16, #tpu.memory_space<vmem>>, vector<32x144xbf16>
    %cst_74 = arith.constant dense<0.000000e+00> : vector<32x144xf32>
    %169 = tpu.matmul %167, %168, %cst_74 {dimension_numbers = #tpu.dot_dimension_numbers<[1], [0], [0], [1], [0, 0, 1, 1], [], []>} : vector<32x32xbf16>, vector<32x144xbf16>, vector<32x144xf32> -> vector<32x144xf32>
    %c0_75 = arith.constant 0 : index
    %c3968 = arith.constant 3968 : index
    %170 = vector.load %arg3[%c0_75, %c3968] : memref<1x4224xf32, #tpu.memory_space<vmem>>, vector<1x144xf32>
    %171 = vector.broadcast %170 : vector<1x144xf32> to vector<32x144xf32>
    %172 = arith.addf %169, %171 : vector<32x144xf32>
    %173 = vector.extract_strided_slice %172 {offsets = [0, 0], sizes = [32, 128], strides = [1, 1]} : vector<32x144xf32> to vector<32x128xf32>
    %cst_76 = arith.constant 0.000000e+00 : f32
    %174 = vector.broadcast %cst_76 : f32 to vector<32x128xf32>
    %175 = arith.maximumf %173, %174 : vector<32x128xf32>
    %176 = vector.extract_strided_slice %172 {offsets = [0, 128], sizes = [32, 16], strides = [1, 1]} : vector<32x144xf32> to vector<32x16xf32>
    %177 = arith.negf %176 : vector<32x16xf32>
    %178 = math.exp %177 : vector<32x16xf32>
    %cst_77 = arith.constant 1.000000e+00 : f32
    %179 = vector.broadcast %cst_77 : f32 to vector<32x16xf32>
    %180 = arith.addf %179, %178 : vector<32x16xf32>
    %181 = arith.divf %179, %180 : vector<32x16xf32>
    %cst_78 = arith.constant 0.000000e+00 : f32
    %182 = vector.broadcast %cst_78 : f32 to vector<32x80xf32>
    %183 = tpu.concatenate %175, %166, %181, %182 in 1 : vector<32x128xf32>, vector<32x32xf32>, vector<32x16xf32>, vector<32x80xf32> -> vector<32x256xf32>
    %184 = vector.shape_cast %183 : vector<32x256xf32> to vector<4x8x256xf32>
    %c0_79 = arith.constant 0 : index
    %c0_80 = arith.constant 0 : index
    %c0_81 = arith.constant 0 : index
    %185 = vector.load %arg15[%c0_79, %c0_80, %c0_81] : memref<4x8x256xf32, #tpu.memory_space<vmem>>, vector<4x8x256xf32>
    tpu.vector_store %arg15[%c0_79, %c0_80, %c0_81], %184 {strides = array<i32>} : memref<4x8x256xf32, #tpu.memory_space<vmem>>, vector<4x8x256xf32>,
    return
  }
  func.func @transform_0(%arg0: i32) -> (i32, i32, i32) {
    %c0_i32 = arith.constant 0 : i32
    %c0_i32_0 = arith.constant 0 : i32
    %c0_i32_1 = arith.constant 0 : i32
    return %arg0, %c0_i32, %c0_i32_0 : i32, i32, i32
  }
  func.func @transform_1(%arg0: i32) -> (i32, i32, i32) {
    %c0_i32 = arith.constant 0 : i32
    %c0_i32_0 = arith.constant 0 : i32
    %c0_i32_1 = arith.constant 0 : i32
    return %arg0, %c0_i32, %c0_i32_0 : i32, i32, i32
  }
  func.func @transform_2(%arg0: i32) -> (i32, i32) {
    %c0_i32 = arith.constant 0 : i32
    %c0_i32_0 = arith.constant 0 : i32
    %c0_i32_1 = arith.constant 0 : i32
    return %c0_i32, %c0_i32_0 : i32, i32
  }
  func.func @transform_3(%arg0: i32) -> (i32, i32) {
    %c0_i32 = arith.constant 0 : i32
    %c0_i32_0 = arith.constant 0 : i32
    %c0_i32_1 = arith.constant 0 : i32
    return %c0_i32, %c0_i32_0 : i32, i32
  }
  func.func @transform_4(%arg0: i32) -> (i32, i32) {
    %c0_i32 = arith.constant 0 : i32
    %c0_i32_0 = arith.constant 0 : i32
    %c0_i32_1 = arith.constant 0 : i32
    return %c0_i32, %c0_i32_0 : i32, i32
  }
  func.func @transform_5(%arg0: i32) -> (i32, i32) {
    %c0_i32 = arith.constant 0 : i32
    %c0_i32_0 = arith.constant 0 : i32
    %c0_i32_1 = arith.constant 0 : i32
    return %c0_i32, %c0_i32_0 : i32, i32
  }
  func.func @transform_6(%arg0: i32) -> (i32, i32) {
    %c0_i32 = arith.constant 0 : i32
    %c0_i32_0 = arith.constant 0 : i32
    %c0_i32_1 = arith.constant 0 : i32
    return %c0_i32, %c0_i32_0 : i32, i32
  }
  func.func @transform_7(%arg0: i32) -> (i32, i32) {
    %c0_i32 = arith.constant 0 : i32
    %c0_i32_0 = arith.constant 0 : i32
    %c0_i32_1 = arith.constant 0 : i32
    return %c0_i32, %c0_i32_0 : i32, i32
  }
  func.func @transform_8(%arg0: i32) -> (i32, i32) {
    %c0_i32 = arith.constant 0 : i32
    %c0_i32_0 = arith.constant 0 : i32
    %c0_i32_1 = arith.constant 0 : i32
    return %c0_i32, %c0_i32_0 : i32, i32
  }
  func.func @transform_9(%arg0: i32) -> (i32, i32) {
    %c0_i32 = arith.constant 0 : i32
    %c0_i32_0 = arith.constant 0 : i32
    %c0_i32_1 = arith.constant 0 : i32
    return %c0_i32, %c0_i32_0 : i32, i32
  }
  func.func @transform_10(%arg0: i32) -> (i32, i32) {
    %c0_i32 = arith.constant 0 : i32
    %c0_i32_0 = arith.constant 0 : i32
    %c0_i32_1 = arith.constant 0 : i32
    return %c0_i32, %c0_i32_0 : i32, i32
  }
  func.func @transform_11(%arg0: i32) -> (i32, i32) {
    %c0_i32 = arith.constant 0 : i32
    %c0_i32_0 = arith.constant 0 : i32
    %c0_i32_1 = arith.constant 0 : i32
    return %c0_i32, %c0_i32_0 : i32, i32
  }
  func.func @transform_12(%arg0: i32) -> (i32, i32) {
    %c0_i32 = arith.constant 0 : i32
    %c0_i32_0 = arith.constant 0 : i32
    %c0_i32_1 = arith.constant 0 : i32
    return %c0_i32, %c0_i32_0 : i32, i32
  }
  func.func @transform_13(%arg0: i32) -> (i32, i32) {
    %c0_i32 = arith.constant 0 : i32
    %c0_i32_0 = arith.constant 0 : i32
    %c0_i32_1 = arith.constant 0 : i32
    return %c0_i32, %c0_i32_0 : i32, i32
  }
  func.func @transform_14(%arg0: i32) -> (i32, i32, i32) {
    %c0_i32 = arith.constant 0 : i32
    %c0_i32_0 = arith.constant 0 : i32
    %c0_i32_1 = arith.constant 0 : i32
    return %arg0, %c0_i32, %c0_i32_0 : i32, i32, i32
  }
}

</mosaic_0001>

<bundles_post_ra>
// kernel: tpu_custom_call.1
= control target key start
LH: loop header
LB: loop body
LE: loop exit
PB: predicated region body
PF: predicated region fallthrough
CT: control target
= control target key end

     0   :  { %s8016_s0 = inlined_call_operand.vmem [shape: f32[8,8,128], index: 0, kind: input, shape index: {}]   ;;  %s8017_s1 = inlined_call_operand.vmem [shape: f32[8,8,128], index: 1, kind: input, shape index: {}]   ;;  %s8018_s2 = inlined_call_operand.hbm [shape: f32[1,4224], index: 2, kind: input, shape index: {}]   ;;  %s8019_s3 = inlined_call_operand.vmem [shape: bf16[128,32], index: 3, kind: input, shape index: {}]   ;;  %s8020_s4 = inlined_call_operand.hbm [shape: bf16[32,128], index: 4, kind: input, shape index: {}]   ;;  %s8021_s5 = inlined_call_operand.vmem [shape: bf16[128,32], index: 5, kind: input, shape index: {}]   ;;  %s8022_s6 = inlined_call_operand.hbm [shape: bf16[32,128], index: 6, kind: input, shape index: {}]   ;;  %s8023_s7 = inlined_call_operand.vmem [shape: bf16[128,384], index: 7, kind: input, shape index: {}]   ;;  %s8024_s8 = inlined_call_operand.hbm [shape: bf16[128,128], index: 8, kind: input, shape index: {}]   ;;  %s8025_s9 = inlined_call_operand.hbm [shape: bf16[128,2048], index: 9, kind: input, shape index: {}]   ;;  %s8026_s10 = inlined_call_operand.hbm [shape: bf16[2048,128], index: 10, kind: input, shape index: {}]   ;;  %s8027_s11 = inlined_call_operand.vmem [shape: bf16[128,64], index: 11, kind: input, shape index: {}]   ;;  %s8028_s12 = inlined_call_operand.vmem [shape: bf16[64,32], index: 12, kind: input, shape index: {}]   ;;  %s8029_s13 = inlined_call_operand.vmem [shape: bf16[32,144], index: 13, kind: input, shape index: {}]   ;;  %s8030_s14 = inlined_call_operand.hbm [shape: f32[8,8,256], index: 14, kind: output, shape index: {}]  }
   0x1   :  { %8049 = sst [smem:[#allocation27_spill]] %s8029_s13 }
   0x2   :  { %8050 = sst [smem:[#allocation28_spill]] %s8030_s14 }
   0x3   :  { %19 = vsyncpa [#allocation3], 0 }
   0x4   :  { %20 = vsyncpa [#allocation6], 0 }
   0x5   :  { %21 = vsyncpa [#allocation9], 0 }
   0x6   :  { %22 = vsyncpa [#allocation12], 0 }
   0x7   :  { %23 = vsyncpa [#allocation4], 0 }
   0x8   :  { %25 = vsyncpa [#allocation4 + $0x1], 0  ;;  %s7178_s29 = smov 0   ;;  %s7180_s30 = smov 0  }
   0x9   :  { %s7182_s15 = smov 0   ;;  %s7184_s16 = smov 0  }
   0xa LB: > { %8051 = sst [smem:[#allocation19_spill]] %s7073_s29  ;;  %s7199_s17 = sadd.s32 4294967295, %s7085_s16   ;;  %s7085_s16 = sphi %s7184_s16, %s8085_s16   ;;  %s7081_s15 = sphi %s7182_s15, %s8088_s15   ;;  %s7077_s30 = sphi %s7180_s30, %s8087_s30   ;;  %s7073_s29 = sphi %s7178_s29, %s8086_s29  }
   0xb   : > { %8052 = sst [smem:[#allocation20_spill]] %s7077_s30  ;;  %s5575_s18 = sadd.s32 4294967294, %s7085_s16  }
   0xc   : > { %8053 = sst [smem:[#allocation21_spill]] %s7081_s15  ;;  %s7203_s19 = sadd.s32 1, %s7085_s16  }
   0xd   : > { %8054 = sst [smem:[#allocation22_spill]] %s7085_s16  ;;  %s342_s20 = sadd.s32 1, %s7081_s15 }
   0xe   : > { %8055 = sst [smem:[#allocation23_spill]] %s7203_s19  ;;  %s339_s21 = ssub.s32 %s7085_s16, %s7203_s19 }
   0xf   : > { %p352_p0 = scmp.ne.s32.totalorder %s7081_s15, %s7077_s30  ;;  %p340_p1 = scmp.eq.s32.totalorder %s339_s21, 0 }
  0x10   : > { %p353_p2 = scmp.eq.s32.totalorder %s7199_s17, 1  ;;  %p358_p3 = scmp.ne.s32.totalorder %s7077_s30, %s7073_s29 }
  0x11   : > { %p359_p4 = scmp.eq.s32.totalorder %s5575_s18, 1  ;;  %p5576_p7 = scmp.ge.s32.totalorder %s7085_s16, 1 }
  0x12   : > { %s7214_s22 = scalar_select %p340_p1, %s7081_s15, %s342_s20  }
  0x13   : > { %p7216_p5 = por %p353_p2, %p352_p0  ;;  %p7220_p6 = por %p359_p4, %p358_p3 }
  0x14   : > { %8056 = sst [smem:[#allocation24_spill]] %s7214_s22  ;;  %p366_p8 = scmp.lt.s32.totalorder %s7085_s16, 3 }
  0x15   : > { %s8057_s23 = scalar_select %p7216_p5, 1, 0 }
  0x16   : > { %s8059_s24 = scalar_select %p7220_p6, 1, 0 }
  0x17   : > { %8058 = sst [smem:[#allocation25_spill]] %s8057_s23  ;;  %p8037_p9 = scmp.eq.s32.totalorder %s7199_s17, 0 }
  0x18   : > { %8060 = sst [smem:[#allocation26_spill]] %s8059_s24  ;;  %p7227_p10 = pnand %p5576_p7, %p366_p8 }
  0x19   : > { %s7087_s26 = smov [#allocation5]   ;;  %s7088_s18 = smov [#allocation8]  }
  0x1a   : > { %s8061_s25 = scalar_select %p7227_p10, 1, 0 }
  0x1b   : > { %s392_s27 = sshll.u32 %s7087_s26, 4  ;;  %p6462_p11 = pneg %p7227_p10  ;;  %s7233_s27 = int_to_ptr.vmem [resolvable:$true] %s392_s27 }
  0x1c   : > { %s424_s20 = sshll.u32 %s7088_s18, 4  ;;  %s7089_s21 = smov [#allocation2]   ;;  %s7241_s20 = int_to_ptr.vmem [resolvable:$true] %s424_s20 }
  0x1d   : > { %p7237_p12 = pnand %p8037_p9, %p6462_p11  ;;  %s7243_s22 = sshll.u32 %s7089_s21, 4  ;;  %s380_s22 = int_to_ptr.vmem [resolvable:$true] %s7243_s22 }
  0x1e   : > { %s6839_s26 = scalar_lea.hbm %s8020_s4, 256 }
  0x1f   : > { %p6840_p13 = scmp.ne.s32.totalorder %s8020_s4, %s6839_s26  ;;  %p7253_p0 = pneg %p7237_p12 }
  0x20   : > { %p6846_p3 = scmp.lt.u32.totalorder %s6839_s26, %s8020_s4 }
  0x21   : > { %p6842_p1 = pnand %p7253_p0, %p6840_p13 }
  0x23   : > { %p6843_p2 = pneg %p6842_p1 }
  0x25   : > { %p6848_p4 = pnand %p6846_p3, %p6843_p2 }
  0x27   : > { %6851 = shalt.err (!%p6848_p4)
}
  0x28   : > { %s6852_s29 = scalar_lea.vmem %s7233_s27, 256  ;;  %p6860_p9 = scmp.lt.s32.totalorder %s7233_s27, %s7233_s27 }
  0x29   : > { %p6853_p7 = scmp.ne.s32.totalorder %s7233_s27, %s6852_s29  ;;  %p6861_p6 = scmp.lt.s32.totalorder %s6852_s29, %s6852_s29 }
  0x2b   : > { %p6855_p8 = pnand %p6853_p7, %p7253_p0  ;;  %p6862_p13 = por %p6861_p6, %p6860_p9 }
  0x2d   : > { %p6856_p11 = pneg %p6855_p8 }
  0x2f   : > { %p6863_p1 = pnand %p6862_p13, %p6856_p11 }
  0x31   : > { %6866 = shalt.err (!%p6863_p1)
}
  0x32   : > { %s8046_s15 = smov 64   ;;  %s8048_s19 = smov 4  }
  0x33   : > { %6468 = dma.hbm_to_vmem [thread:$0]  (!%p7237_p12), %s8020_s4, 256, %s7233_s27, [#allocation6], %s8046_s15, %s8046_s15, %s8048_s19  }
  0x34   : > { %s6867_s29 = scalar_lea.hbm %s8024_s8, 1024 }
  0x35   : > { %p6868_p6 = scmp.ne.s32.totalorder %s8024_s8, %s6867_s29  ;;  %p6874_p3 = scmp.lt.u32.totalorder %s6867_s29, %s8024_s8 }
  0x37   : > { %p6870_p9 = pnand %p6868_p6, %p7253_p0 }
  0x39   : > { %p6871_p2 = pneg %p6870_p9 }
  0x3b   : > { %p6876_p4 = pnand %p6874_p3, %p6871_p2 }
  0x3d   : > { %6879 = shalt.err (!%p6876_p4)
}
  0x3e   : > { %s6880_s27 = scalar_lea.vmem %s7241_s20, 1024  ;;  %p6888_p13 = scmp.lt.s32.totalorder %s7241_s20, %s7241_s20 }
  0x3f   : > { %p6881_p7 = scmp.ne.s32.totalorder %s7241_s20, %s6880_s27  ;;  %p6889_p1 = scmp.lt.s32.totalorder %s6880_s27, %s6880_s27 }
  0x41   : > { %p6883_p8 = pnand %p6881_p7, %p7253_p0  ;;  %p6890_p6 = por %p6889_p1, %p6888_p13 }
  0x43   : > { %p6884_p11 = pneg %p6883_p8 }
  0x45   : > { %p6891_p9 = pnand %p6890_p6, %p6884_p11 }
  0x47   : > { %6894 = shalt.err (!%p6891_p9)
}
  0x48   : > { %6474 = dma.hbm_to_vmem [thread:$0]  (!%p7237_p12), %s8024_s8, 1024, %s7241_s20, [#allocation9], %s8046_s15, %s8046_s15, %s8048_s19  }
  0x49   : > { %s6895_s24 = scalar_lea.hbm %s8018_s2, 528 }
  0x4a   : > { %p6896_p2 = scmp.ne.s32.totalorder %s8018_s2, %s6895_s24  ;;  %p6902_p7 = scmp.lt.u32.totalorder %s6895_s24, %s8018_s2 }
  0x4c   : > { %p6898_p3 = pnand %p6896_p2, %p7253_p0 }
  0x4e   : > { %p6899_p4 = pneg %p6898_p3 }
  0x50   : > { %p6904_p8 = pnand %p6902_p7, %p6899_p4 }
  0x52   : > { %6907 = shalt.err (!%p6904_p8)
}
  0x53   : > { %s6908_s27 = scalar_lea.vmem %s380_s22, 528  ;;  %s6915_s20 = scalar_lea.vmem %s380_s22, 544 }
  0x54   : > { %p6909_p11 = scmp.ne.s32.totalorder %s380_s22, %s6908_s27  ;;  %p6916_p6 = scmp.lt.s32.totalorder %s380_s22, %s380_s22 }
  0x55   : > { %p6917_p9 = scmp.lt.s32.totalorder %s6915_s20, %s6908_s27 }
  0x56   : > { %p6911_p13 = pnand %p6909_p11, %p7253_p0 }
  0x57   : > { %p6918_p5 = por %p6917_p9, %p6916_p6 }
  0x58   : > { %p6912_p1 = pneg %p6911_p13 }
  0x5a   : > { %p6919_p10 = pnand %p6918_p5, %p6912_p1 }
  0x5c   : > { %6922 = shalt.err (!%p6919_p10)
}
  0x5d   : > { %6465 = dma.hbm_to_vmem [thread:$0]  (!%p7237_p12), %s8018_s2, 528, %s380_s22, [#allocation3]  }
  0x5e   : > { %s7092_s30 = smov [#allocation7]   ;;  %s7093_s24 = smov [#allocation10]  }
  0x5f   : > { %s408_s23 = sshll.u32 %s7092_s30, 4  ;;  %s437_s26 = sshll.u32 %s7093_s24, 4  ;;  %s409_s23 = int_to_ptr.vmem [resolvable:$true] %s408_s23  ;;  %s438_s26 = int_to_ptr.vmem [resolvable:$true] %s437_s26 }
  0x60   : > { %s6923_s29 = scalar_lea.hbm %s8022_s6, 256 }
  0x61   : > { %p6924_p5 = scmp.ne.s32.totalorder %s8022_s6, %s6923_s29  ;;  %p6930_p3 = scmp.lt.u32.totalorder %s6923_s29, %s8022_s6 }
  0x63   : > { %p6926_p10 = pnand %p6924_p5, %p7253_p0 }
  0x65   : > { %p6927_p2 = pneg %p6926_p10 }
  0x67   : > { %p6932_p4 = pnand %p6930_p3, %p6927_p2 }
  0x69   : > { %6935 = shalt.err (!%p6932_p4)
}
  0x6a   : > { %s6936_s22 = scalar_lea.vmem %s409_s23, 256  ;;  %p6944_p13 = scmp.lt.s32.totalorder %s409_s23, %s409_s23 }
  0x6b   : > { %p6937_p7 = scmp.ne.s32.totalorder %s409_s23, %s6936_s22  ;;  %p6945_p1 = scmp.lt.s32.totalorder %s6936_s22, %s6936_s22 }
  0x6d   : > { %p6939_p8 = pnand %p6937_p7, %p7253_p0  ;;  %p6946_p6 = por %p6945_p1, %p6944_p13 }
  0x6f   : > { %p6940_p11 = pneg %p6939_p8 }
  0x71   : > { %p6947_p9 = pnand %p6946_p6, %p6940_p11 }
  0x73   : > { %6950 = shalt.err (!%p6947_p9)
}
  0x74   : > { %s8064_s14 = smov 64   ;;  %s6951_s21 = scalar_lea.hbm %s8025_s9, 16384 }
  0x75   : > { %6471 = dma.hbm_to_vmem [thread:$0]  (!%p7237_p12), %s8022_s6, 256, %s409_s23, [#allocation6], %s8064_s14, %s8064_s14, %s8048_s19  }
  0x76   : > { %p6952_p5 = scmp.ne.s32.totalorder %s8025_s9, %s6951_s21  ;;  %p6958_p3 = scmp.lt.u32.totalorder %s6951_s21, %s8025_s9 }
  0x78   : > { %p6954_p10 = pnand %p6952_p5, %p7253_p0 }
  0x7a   : > { %p6955_p2 = pneg %p6954_p10 }
  0x7c   : > { %p6960_p4 = pnand %p6958_p3, %p6955_p2 }
  0x7e   : > { %6963 = shalt.err (!%p6960_p4)
}
  0x7f   : > { %s6964_s22 = scalar_lea.vmem %s438_s26, 16384  ;;  %p6972_p13 = scmp.lt.s32.totalorder %s438_s26, %s438_s26 }
  0x80   : > { %p6965_p7 = scmp.ne.s32.totalorder %s438_s26, %s6964_s22  ;;  %p6973_p1 = scmp.lt.s32.totalorder %s6964_s22, %s6964_s22 }
  0x82   : > { %p6967_p8 = pnand %p6965_p7, %p7253_p0  ;;  %p6974_p6 = por %p6973_p1, %p6972_p13 }
  0x84   : > { %p6968_p11 = pneg %p6967_p8 }
  0x86   : > { %p6975_p9 = pnand %p6974_p6, %p6968_p11 }
  0x88   : > { %6978 = shalt.err (!%p6975_p9)
}
  0x89   : > { %s7094_s23 = smov 1024   ;;  %s7095_s24 = smov [#allocation11]  }
  0x8a   : > { %6477 = dma.hbm_to_vmem [thread:$0]  (!%p7237_p12), %s8025_s9, 16384, %s438_s26, [#allocation9], %s7094_s23, %s7094_s23, %s8064_s14  }
  0x8b   : > { %s450_s18 = sshll.u32 %s7095_s24, 4  ;;  %s6979_s27 = scalar_lea.hbm %s8026_s10, 16384  ;;  %s451_s18 = int_to_ptr.vmem [resolvable:$true] %s450_s18 }
  0x8c   : > { %p6980_p5 = scmp.ne.s32.totalorder %s8026_s10, %s6979_s27  ;;  %p6986_p3 = scmp.lt.u32.totalorder %s6979_s27, %s8026_s10 }
  0x8e   : > { %p6982_p10 = pnand %p6980_p5, %p7253_p0 }
  0x90   : > { %p6983_p2 = pneg %p6982_p10 }
  0x92   : > { %p6988_p4 = pnand %p6986_p3, %p6983_p2 }
  0x94   : > { %6991 = shalt.err (!%p6988_p4)
}
  0x95   : > { %s6992_s26 = scalar_lea.vmem %s451_s18, 16384  ;;  %p7000_p13 = scmp.lt.s32.totalorder %s451_s18, %s451_s18 }
  0x96   : > { %p6993_p7 = scmp.ne.s32.totalorder %s451_s18, %s6992_s26  ;;  %p7001_p1 = scmp.lt.s32.totalorder %s6992_s26, %s6992_s26 }
  0x98   : > { %p6995_p8 = pnand %p6993_p7, %p7253_p0  ;;  %p7002_p6 = por %p7001_p1, %p7000_p13 }
  0x9a   : > { %p6996_p11 = pneg %p6995_p8 }
  0x9c   : > { %p7003_p9 = pnand %p7002_p6, %p6996_p11 }
  0x9e   : > { %7006 = shalt.err (!%p7003_p9)
}
  0x9f   : > { %s8065_s23 = smov 4   ;;  %p8066_p5 = scmp.ne.s32.totalorder %s8061_s25, 0 }
  0xa0   : > { %6480 = dma.hbm_to_vmem [thread:$0]  (!%p7237_p12), %s8026_s10, 16384, %s451_s18, [#allocation12], %s8064_s14, %s8064_s14, %s8065_s23  }
  0xa1   : > { %493 = sbr.rel (%p8066_p5) target bundleno = 4350 (0x10fe), region = 76  ;;  %p8067_p0 = scmp.eq.s32.totalorder (!%p8066_p5), %s7199_s17, 0 }
  0xa8   : > { %7052 = dma.done.wait (%p8067_p0), [#allocation3], 528   ;;  %p8068_p10 = pmov %p8067_p0 }
  0xa9   : > { %p8069_p2 = pmov %p8067_p0 }
  0xaa   : > { %7054 = vsyncadd (%p8068_p10), [#allocation3], 4294966768 }
  0xab   : > { %7056 = dma.done.wait (%p8069_p2), [#allocation6], 512   ;;  %p8070_p3 = pmov %p8067_p0 }
  0xac   : > { %p8071_p4 = pmov %p8067_p0 }
  0xad   : > { %7058 = vsyncadd (%p8070_p3), [#allocation6], 4294966784 }
  0xae   : > { %7060 = dma.done.wait (%p8071_p4), [#allocation9], 17408   ;;  %p8072_p12 = pmov %p8067_p0 }
  0xaf   : > { %p8073_p7 = pmov %p8067_p0 }
  0xb0   : > { %7062 = vsyncadd (%p8072_p12), [#allocation9], 4294949888 }
  0xb1   : > { %7064 = dma.done.wait (%p8073_p7), [#allocation12], 16384   ;;  %p8074_p8 = pmov %p8067_p0 }
  0xb2   : > { %s5592_s16 = sshll.u32 %s7199_s17, 2  ;;  %v6545_v0 = vld [vmem:[%s8019_s3] sm:$0xff]   ;;  %v6546_v1 = vld [vmem:[%s8019_s3 + $0x8] sm:$0xff]   ;;  %v6547_v2 = vld [vmem:[%s8019_s3 + $0x10] sm:$0xff]   ;;  %vm741_vm0 = vcmask 261120   ;;  %vm7098_vm1 = vmmov 0  }
  0xb3   : > { %7066 = vsyncadd (%p8074_p8), [#allocation12], 4294950912  ;;  %p565_p11 = scmp.lt.s32.totalorder %s5592_s16, 7  ;;  %6268 = vmatprep.subr.bf16.mxu0 %v6545_v0  ;;  %v6548_v3 = vld [vmem:[%s8019_s3 + $0x18] sm:$0xff]   ;;  %v6549_v9 = vld [vmem:[%s8019_s3 + $0x20] sm:$0xff]   ;;  %vm1644_vm2 = vcmask 64512  }
  0xb4   : > { %6269 = vmatpush3.bf16.msra.mxu0 %v6545_v0  ;;  %v6550_v12 = vld [vmem:[%s8019_s3 + $0x28] sm:$0xff]   ;;  %v6551_v13 = vld [vmem:[%s8019_s3 + $0x30] sm:$0xff]   ;;  %v6552_v18 = vld [vmem:[%s8019_s3 + $0x38] sm:$0xff]   ;;  %vm5208_vm3 = vcmask 523264   ;;  %s8075_s14 = sld [smem:[#allocation27_spill]]  ;;  %s8076_s13 = sld [smem:[#allocation20_spill]] }
  0xb5   : > { %s8090_s16 = smov (!%p565_p11, %s5592_s16), 7  ;;  %6270 = vmatprep.subr.bf16.mxu0 %v6546_v1  ;;  %v6553_v22 = vld [vmem:[#allocation5] sm:$0xff]   ;;  %v6554_v23 = vld [vmem:[#allocation5 + $0x8] sm:$0xff]   ;;  %v5596_v24 = vld [vmem:[#allocation2] ss:$0 sm:$0xff]  ;;  %s7099_s23 = smov 32  }
  0xb6   : > { %s5593_s24 = sshll.u32 %s8090_s16, 3  ;;  %6288 = vmatprep.subr.bf16.mxu1 %v6553_v22  ;;  %v6555_v39 = vld [vmem:[%s8021_s5] sm:$0xff]   ;;  %v6556_v40 = vld [vmem:[%s8021_s5 + $0x8] sm:$0xff]   ;;  %v6557_v41 = vld [vmem:[%s8021_s5 + $0x10] sm:$0xff]   ;;  %vm5413_vm4 = vcmask 392192   ;;  %s8077_s19 = sld [smem:[#allocation25_spill]] }
  0xb7   : > { %s7414_s20 = scalar_lea.vmem %s8016_s0, %s5593_s24  ;;  %s7419_s26 = scalar_lea.vmem %s8017_s1, %s5593_s24  ;;  %6289 = vmatpush3.bf16.msra.mxu1 %v6553_v22  ;;  %v6558_v42 = vld [vmem:[%s8021_s5 + $0x18] sm:$0xff]   ;;  %v6559_v43 = vld [vmem:[%s8021_s5 + $0x20] sm:$0xff]   ;;  %v6560_v44 = vld [vmem:[%s8021_s5 + $0x28] sm:$0xff]  }
  0xb8   : > { %6271 = vmatpush3.bf16.msra.mxu0 %v6546_v1  ;;  %v7425_v4 = vld [vmem:[%s7414_s20] sm:$0xff]  ;;  %v7428_v5 = vld [vmem:[%s7414_s20 + $0x8] sm:$0xff]  ;;  %v7450_v14 = vld [vmem:[%s7414_s20 + $0x10] sm:$0xff]  ;;  %6290 = vmatprep.subr.bf16.mxu1 %v6554_v23  ;;  %s5963_s16 = sshll.u32 %s7199_s17, 10  ;;  %s8078_s30 = sld [smem:[#allocation28_spill]] }
  0xb9   : > { %6272 = vmatprep.subr.bf16.mxu0 %v6547_v2  ;;  %v7431_v6 = vld [vmem:[%s7419_s26] sm:$0xff]  ;;  %v7434_v7 = vld [vmem:[%s7419_s26 + $0x8] sm:$0xff]  ;;  %v7453_v15 = vld [vmem:[%s7414_s20 + $0x18] sm:$0xff]  ;;  %s7100_s29 = smov [#allocation13]  }
  0xba   : > { %v586_v8 = vadd.f32 %v7431_v6, %v7425_v4  ;;  %v587_v10 = vadd.f32 %v7434_v7, %v7428_v5  ;;  %v7456_v16 = vld [vmem:[%s7419_s26 + $0x10] sm:$0xff]  ;;  %v7459_v17 = vld [vmem:[%s7419_s26 + $0x18] sm:$0xff]  ;;  %v5605_v47 = vld [vmem:[#allocation2 + $0x1] ss:$0 sm:$0xff]  ;;  %s7011_s27 = sshll.u32 %s7100_s29, 4  ;;  %s7012_s27 = int_to_ptr.vmem [resolvable:$false] %s7011_s27 }
  0xbb   : > { %v588_v19 = vadd.f32 %v7456_v16, %v7450_v14  ;;  %v589_v20 = vadd.f32 %v7459_v17, %v7453_v15  ;;  %6291 = vmatpush3.bf16.msra.mxu1 %v6554_v23  ;;  %v6561_v45 = vld [vmem:[%s8021_s5 + $0x30] sm:$0xff]   ;;  %v6562_v46 = vld [vmem:[%s8021_s5 + $0x38] sm:$0xff]  }
  0xbc   : > { %6273 = vmatpush3.bf16.msra.mxu0 %v6547_v2  ;;  %v590_v11 = vpack.c.bf16 %v587_v10, %v586_v8  ;;  %6296 = vmatprep.subr.bf16.mxu1 %v6555_v39  ;;  %p8080_p1 = scmp.ne.s32.totalorder %s8077_s19, 0 }
  0xbd   : > { %6274 = vmatprep.subr.bf16.mxu0 %v6548_v3  ;;  %v591_v21 = vpack.c.bf16 %v589_v20, %v588_v19 }
  0xbe   : > { %6284 = vmatprep.mubr.bf16.mxu0 %v590_v11  ;;  %s8079_s24 = smov %s8078_s30  ;;  %s7966_s18 = scalar_lea.hbm %s8078_s30, %s5963_s16 }
  0xc0   : > { %6275 = vmatpush3.bf16.msra.mxu0 %v6548_v3 }
  0xc1   : > { %6276 = vmatprep.subr.bf16.mxu0 %v6549_v9 }
  0xc4   : > { %6277 = vmatpush3.bf16.msra.mxu0 %v6549_v9 }
  0xc5   : > { %6278 = vmatprep.subr.bf16.mxu0 %v6550_v12 }
  0xc8   : > { %6279 = vmatpush3.bf16.msra.mxu0 %v6550_v12 }
  0xc9   : > { %6280 = vmatprep.subr.bf16.mxu0 %v6551_v13 }
  0xcc   : > { %6281 = vmatpush3.bf16.msra.mxu0 %v6551_v13 }
  0xcd   : > { %6282 = vmatprep.subr.bf16.mxu0 %v6552_v18 }
  0xd0   : > { %6283 = vmatpush3.bf16.msra.mxu0 %v6552_v18 }
  0xd3   : > { %6285 = vmatmul.mubr.bf16.vlgmr.msra.gmra.mrb[0].mxu0 %v591_v21 }
 0x1a6   : > { %v6286_v25 = vpop.f32.mrb[0].mxu0 }
 0x1a7   : > { %v706_v26 = vadd.f32 %v6286_v25, %v5596_v24  ;;  %v697_v27 = vpop.f32.mrb[1].mxu0 }
 0x1a8   : > { %v698_v28 = vadd.f32 %v5596_v24, %v697_v27  ;;  %v6287_v29 = vpop.f32.mrb[2].mxu0 }
 0x1a9   : > { %v709_v30 = vadd.f32 %v6287_v29, %v5596_v24  ;;  %v700_v31 = vpop.f32.mrb[3].mxu0  ;;  %v714_v33 = vmax.f32 %v706_v26, 0.0 }
 0x1aa   : > { %v701_v32 = vadd.f32 %v5596_v24, %v700_v31  ;;  %v712_v35 = vmax.f32 %v698_v28, 0.0 }
 0x1ab   : > { %v715_v34 = vmax.f32 %v709_v30, 0.0 }
 0x1ac   : > { %v713_v36 = vmax.f32 %v701_v32, 0.0 }
 0x1ad   : > { %v717_v37 = vpack.c.bf16 %v715_v34, %v714_v33 }
 0x1ae   : > { %v716_v38 = vpack.c.bf16 %v713_v36, %v712_v35 }
 0x1b0   : > { %6292 = vmatprep.mubr.msk.bf16.mxu1 %vm741_vm0, %v716_v38 }
 0x1b1   : > { %6293 = vmatmul.mubr.msk.bf16.vlgmr.msra.gmra.mrb[0].mxu1 %vm741_vm0, %v717_v37 }
 0x1b2   : > { %6297 = vmatpush3.bf16.msra.mxu1 %v6555_v39 }
 0x1b3   : > { %6298 = vmatprep.subr.bf16.mxu1 %v6556_v40 }
 0x1b6   : > { %6299 = vmatpush3.bf16.msra.mxu1 %v6556_v40 }
 0x1b7   : > { %6300 = vmatprep.subr.bf16.mxu1 %v6557_v41 }
 0x1ba   : > { %6301 = vmatpush3.bf16.msra.mxu1 %v6557_v41 }
 0x1bb   : > { %6302 = vmatprep.subr.bf16.mxu1 %v6558_v42 }
 0x1be   : > { %6303 = vmatpush3.bf16.msra.mxu1 %v6558_v42 }
 0x1bf   : > { %6304 = vmatprep.subr.bf16.mxu1 %v6559_v43 }
 0x1c2   : > { %6305 = vmatpush3.bf16.msra.mxu1 %v6559_v43  ;;  %v6567_v43 = vld [vmem:[%s8023_s7 + $0x4] ss:$12 sps:$4 sm:$0xff]  }
 0x1c3   : > { %6306 = vmatprep.subr.bf16.mxu1 %v6560_v44 }
 0x1c6   : > { %6307 = vmatpush3.bf16.msra.mxu1 %v6560_v44  ;;  %v6565_v44 = vld [vmem:[%s8023_s7] ss:$12 sps:$4 sm:$0xff]  }
 0x1c7   : > { %6308 = vmatprep.subr.bf16.mxu1 %v6561_v45 }
 0x1ca   : > { %6309 = vmatpush3.bf16.msra.mxu1 %v6561_v45  ;;  %v6568_v45 = vld [vmem:[%s8023_s7 + $0x8] ss:$12 sps:$4 sm:$0xff]  }
 0x1cb   : > { %6310 = vmatprep.subr.bf16.mxu1 %v6562_v46 }
 0x1ce   : > { %6311 = vmatpush3.bf16.msra.mxu1 %v6562_v46  ;;  %v6571_v46 = vld [vmem:[%s8023_s7 + $0x1c] ss:$12 sps:$4 sm:$0xff]  }
 0x1cf   : > { %6324 = vmatprep.subr.bf16.mxu1 %v6568_v45 }
 0x284   : > { %v6294_v48 = vpop.f32.mrb[0].mxu1 }
 0x285   : > { %v791_v49 = vadd.f32 %v6294_v48, %v5605_v47  ;;  %v782_v50 = vpop.f32.mrb[1].mxu1  ;;  %v6572_v48 = vld [vmem:[%s8023_s7 + $0x20] ss:$12 sps:$4 sm:$0xff]  }
 0x286   : > { %v783_v51 = vadd.f32 %v5605_v47, %v782_v50  ;;  %v6295_v52 = vpop.f32.mrb[2].mxu1  ;;  %v6573_v50 = vld [vmem:[%s8023_s7 + $0x30] ss:$12 sps:$4 sm:$0xff]  }
 0x287   : > { %v5612_v53 = vmul.f32 -1.442695, %v791_v49  ;;  %v794_v54 = vadd.f32 %v6295_v52, %v5605_v47  ;;  %v785_v55 = vpop.f32.mrb[3].mxu1  ;;  %v6575_v49 = vld [vmem:[%s8023_s7 + $0x34] ss:$12 sps:$4 sm:$0xff]  }
 0x288   : > { %v5610_v56 = vmul.f32 -1.442695, %v783_v51  ;;  %v786_v57 = vadd.f32 %v5605_v47, %v785_v55  ;;  %v6569_v47 = vld [vmem:[%s8023_s7 + $0x18] ss:$12 sps:$4 sm:$0xff]   ;;  %v6581_v55 = vld [vmem:[%s8023_s7 + $0x60] ss:$12 sps:$4 sm:$0xff]  }
 0x289   : > { %6751 = vpow2.f32 %v5612_v53  ;;  %v5613_v58 = vmul.f32 -1.442695, %v794_v54  ;;  %v6576_v51 = vld [vmem:[%s8023_s7 + $0x38] ss:$12 sps:$4 sm:$0xff]   ;;  %v6577_v53 = vld [vmem:[%s8023_s7 + $0x48] ss:$12 sps:$4 sm:$0xff]  }
 0x28a   : > { %6753 = vpow2.f32 %v5610_v56  ;;  %v5611_v59 = vmul.f32 -1.442695, %v786_v57  ;;  %v6579_v52 = vld [vmem:[%s8023_s7 + $0x4c] ss:$12 sps:$4 sm:$0xff]   ;;  %v6580_v54 = vld [vmem:[%s8023_s7 + $0x50] ss:$12 sps:$4 sm:$0xff]  }
 0x28b   : > { %6755 = vpow2.f32 %v5613_v58  ;;  %v6583_v56 = vld [vmem:[%s8023_s7 + $0x64] ss:$12 sps:$4 sm:$0xff]   ;;  %v6584_v57 = vld [vmem:[%s8023_s7 + $0x68] ss:$12 sps:$4 sm:$0xff]  }
 0x28c   : > { %6757 = vpow2.f32 %v5611_v59  ;;  %v6587_v58 = vld [vmem:[%s8023_s7 + $0x7c] ss:$12 sps:$4 sm:$0xff]   ;;  %v6588_v59 = vld [vmem:[%s8023_s7 + $0x80] ss:$12 sps:$4 sm:$0xff]  }
 0x293   : > { %v6752_v60 = vpop.eup %6751 }
 0x294   : > { %v6754_v61 = vpop.eup %6753  ;;  %v811_v62 = vadd.f32 1.0, %v6752_v60  ;;  %v6585_v60 = vld [vmem:[%s8023_s7 + $0x78] ss:$12 sps:$4 sm:$0xff]  }
 0x295   : > { %v6756_v63 = vpop.eup %6755  ;;  %v809_v0 = vadd.f32 1.0, %v6754_v61  ;;  %v6591_v61 = vld [vmem:[%s8023_s7 + $0x94] ss:$12 sps:$4 sm:$0xff]  }
 0x296   : > { %v6758_v1 = vpop.eup %6757  ;;  %6759 = vrcp.f32 %v811_v62  ;;  %v812_v2 = vadd.f32 1.0, %v6756_v63  ;;  %v6592_v62 = vld [vmem:[%s8023_s7 + $0x98] ss:$12 sps:$4 sm:$0xff]   ;;  %v7096_v63 = vmov 0  }
 0x297   : > { %6761 = vrcp.f32 %v809_v0  ;;  %v810_v3 = vadd.f32 1.0, %v6758_v1  ;;  %v6589_v0 = vld [vmem:[%s8023_s7 + $0x90] ss:$12 sps:$4 sm:$0xff]   ;;  %v6595_v1 = vld [vmem:[%s8023_s7 + $0xac] ss:$12 sps:$4 sm:$0xff]  }
 0x298   : > { %6763 = vrcp.f32 %v812_v2  ;;  %v6596_v2 = vld [vmem:[%s8023_s7 + $0xb0] ss:$12 sps:$4 sm:$0xff]  }
 0x299   : > { %6765 = vrcp.f32 %v810_v3  ;;  %v6593_v3 = vld [vmem:[%s8023_s7 + $0xa8] ss:$12 sps:$4 sm:$0xff]  }
 0x2a0   : > { %v6760_v8 = vpop.eup %6759 }
 0x2a1   : > { %v6762_v9 = vpop.eup %6761  ;;  %v827_v10 = vsub.f32 1.0, %v6760_v8  ;;  %v823_v22 = vmul.f32 %v6760_v8, %v7450_v14  ;;  %v6564_v14 = vld [vmem:[#allocation7 + $0x8] sm:$0xff]   ;;  %v5623_v8 = vld [vmem:[#allocation2 + $0x3] ss:$0 sm:$0xff] }
 0x2a2   : > { %v6764_v11 = vpop.eup %6763  ;;  %v825_v12 = vsub.f32 1.0, %v6762_v9  ;;  %v821_v25 = vmul.f32 %v6762_v9, %v7425_v4 }
 0x2a3   : > { %v6766_v13 = vpop.eup %6765  ;;  %v828_v18 = vsub.f32 1.0, %v6764_v11  ;;  %v831_v19 = vmul.f32 %v827_v10, %v7456_v16  ;;  %v824_v23 = vmul.f32 %v6764_v11, %v7453_v15  ;;  %v5614_v15 = vld [vmem:[#allocation2 + $0x2] ss:$0 sm:$0xff] }
 0x2a4   : > { %v826_v20 = vsub.f32 1.0, %v6766_v13  ;;  %v829_v21 = vmul.f32 %v825_v12, %v7431_v6  ;;  %v822_v26 = vmul.f32 %v6766_v13, %v7428_v5  ;;  %v6563_v6 = vld [vmem:[#allocation7] sm:$0xff]  }
 0x2a5   : > { %v832_v24 = vmul.f32 %v828_v18, %v7459_v17  ;;  %v835_v28 = vadd.f32 %v831_v19, %v823_v22  ;;  %6316 = vmatprep.subr.bf16.mxu0 %v6563_v6 }
 0x2a6   : > { %v830_v27 = vmul.f32 %v826_v20, %v7434_v7  ;;  %v833_v30 = vadd.f32 %v829_v21, %v821_v25  ;;  %6317 = vmatpush3.bf16.msra.mxu0 %v6563_v6 }
 0x2a7   : > { %v836_v29 = vadd.f32 %v832_v24, %v824_v23  ;;  %6318 = vmatprep.subr.bf16.mxu0 %v6564_v14 }
 0x2a8   : > { %v834_v31 = vadd.f32 %v830_v27, %v822_v26 }
 0x2a9   : > { %v838_v16 = vpack.c.bf16 %v836_v29, %v835_v28 }
 0x2aa   : > { %v837_v32 = vpack.c.bf16 %v834_v31, %v833_v30  ;;  %6319 = vmatpush3.bf16.msra.mxu0 %v6564_v14 }
 0x2ab   : > { %1262 = vmatprep.subr.bf16.mxu0 %v6567_v43  ;;  %v6836_v43 = vld [vmem:[%s7414_s20 + $0x8] sm:$0xff] }
 0x2ac   : > { %6312 = vmatprep.mubr.bf16.mxu1 %v837_v32 }
 0x2ad   : > { %6313 = vmatmul.mubr.bf16.vlgmr.msra.gmra.mrb[4].mxu1 %v838_v16 }
 0x2ae   : > { %6325 = vmatpush3.bf16.msra.mxu1 %v6568_v45  ;;  %v6837_v45 = vld [vmem:[%s7419_s26 + $0x8] sm:$0xff] }
 0x2af   : > { %6326 = vmatprep.subr.bf16.mxu1 %v6572_v48 }
 0x2b2   : > { %6327 = vmatpush3.bf16.msra.mxu1 %v6572_v48 }
 0x2b3   : > { %6328 = vmatprep.subr.bf16.mxu1 %v6576_v51 }
 0x2b6   : > { %6329 = vmatpush3.bf16.msra.mxu1 %v6576_v51 }
 0x2b7   : > { %6330 = vmatprep.subr.bf16.mxu1 %v6580_v54 }
 0x2ba   : > { %6331 = vmatpush3.bf16.msra.mxu1 %v6580_v54 }
 0x2bb   : > { %6332 = vmatprep.subr.bf16.mxu1 %v6584_v57 }
 0x2be   : > { %6333 = vmatpush3.bf16.msra.mxu1 %v6584_v57 }
 0x2bf   : > { %6334 = vmatprep.subr.bf16.mxu1 %v6588_v59 }
 0x2c2   : > { %6335 = vmatpush3.bf16.msra.mxu1 %v6588_v59 }
 0x2c3   : > { %6336 = vmatprep.subr.bf16.mxu1 %v6592_v62 }
 0x2c6   : > { %6337 = vmatpush3.bf16.msra.mxu1 %v6592_v62 }
 0x2c7   : > { %6338 = vmatprep.subr.bf16.mxu1 %v6596_v2 }
 0x2ca   : > { %6339 = vmatpush3.bf16.msra.mxu1 %v6596_v2 }
 0x380   : > { %v6314_v4 = vpop.f32.mrb[4].mxu1 }
 0x381   : > { %v953_v17 = vadd.f32 %v6314_v4, %v5614_v15  ;;  %v944_v5 = vpop.f32.mrb[5].mxu1 }
 0x382   : > { %v945_v33 = vadd.f32 %v5614_v15, %v944_v5  ;;  %v6315_v7 = vpop.f32.mrb[6].mxu1 }
 0x383   : > { %v956_v34 = vadd.f32 %v6315_v7, %v5614_v15  ;;  %v947_v35 = vpop.f32.mrb[7].mxu1  ;;  %v961_v37 = vmax.f32 %v953_v17, 0.0  ;;  %v6831_v7 = vld [vmem:[%s7419_s26] sm:$0xff] }
 0x384   : > { %v948_v36 = vadd.f32 %v5614_v15, %v947_v35  ;;  %v959_v39 = vmax.f32 %v945_v33, 0.0  ;;  %v6832_v35 = vld [vmem:[%s7414_s20 + $0x18] sm:$0xff] }
 0x385   : > { %v962_v38 = vmax.f32 %v956_v34, 0.0 }
 0x386   : > { %v960_v40 = vmax.f32 %v948_v36, 0.0 }
 0x387   : > { %v964_v41 = vpack.c.bf16 %v962_v38, %v961_v37  ;;  %v6833_v37 = vld [vmem:[%s7419_s26 + $0x10] sm:$0xff] }
 0x388   : > { %v963_v42 = vpack.c.bf16 %v960_v40, %v959_v39  ;;  %v6834_v39 = vld [vmem:[%s7419_s26 + $0x18] sm:$0xff] }
 0x38a   : > { %6320 = vmatprep.mubr.msk.bf16.mxu0 %vm741_vm0, %v963_v42 }
 0x38b   : > { %6321 = vmatmul.mubr.msk.bf16.vlgmr.msra.gmra.mrb[4].mxu0 %vm741_vm0, %v964_v41  ;;  %v6835_v41 = vld [vmem:[%s7414_s20] sm:$0xff] }
 0x38c   : > { %1263 = vmatpush1.bf16.msra.mxu0 %v6565_v44  ;;  %1294 = vmatprep.mubr.bf16.mxu0 %v7096_v63 }
 0x38d   : > { %1264 = vmatprep.subr.bf16.mxu0 %v6571_v46 }
 0x390   : > { %1265 = vmatpush1.bf16.msra.mxu0 %v6569_v47  ;;  %v6838_v47 = vld [vmem:[%s7414_s20 + $0x10] sm:$0xff]  ;;  %s561_s20 = sand.u32 1, %s8076_s13  }
 0x391   : > { %1266 = vmatprep.subr.bf16.mxu0 %v6575_v49  ;;  %s5591_s26 = sshll.u32 %s561_s20, 6  ;;  %s7975_s17 = scalar_lea.sflag [#allocation4], %s561_s20 }
 0x392   : > { %s7938_s22 = scalar_lea.vmem [#allocation13], %s5591_s26  ;;  %s7013_s26 = scalar_lea.vmem %s7012_s27, 2048 }
 0x393   : > { %s5441_s15 = sshll.u32 %s7938_s22, 4  ;;  %s7961_s15 = int_to_ptr.vmem [resolvable:$true] %s5441_s15 }
 0x394   : > { %1267 = vmatpush1.bf16.msra.mxu0 %v6573_v50  ;;  %s7007_s21 = scalar_lea.vmem %s7961_s15, 1024  ;;  %p7014_p5 = scmp.lt.s32.totalorder %s7961_s15, %s7012_s27 }
 0x395   : > { %1268 = vmatprep.subr.bf16.mxu0 %v6579_v52  ;;  %p7008_p13 = scmp.ne.s32.totalorder %s7961_s15, %s7007_s21  ;;  %p7015_p0 = scmp.lt.s32.totalorder %s7013_s26, %s7007_s21 }
 0x397   : > { %p7009_p6 = pnand %p7008_p13, %p8080_p1  ;;  %p7016_p10 = por %p7015_p0, %p7014_p5 }
 0x398   : > { %1269 = vmatpush1.bf16.msra.mxu0 %v6577_v53 }
 0x399   : > { %1270 = vmatprep.subr.bf16.mxu0 %v6583_v56  ;;  %v1119_v56 = vlaneseq  ;;  %p7010_p9 = pneg %p7009_p6 }
 0x39b   : > { %v7604_v57 = vshrl.u32 %v1119_v56, 7  ;;  %p7017_p2 = pnand %p7016_p10, %p7010_p9 }
 0x39c   : > { %1271 = vmatpush1.bf16.msra.mxu0 %v6581_v55  ;;  %v7097_v55 = vmov 0.0  }
 0x39d   : > { %1272 = vmatprep.subr.bf16.mxu0 %v6587_v58  ;;  %6344 = vmatprep.subr.mxu1 %v7097_v55  ;;  %v7607_v58 = vsub.s32 1, %v7604_v57  ;;  %v7610_v59 = vsub.s32 2, %v7604_v57 }
 0x3a0   : > { %1273 = vmatpush1.bf16.msra.mxu0 %v6585_v60  ;;  %v1117_v60 = vld [vmem:[#allocation2 + $0x4] sm:$0x7] }
 0x3a1   : > { %1274 = vmatprep.subr.bf16.mxu0 %v6591_v61  ;;  %v7613_v61 = vsub.s32 0, %v7604_v57  ;;  %v1126_v62 = vrot.slane %v1117_v60, %v7607_v58 }
 0x3a3   : > { %v1122_v2 = vrot.slane %v1117_v60, %v7613_v61 }
 0x3a4   : > { %1275 = vmatpush1.bf16.msra.mxu0 %v6589_v0  ;;  %v1130_v0 = vrot.slane %v1117_v60, %v7610_v59 }
 0x3a5   : > { %1276 = vmatprep.subr.bf16.mxu0 %v6595_v1 }
 0x3a8   : > { %1277 = vmatpush1.bf16.msra.mxu0 %v6593_v3 }
 0x3a9   : > { %6354 = vmatprep.subr.mxu0 %v7097_v55 }
 0x45e   : > { %v6322_v9 = vpop.f32.mrb[4].mxu0 }
 0x45f   : > { %v1037_v10 = vadd.f32 %v6322_v9, %v5623_v8  ;;  %v1028_v11 = vpop.f32.mrb[5].mxu0 }
 0x460   : > { %v1029_v12 = vadd.f32 %v5623_v8, %v1028_v11  ;;  %v6323_v13 = vpop.f32.mrb[6].mxu0 }
 0x461   : > { %v5630_v18 = vmul.f32 -1.442695, %v1037_v10  ;;  %v1040_v19 = vadd.f32 %v6323_v13, %v5623_v8  ;;  %v1031_v20 = vpop.f32.mrb[7].mxu0 }
 0x462   : > { %v5628_v21 = vmul.f32 -1.442695, %v1029_v12  ;;  %v1032_v22 = vadd.f32 %v5623_v8, %v1031_v20 }
 0x463   : > { %6767 = vpow2.f32 %v5630_v18  ;;  %v5631_v23 = vmul.f32 -1.442695, %v1040_v19 }
 0x464   : > { %6769 = vpow2.f32 %v5628_v21  ;;  %v5629_v24 = vmul.f32 -1.442695, %v1032_v22 }
 0x465   : > { %6771 = vpow2.f32 %v5631_v23 }
 0x466   : > { %6773 = vpow2.f32 %v5629_v24 }
 0x46d   : > { %v6768_v25 = vpop.eup %6767 }
 0x46e   : > { %v6770_v26 = vpop.eup %6769  ;;  %v1057_v27 = vadd.f32 1.0, %v6768_v25 }
 0x46f   : > { %v6772_v28 = vpop.eup %6771  ;;  %v1055_v29 = vadd.f32 1.0, %v6770_v26 }
 0x470   : > { %v6774_v30 = vpop.eup %6773  ;;  %6775 = vrcp.f32 %v1057_v27  ;;  %v1058_v31 = vadd.f32 1.0, %v6772_v28 }
 0x471   : > { %6777 = vrcp.f32 %v1055_v29  ;;  %v1056_v16 = vadd.f32 1.0, %v6774_v30 }
 0x472   : > { %6779 = vrcp.f32 %v1058_v31 }
 0x473   : > { %6781 = vrcp.f32 %v1056_v16 }
 0x47a   : > { %v6776_v32 = vpop.eup %6775 }
 0x47b   : > { %v6778_v6 = vpop.eup %6777  ;;  %v1073_v14 = vsub.f32 1.0, %v6776_v32  ;;  %v1069_v48 = vmul.f32 %v6838_v47, %v6776_v32 }
 0x47c   : > { %v6780_v15 = vpop.eup %6779  ;;  %v1071_v4 = vsub.f32 1.0, %v6778_v6  ;;  %v1067_v42 = vmul.f32 %v6835_v41, %v6778_v6 }
 0x47d   : > { %v6782_v17 = vpop.eup %6781  ;;  %v1074_v5 = vsub.f32 1.0, %v6780_v15  ;;  %v1070_v36 = vmul.f32 %v6832_v35, %v6780_v15  ;;  %v1077_v38 = vmul.f32 %v6833_v37, %v1073_v14 }
 0x47e   : > { %v1072_v33 = vsub.f32 1.0, %v6782_v17  ;;  %v1075_v34 = vmul.f32 %v6831_v7, %v1071_v4  ;;  %v1068_v44 = vmul.f32 %v6836_v43, %v6782_v17 }
 0x47f   : > { %v1078_v40 = vmul.f32 %v6834_v39, %v1074_v5  ;;  %v7591_v52 = vadd.f32 %v1077_v38, %v1069_v48 }
 0x480   : > { %v1076_v46 = vmul.f32 %v6837_v45, %v1072_v33  ;;  %v7587_v50 = vadd.f32 %v1075_v34, %v1067_v42 }
 0x481   : > { %v7585_v49 = vadd.f32 %v1078_v40, %v1070_v36 }
 0x482   : > { %v7589_v51 = vadd.f32 %v1076_v46, %v1068_v44 }
 0x483   : > { %v1084_v54 = vpack.c.bf16 %v7585_v49, %v7591_v52 }
 0x484   : > { %v1083_v53 = vpack.c.bf16 %v7589_v51, %v7587_v50 }
 0x486   : > { %1295 = vmatmul.mubr.bf16.vlgmr.msra.gmra.mrb[8].mxu0 %v1083_v53  ;;  %6340 = vmatprep.mubr.bf16.mxu1 %v1083_v53 }
 0x487   : > { %6341 = vmatmul.mubr.bf16.vlgmr.msra.gmra.mrb[8].mxu1 %v1084_v54  ;;  %1304 = vmatprep.mubr.bf16.mxu0 %v7096_v63 }
 0x488   : > { %6346 = vmatprep.mubr.msk.f32.mxu1 %vm7098_vm1, %v7097_v55 }
 0x48e   : > { %1305 = vmatmul.mubr.bf16.gmra.mrb[12].mxu0 %v1084_v54 }
 0x48f   : > { %6356 = vmatprep.mubr.msk.f32.mxu0 %vm7098_vm1, %v7097_v55 }
 0x559   : > { %v1296_v1 = vpop.f32.mrb[8].mxu0 }
 0x55a   : > { %v1298_v3 = vpop.f32.mrb[9].mxu0  ;;  %v6342_v8 = vpop.f32.mrb[8].mxu1  ;;  %v1297_v21 = vadd.f32 %v1296_v1, %v1122_v2 }
 0x55b   : > { %v1299_v9 = vadd.f32 %v1298_v3, %v1126_v62  ;;  %v7618_v10 = vadd.f32 %v6342_v8, %v1130_v0  ;;  %v1300_v11 = vpop.f32.mrb[10].mxu0  ;;  %v1349_v12 = vpop.f32.mrb[9].mxu1 }
 0x55c   : > { %v1302_v13 = vpop.f32.mrb[11].mxu0  ;;  %v6343_v18 = vpop.f32.mrb[10].mxu1  ;;  %v1301_v24 = vadd.f32 %v1300_v11, %v1122_v2  ;;  %v1350_v31 = vadd.f32 %v1349_v12, %v1130_v0 }
 0x55d   : > { %v7620_v19 = vadd.f32 %v6343_v18, %v1130_v0  ;;  %v1352_v20 = vpop.f32.mrb[11].mxu1  ;;  %6345 = vmatpush3.xpose.msra.mxu1 %v1299_v9  ;;  %v1303_v22 = vadd.f32 %v1302_v13, %v1126_v62 }
 0x55e   : > { %6349 = vmatprep.subr.mxu1 %v7097_v55  ;;  %v1353_v32 = vadd.f32 %v1352_v20, %v1130_v0  ;;  %v6597_v20 = vld [vmem:[#allocation8] sm:$0xff]  }
 0x560   : > { %6347 = vmatmul.mubr.f32.vlgmr.msra.gmra.mrb[12].mxu1 %v1297_v21 }
 0x561   : > { %v1306_v23 = vpop.f32.mrb[12].mxu0  ;;  %6350 = vmatpush3.xpose.msra.mxu1 %v1303_v22  ;;  %6351 = vmatprep.mubr.msk.f32.mxu1 %vm7098_vm1, %v7097_v55 }
 0x562   : > { %v1308_v25 = vpop.f32.mrb[13].mxu0  ;;  %6359 = vmatprep.subr.mxu1 %v7097_v55  ;;  %v1307_v30 = vadd.f32 %v1306_v23, %v1122_v2 }
 0x563   : > { %v1309_v26 = vadd.f32 %v1308_v25, %v1126_v62  ;;  %v1310_v27 = vpop.f32.mrb[14].mxu0  ;;  %v6598_v25 = vld [vmem:[#allocation8 + $0x8] sm:$0xff]  }
 0x564   : > { %v1312_v28 = vpop.f32.mrb[15].mxu0  ;;  %6352 = vmatmul.mubr.f32.vlgmr.msra.gmra.mrb[14].mxu1 %v1301_v24  ;;  %v1311_v16 = vadd.f32 %v1310_v27, %v1122_v2  ;;  %v6599_v27 = vld [vmem:[#allocation8 + $0x10] sm:$0xff]  }
 0x565   : > { %v1313_v29 = vadd.f32 %v1312_v28, %v1126_v62  ;;  %6355 = vmatpush3.xpose.msra.mxu0 %v1309_v26  ;;  %6361 = vmatprep.mubr.msk.f32.mxu1 %vm7098_vm1, %v7097_v55  ;;  %v6600_v28 = vld [vmem:[#allocation8 + $0x18] sm:$0xff]  }
 0x566   : > { %6364 = vmatprep.subr.mxu0 %v7097_v55 }
 0x567   : > { %6360 = vmatpush3.xpose.msra.mxu1 %v1313_v29  ;;  %v6603_v29 = vld [vmem:[#allocation8 + $0x30] sm:$0xff]  }
 0x568   : > { %6357 = vmatmul.mubr.f32.vlgmr.msra.gmra.mrb[16].mxu0 %v1307_v30  ;;  %6369 = vmatprep.subr.mxu1 %v7097_v55  ;;  %v6604_v30 = vld [vmem:[#allocation8 + $0x38] sm:$0xff]  }
 0x569   : > { %6365 = vmatpush3.msra.mxu0 %v1350_v31  ;;  %6366 = vmatprep.mubr.msk.f32.mxu0 %vm7098_vm1, %v7097_v55 }
 0x56a   : > { %6362 = vmatmul.mubr.f32.vlgmr.msra.gmra.mrb[16].mxu1 %v1311_v16  ;;  %6374 = vmatprep.subr.mxu0 %v7097_v55 }
 0x56b   : > { %6370 = vmatpush3.msra.mxu1 %v1353_v32  ;;  %6371 = vmatprep.mubr.msk.f32.mxu1 %vm7098_vm1, %v7097_v55 }
 0x56c   : > { %6379 = vmatprep.subr.mxu1 %v7097_v55 }
 0x633   : > { %v1430_v6 = vpop.f32.mrb[12].mxu1 }
 0x634   : > { %v6348_v14 = vpop.f32.mrb[13].mxu1  ;;  %v1645_v15 = vsel %vm1644_vm2, %v1430_v6, -inf }
 0x635   : > { %1646 = vmax.xlane.f32.xlu0 %v1645_v15 }
 0x637   : > { %v1500_v4 = vpop.f32.mrb[14].mxu1 }
 0x638   : > { %v6353_v17 = vpop.f32.mrb[15].mxu1  ;;  %v1648_v5 = vsel %vm1644_vm2, %v1500_v4, -inf }
 0x639   : > { %1649 = vmax.xlane.f32.xlu0 %v1648_v5 }
 0x63b   : > { %v1570_v33 = vpop.f32.mrb[16].mxu0 }
 0x63c   : > { %v6358_v7 = vpop.f32.mrb[17].mxu0  ;;  %v1651_v34 = vsel %vm1644_vm2, %v1570_v33, -inf }
 0x63d   : > { %1652 = vmax.xlane.f32.xlu1 %v1651_v34  ;;  %v1640_v35 = vpop.f32.mrb[16].mxu1  ;;  %v5660_v7 = vld [vmem:[#allocation2 + $0x7] ss:$0 sm:$0xff] }
 0x63e   : > { %v6363_v36 = vpop.f32.mrb[17].mxu1  ;;  %v1654_v37 = vsel %vm1644_vm2, %v1640_v35, -inf }
 0x641   : > { %1655 = vmax.xlane.f32.xlu1 %v1654_v37 }
 0x6c2   : > { %v1647_v38 = vpop.xlane.xlu0 %1646 }
 0x6c3   : > { %v1657_v39 = vsub.f32 %v1430_v6, %v1647_v38 }
 0x6c5   : > { %v1661_v40 = vmul.f32 1.442695, %v1657_v39 }
 0x6c6   : > { %v1650_v41 = vpop.xlane.xlu0 %1649 }
 0x6c7   : > { %6783 = vpow2.f32 %v1661_v40  ;;  %v1658_v42 = vsub.f32 %v1500_v4, %v1650_v41 }
 0x6c9   : > { %v1663_v43 = vmul.f32 1.442695, %v1658_v42 }
 0x6ca   : > { %v1653_v44 = vpop.xlane.xlu1 %1652 }
 0x6cb   : > { %6785 = vpow2.f32 %v1663_v43  ;;  %v1659_v45 = vsub.f32 %v1570_v33, %v1653_v44 }
 0x6cd   : > { %v1665_v46 = vmul.f32 1.442695, %v1659_v45 }
 0x6ce   : > { %v1656_v47 = vpop.xlane.xlu1 %1655 }
 0x6cf   : > { %6787 = vpow2.f32 %v1665_v46  ;;  %v1660_v48 = vsub.f32 %v1640_v35, %v1656_v47  ;;  %v2176_v46 = vld [vmem:[#allocation10] sm:$0xff] }
 0x6d0   : > { %v2184_v47 = vld [vmem:[#allocation10 + $0x40] sm:$0xff] }
 0x6d1   : > { %v6784_v53 = vpop.eup %6783  ;;  %v1667_v54 = vmul.f32 1.442695, %v1660_v48  ;;  %v2177_v48 = vld [vmem:[#allocation10 + $0x8] sm:$0xff] }
 0x6d2   : > { %v1669_v56 = vsel %vm1644_vm2, %v6784_v53, 0.0 }
 0x6d3   : > { %6789 = vpow2.f32 %v1667_v54  ;;  %1670 = vadd.xlane.f32.xlu0 %v1669_v56  ;;  %v5672_v54 = vcombine.high %v2176_v46, %v2184_v47  ;;  %v2185_v56 = vld [vmem:[#allocation10 + $0x48] sm:$0xff] }
 0x6d5   : > { %v6786_v60 = vpop.eup %6785 }
 0x6d6   : > { %v1672_v62 = vsel %vm1644_vm2, %v6786_v60, 0.0 }
 0x6d7   : > { %1673 = vadd.xlane.f32.xlu1 %v1672_v62  ;;  %v2200_v62 = vld [vmem:[#allocation10 + $0xc0] sm:$0xff] }
 0x6d9   : > { %v6788_v0 = vpop.eup %6787 }
 0x6da   : > { %v1675_v1 = vsel %vm1644_vm2, %v6788_v0, 0.0 }
 0x6db   : > { %1676 = vadd.xlane.f32.xlu0 %v1675_v1 }
 0x6dd   : > { %v6790_v2 = vpop.eup %6789 }
 0x6de   : > { %v1678_v3 = vsel %vm1644_vm2, %v6790_v2, 0.0 }
 0x6df   : > { %1679 = vadd.xlane.f32.xlu1 %v1678_v3 }
 0x760   : > { %v1671_v8 = vpop.xlane.xlu0 %1670 }
 0x761   : > { %6791 = vrcp.f32 %v1671_v8 }
 0x764   : > { %v1674_v9 = vpop.xlane.xlu1 %1673 }
 0x765   : > { %6793 = vrcp.f32 %v1674_v9 }
 0x768   : > { %v1677_v11 = vpop.xlane.xlu0 %1676 }
 0x769   : > { %6795 = vrcp.f32 %v1677_v11 }
 0x76b   : > { %v6792_v12 = vpop.eup %6791 }
 0x76c   : > { %v1682_v13 = vmul.f32 %v6792_v12, %v6784_v53  ;;  %v1680_v18 = vpop.xlane.xlu1 %1679  ;;  %v5671_v53 = vcombine.low %v2176_v46, %v2184_v47  ;;  %v2265_v47 = vld [vmem:[#allocation10 + $0x2c8] sm:$0xff] }
 0x76d   : > { %6797 = vrcp.f32 %v1680_v18 }
 0x76e   : > { %6367 = vmatmul.mubr.msk.f32.vlgmr.msra.gmra.mrb[18].mxu0 %vm1644_vm2, %v1682_v13 }
 0x76f   : > { %v6794_v21 = vpop.eup %6793  ;;  %6375 = vmatpush3.msra.mxu0 %v7618_v10  ;;  %6376 = vmatprep.mubr.msk.f32.mxu0 %vm7098_vm1, %v7097_v55 }
 0x770   : > { %v1684_v22 = vmul.f32 %v6794_v21, %v6786_v60  ;;  %6384 = vmatprep.subr.bf16.mxu0 %v6597_v20  ;;  %v2192_v60 = vld [vmem:[#allocation10 + $0x80] sm:$0xff] }
 0x771   : > { %v5688_v1 = vcombine.high %v2192_v60, %v2200_v62 }
 0x772   : > { %6372 = vmatmul.mubr.msk.f32.vlgmr.msra.gmra.mrb[18].mxu1 %vm1644_vm2, %v1684_v22 }
 0x773   : > { %v6796_v23 = vpop.eup %6795  ;;  %6380 = vmatpush3.msra.mxu1 %v7620_v19  ;;  %6381 = vmatprep.mubr.msk.f32.mxu1 %vm7098_vm1, %v7097_v55  ;;  %v6601_v19 = vld [vmem:[#allocation8 + $0x20] sm:$0xff]   ;;  %v6602_v55 = vld [vmem:[#allocation8 + $0x28] sm:$0xff]  }
 0x774   : > { %v1686_v24 = vmul.f32 %v6796_v23, %v6788_v0  ;;  %v5674_v0 = vcombine.high %v2177_v48, %v2185_v56  ;;  %3028 = vmatprep.subr.bf16.mxu1 %v5672_v54 }
 0x776   : > { %6377 = vmatmul.mubr.msk.f32.vlgmr.msra.gmra.mrb[20].mxu0 %vm1644_vm2, %v1686_v24 }
 0x777   : > { %v6798_v26 = vpop.eup %6797  ;;  %6385 = vmatpush3.bf16.msra.mxu0 %v6597_v20 }
 0x778   : > { %v1688_v10 = vmul.f32 %v6798_v26, %v6790_v2  ;;  %6386 = vmatprep.subr.bf16.mxu0 %v6598_v25  ;;  %v2193_v2 = vld [vmem:[#allocation10 + $0x88] sm:$0xff] }
 0x77a   : > { %6382 = vmatmul.mubr.msk.f32.vlgmr.msra.gmra.mrb[20].mxu1 %vm1644_vm2, %v1688_v10 }
 0x77b   : > { %6387 = vmatpush3.bf16.msra.mxu0 %v6598_v25  ;;  %3060 = vmatprep.mubr.bf16.mxu1 %v7096_v63 }
 0x77c   : > { %6388 = vmatprep.subr.bf16.mxu0 %v6599_v27  ;;  %3029 = vmatpush1.bf16.msra.mxu1 %v5671_v53 }
 0x77d   : > { %3030 = vmatprep.subr.bf16.mxu1 %v5688_v1 }
 0x77f   : > { %6389 = vmatpush3.bf16.msra.mxu0 %v6599_v27 }
 0x780   : > { %6390 = vmatprep.subr.bf16.mxu0 %v6600_v28 }
 0x783   : > { %6391 = vmatpush3.bf16.msra.mxu0 %v6600_v28 }
 0x784   : > { %6392 = vmatprep.subr.bf16.mxu0 %v6601_v19 }
 0x787   : > { %6393 = vmatpush3.bf16.msra.mxu0 %v6601_v19  ;;  %v2208_v19 = vld [vmem:[#allocation10 + $0x100] sm:$0xff] }
 0x788   : > { %6394 = vmatprep.subr.bf16.mxu0 %v6602_v55 }
 0x78b   : > { %6395 = vmatpush3.bf16.msra.mxu0 %v6602_v55  ;;  %v2216_v55 = vld [vmem:[#allocation10 + $0x140] sm:$0xff] }
 0x78c   : > { %6396 = vmatprep.subr.bf16.mxu0 %v6603_v29 }
 0x78f   : > { %6397 = vmatpush3.bf16.msra.mxu0 %v6603_v29  ;;  %v2209_v29 = vld [vmem:[#allocation10 + $0x108] sm:$0xff] }
 0x790   : > { %6398 = vmatprep.subr.bf16.mxu0 %v6604_v30 }
 0x793   : > { %6399 = vmatpush3.bf16.msra.mxu0 %v6604_v30  ;;  %v5704_v30 = vcombine.high %v2208_v19, %v2216_v55 }
 0x794   : > { %3081 = vmatprep.subr.bf16.mxu0 %v5674_v0  ;;  %v2281_v0 = vld [vmem:[#allocation10 + $0x348] sm:$0xff] }
 0x841   : > { %v1758_v31 = vpop.f32.mrb[18].mxu0 }
 0x842   : > { %v6368_v16 = vpop.f32.mrb[19].mxu0 }
 0x843   : > { %v5703_v16 = vcombine.low %v2208_v19, %v2216_v55 }
 0x845   : > { %v1831_v32 = vpop.f32.mrb[18].mxu1 }
 0x846   : > { %v1981_v6 = vpack.c.bf16 %v1831_v32, %v1758_v31  ;;  %v6373_v14 = vpop.f32.mrb[19].mxu1  ;;  %v2217_v31 = vld [vmem:[#allocation10 + $0x148] sm:$0xff] }
 0x847   : > { %v5705_v32 = vcombine.low %v2209_v29, %v2217_v31  ;;  %v2224_v14 = vld [vmem:[#allocation10 + $0x180] sm:$0xff] }
 0x848   : > { %6400 = vmatprep.mubr.bf16.mxu0 %v1981_v6  ;;  %v5706_v6 = vcombine.high %v2209_v29, %v2217_v31 }
 0x849   : > { %v1904_v15 = vpop.f32.mrb[20].mxu0 }
 0x84a   : > { %v6378_v4 = vpop.f32.mrb[21].mxu0 }
 0x84b   : > { %v2225_v4 = vld [vmem:[#allocation10 + $0x188] sm:$0xff] }
 0x84d   : > { %v1977_v17 = vpop.f32.mrb[20].mxu1 }
 0x84e   : > { %v1982_v5 = vpack.c.bf16 %v1977_v17, %v1904_v15  ;;  %v6383_v33 = vpop.f32.mrb[21].mxu1  ;;  %v2232_v15 = vld [vmem:[#allocation10 + $0x1c0] sm:$0xff] }
 0x84f   : > { %v5720_v17 = vcombine.high %v2224_v14, %v2232_v15  ;;  %v5719_v33 = vcombine.low %v2224_v14, %v2232_v15 }
 0x850   : > { %6401 = vmatmul.mubr.bf16.vlgmr.msra.gmra.mrb[24].mxu0 %v1982_v5  ;;  %v2233_v5 = vld [vmem:[#allocation10 + $0x1c8] sm:$0xff] }
 0x851   : > { %3113 = vmatprep.mubr.bf16.mxu0 %v7096_v63 }
 0x923   : > { %v6402_v34 = vpop.f32.mrb[24].mxu0 }
 0x924   : > { %v2088_v35 = vpop.f32.mrb[25].mxu0  ;;  %v2097_v39 = vadd.f32 %v6402_v34, %v5660_v7  ;;  %v5722_v34 = vcombine.high %v2225_v4, %v2233_v5 }
 0x925   : > { %v2089_v36 = vadd.f32 %v5660_v7, %v2088_v35  ;;  %v6403_v37 = vpop.f32.mrb[26].mxu0  ;;  %v2240_v35 = vld [vmem:[#allocation10 + $0x200] sm:$0xff] }
 0x926   : > { %v2091_v38 = vpop.f32.mrb[27].mxu0  ;;  %v2100_v42 = vadd.f32 %v6403_v37, %v5660_v7  ;;  %v2105_v44 = vadd.f32 %v2097_v39, %v7591_v52  ;;  %v5687_v52 = vcombine.low %v2192_v60, %v2200_v62  ;;  %v2241_v37 = vld [vmem:[#allocation10 + $0x208] sm:$0xff]  ;;  %v2280_v60 = vld [vmem:[#allocation10 + $0x340] sm:$0xff] }
 0x927   : > { %v2092_v40 = vadd.f32 %v5660_v7, %v2091_v38  ;;  %v2103_v41 = vadd.f32 %v2089_v36, %v7587_v50  ;;  %v5673_v50 = vcombine.low %v2177_v48, %v2185_v56  ;;  %v5721_v7 = vcombine.low %v2225_v4, %v2233_v5  ;;  %v2248_v36 = vld [vmem:[#allocation10 + $0x240] sm:$0xff]  ;;  %v2249_v39 = vld [vmem:[#allocation10 + $0x248] sm:$0xff] }
 0x928   : > { %v2106_v45 = vadd.f32 %v2100_v42, %v7585_v49  ;;  %3031 = vmatpush1.bf16.msra.mxu1 %v5687_v52  ;;  %v5736_v38 = vcombine.high %v2240_v35, %v2248_v36  ;;  %v5738_v42 = vcombine.high %v2241_v37, %v2249_v39  ;;  %v2272_v56 = vld [vmem:[#allocation10 + $0x300] sm:$0xff]  ;;  %v2273_v62 = vld [vmem:[#allocation10 + $0x308] sm:$0xff] }
 0x929   : > { %2107 = vadd.xlane.f32.xlu0 %v2103_v41  ;;  %v2104_v43 = vadd.f32 %v2092_v40, %v7589_v51  ;;  %v2201_v51 = vld [vmem:[#allocation10 + $0xc8] sm:$0xff]  ;;  %3082 = vmatpush1.bf16.msra.mxu0 %v5673_v50  ;;  %v5735_v40 = vcombine.low %v2240_v35, %v2248_v36  ;;  %v5768_v50 = vcombine.high %v2272_v56, %v2280_v60  ;;  %v2296_v52 = vld [vmem:[#allocation10 + $0x3c0] sm:$0xff] }
 0x92a   : > { %v5690_v3 = vcombine.high %v2193_v2, %v2201_v51  ;;  %v5689_v49 = vcombine.low %v2193_v2, %v2201_v51  ;;  %3032 = vmatprep.subr.bf16.mxu1 %v5704_v30  ;;  %v5767_v1 = vcombine.low %v2272_v56, %v2280_v60  ;;  %v5769_v2 = vcombine.low %v2273_v62, %v2281_v0  ;;  %v2210_v60 = vld [vmem:[#allocation10 + $0x110] sm:$0xff] }
 0x92b   : > { %2109 = vadd.xlane.f32.xlu1 %v2104_v43  ;;  %v5770_v51 = vcombine.high %v2273_v62, %v2281_v0  ;;  %v2218_v62 = vld [vmem:[#allocation10 + $0x150] sm:$0xff]  ;;  %v2219_v0 = vld [vmem:[#allocation10 + $0x158] sm:$0xff] }
 0x92c   : > { %3083 = vmatprep.subr.bf16.mxu0 %v5690_v3  ;;  %3033 = vmatpush1.bf16.msra.mxu1 %v5703_v16  ;;  %v2288_v3 = vld [vmem:[#allocation10 + $0x380] sm:$0xff] }
 0x92d   : > { %2111 = vadd.xlane.f32.xlu0 %v2105_v44  ;;  %3084 = vmatpush1.bf16.msra.mxu0 %v5689_v49  ;;  %v2289_v49 = vld [vmem:[#allocation10 + $0x388] sm:$0xff] }
 0x92e   : > { %3085 = vmatprep.subr.bf16.mxu0 %v5706_v6  ;;  %3034 = vmatprep.subr.bf16.mxu1 %v5720_v17 }
 0x92f   : > { %2113 = vadd.xlane.f32.xlu1 %v2106_v45 }
 0x930   : > { %3035 = vmatpush1.bf16.msra.mxu1 %v5719_v33 }
 0x931   : > { %3086 = vmatpush1.bf16.msra.mxu0 %v5705_v32  ;;  %3036 = vmatprep.subr.bf16.mxu1 %v5736_v38 }
 0x932   : > { %3087 = vmatprep.subr.bf16.mxu0 %v5722_v34 }
 0x934   : > { %3037 = vmatpush1.bf16.msra.mxu1 %v5735_v40 }
 0x935   : > { %3088 = vmatpush1.bf16.msra.mxu0 %v5721_v7  ;;  %v5669_v7 = vld [vmem:[#allocation2 + $0x8] ss:$0 sm:$0xff] }
 0x936   : > { %3089 = vmatprep.subr.bf16.mxu0 %v5738_v42 }
 0x9b6   : > { %v2108_v8 = vpop.xlane.xlu0 %2107 }
 0x9b7   : > { %v2116_v9 = vmul.f32 0.0078125, %v2108_v8  ;;  %v5784_v8 = vcombine.high %v2288_v3, %v2296_v52 }
 0x9b8   : > { %v2110_v11 = vpop.xlane.xlu1 %2109 }
 0x9b9   : > { %v7660_v12 = vsub.f32 %v2103_v41, %v2116_v9  ;;  %v2117_v13 = vmul.f32 0.0078125, %v2110_v11  ;;  %v5737_v41 = vcombine.low %v2241_v37, %v2249_v39  ;;  %v2297_v9 = vld [vmem:[#allocation10 + $0x3c8] sm:$0xff]  ;;  %v5783_v11 = vcombine.low %v2288_v3, %v2296_v52  ;;  %v5670_v39 = vld [vmem:[#allocation2 + $0x9] ss:$0 sm:$0xff]  ;;  %v2226_v52 = vld [vmem:[#allocation10 + $0x190] sm:$0xff] }
 0x9ba   : > { %v2112_v18 = vpop.xlane.xlu0 %2111 }
 0x9bb   : > { %v7662_v20 = vsub.f32 %v2104_v43, %v2117_v13  ;;  %v2118_v21 = vmul.f32 0.0078125, %v2112_v18  ;;  %v2124_v22 = vmul.f32 %v7660_v12, %v7660_v12  ;;  %v2256_v43 = vld [vmem:[#allocation10 + $0x280] sm:$0xff]  ;;  %3090 = vmatpush1.bf16.msra.mxu0 %v5737_v41  ;;  %v5785_v13 = vcombine.low %v2289_v49, %v2297_v9  ;;  %v2194_v41 = vld [vmem:[#allocation10 + $0x90] sm:$0xff] }
 0x9bc   : > { %v2114_v23 = vpop.xlane.xlu1 %2113  ;;  %v5786_v18 = vcombine.high %v2289_v49, %v2297_v9  ;;  %v2234_v49 = vld [vmem:[#allocation10 + $0x1d0] sm:$0xff]  ;;  %v2235_v9 = vld [vmem:[#allocation10 + $0x1d8] sm:$0xff] }
 0x9bd   : > { %v7666_v24 = vsub.f32 %v2105_v44, %v2118_v21  ;;  %v2119_v25 = vmul.f32 0.0078125, %v2114_v23  ;;  %2128 = vadd.xlane.f32.xlu0 %v2124_v22  ;;  %v2125_v26 = vmul.f32 %v7662_v20, %v7662_v20  ;;  %v2264_v44 = vld [vmem:[#allocation10 + $0x2c0] sm:$0xff]  ;;  %v2178_v21 = vld [vmem:[#allocation10 + $0x10] sm:$0xff]  ;;  %v2179_v23 = vld [vmem:[#allocation10 + $0x18] sm:$0xff] }
 0x9be   : > { %v5752_v46 = vcombine.high %v2256_v43, %v2264_v44  ;;  %v5751_v48 = vcombine.low %v2256_v43, %v2264_v44  ;;  %v2186_v22 = vld [vmem:[#allocation10 + $0x50] sm:$0xff]  ;;  %v2195_v44 = vld [vmem:[#allocation10 + $0x98] sm:$0xff] }
 0x9bf   : > { %v7670_v10 = vsub.f32 %v2106_v45, %v2119_v25  ;;  %2130 = vadd.xlane.f32.xlu1 %v2125_v26  ;;  %v2126_v27 = vmul.f32 %v7666_v24, %v7666_v24  ;;  %v2257_v45 = vld [vmem:[#allocation10 + $0x288] sm:$0xff]  ;;  %v5676_v25 = vcombine.high %v2178_v21, %v2186_v22  ;;  %v2187_v26 = vld [vmem:[#allocation10 + $0x58] sm:$0xff]  ;;  %v2202_v43 = vld [vmem:[#allocation10 + $0xd0] sm:$0xff] }
 0x9c0   : > { %v5753_v53 = vcombine.low %v2257_v45, %v2265_v47  ;;  %v5754_v54 = vcombine.high %v2257_v45, %v2265_v47  ;;  %3038 = vmatprep.subr.bf16.mxu1 %v5752_v46  ;;  %v5678_v19 = vcombine.high %v2179_v23, %v2187_v26  ;;  %v2203_v45 = vld [vmem:[#allocation10 + $0xd8] sm:$0xff] }
 0x9c1   : > { %2132 = vadd.xlane.f32.xlu0 %v2126_v27  ;;  %v2127_v28 = vmul.f32 %v7670_v10, %v7670_v10  ;;  %3039 = vmatpush1.bf16.msra.mxu1 %v5751_v48  ;;  %v5675_v27 = vcombine.low %v2178_v21, %v2186_v22  ;;  %v5694_v56 = vcombine.high %v2195_v44, %v2203_v45 }
 0x9c2   : > { %3091 = vmatprep.subr.bf16.mxu0 %v5754_v54  ;;  %3040 = vmatprep.subr.bf16.mxu1 %v5768_v50  ;;  %v5692_v54 = vcombine.high %v2194_v41, %v2202_v43  ;;  %v2211_v50 = vld [vmem:[#allocation10 + $0x118] sm:$0xff]  ;;  %v5724_v22 = vcombine.high %v2226_v52, %v2234_v49 }
 0x9c3   : > { %2134 = vadd.xlane.f32.xlu1 %v2127_v28  ;;  %3092 = vmatpush1.bf16.msra.mxu0 %v5753_v53  ;;  %v5677_v28 = vcombine.low %v2179_v23, %v2187_v26  ;;  %v5710_v3 = vcombine.high %v2211_v50, %v2219_v0  ;;  %v2250_v26 = vld [vmem:[#allocation10 + $0x250] sm:$0xff] }
 0x9c4   : > { %3093 = vmatprep.subr.bf16.mxu0 %v5770_v51  ;;  %v5708_v51 = vcombine.high %v2210_v60, %v2218_v62 }
 0x9c5   : > { %3041 = vmatpush1.bf16.msra.mxu1 %v5767_v1 }
 0x9c6   : > { %3042 = vmatprep.subr.bf16.mxu1 %v5784_v8  ;;  %v2227_v8 = vld [vmem:[#allocation10 + $0x198] sm:$0xff] }
 0x9c7   : > { %3094 = vmatpush1.bf16.msra.mxu0 %v5769_v2  ;;  %v5726_v23 = vcombine.high %v2227_v8, %v2235_v9 }
 0x9c8   : > { %3095 = vmatprep.subr.bf16.mxu0 %v5786_v18  ;;  %v5709_v18 = vcombine.low %v2211_v50, %v2219_v0 }
 0x9c9   : > { %3043 = vmatpush1.bf16.msra.mxu1 %v5783_v11 }
 0x9ca   : > { %3134 = vmatprep.subr.bf16.mxu1 %v5676_v25  ;;  %v2242_v25 = vld [vmem:[#allocation10 + $0x210] sm:$0xff] }
 0x9cb   : > { %3096 = vmatpush1.bf16.msra.mxu0 %v5785_v13  ;;  %v5707_v13 = vcombine.low %v2210_v60, %v2218_v62 }
 0x9cc   : > { %3187 = vmatprep.subr.bf16.mxu0 %v5678_v19  ;;  %v5723_v19 = vcombine.low %v2226_v52, %v2234_v49 }
 0xa4a   : > { %v2129_v55 = vpop.xlane.xlu0 %2128 }
 0xa4b   : > { %v2136_v29 = vmul.f32 0.0078125, %v2129_v55  ;;  %v5725_v55 = vcombine.low %v2227_v8, %v2235_v9  ;;  %v2212_v9 = vld [vmem:[#allocation10 + $0x120] sm:$0xff] }
 0xa4c   : > { %v2131_v30 = vpop.xlane.xlu1 %2130 }
 0xa4d   : > { %v2140_v31 = vadd.f32 1e-05, %v2136_v29  ;;  %v2137_v16 = vmul.f32 0.0078125, %v2131_v30  ;;  %v5740_v29 = vcombine.high %v2242_v25, %v2250_v26 }
 0xa4e   : > { %v2133_v32 = vpop.xlane.xlu0 %2132 }
 0xa4f   : > { %6799 = vrsqrt.f32 %v2140_v31  ;;  %v2141_v6 = vadd.f32 1e-05, %v2137_v16  ;;  %v2138_v14 = vmul.f32 0.0078125, %v2133_v32  ;;  %v2258_v31 = vld [vmem:[#allocation10 + $0x290] sm:$0xff]  ;;  %v2259_v32 = vld [vmem:[#allocation10 + $0x298] sm:$0xff] }
 0xa50   : > { %v2135_v15 = vpop.xlane.xlu1 %2134  ;;  %v2266_v16 = vld [vmem:[#allocation10 + $0x2d0] sm:$0xff] }
 0xa51   : > { %6801 = vrsqrt.f32 %v2141_v6  ;;  %v2142_v4 = vadd.f32 1e-05, %v2138_v14  ;;  %v2139_v17 = vmul.f32 0.0078125, %v2135_v15  ;;  %v2267_v6 = vld [vmem:[#allocation10 + $0x2d8] sm:$0xff]  ;;  %v5739_v14 = vcombine.low %v2242_v25, %v2250_v26 }
 0xa53   : > { %6803 = vrsqrt.f32 %v2142_v4  ;;  %v2143_v5 = vadd.f32 1e-05, %v2139_v17  ;;  %v5756_v4 = vcombine.high %v2258_v31, %v2266_v16  ;;  %v5758_v17 = vcombine.high %v2259_v32, %v2267_v6 }
 0xa55   : > { %6805 = vrsqrt.f32 %v2143_v5  ;;  %v2274_v5 = vld [vmem:[#allocation10 + $0x310] sm:$0xff] }
 0xa59   : > { %v6800_v33 = vpop.eup %6799 }
 0xa5a   : > { %v2148_v34 = vmul.f32 %v6800_v33, %v7660_v12  ;;  %v2282_v33 = vld [vmem:[#allocation10 + $0x350] sm:$0xff] }
 0xa5b   : > { %v6802_v35 = vpop.eup %6801 }
 0xa5c   : > { %v2159_v36 = vmul.f32 %v5669_v7, %v2148_v34  ;;  %v2149_v37 = vmul.f32 %v6802_v35, %v7662_v20  ;;  %v2283_v34 = vld [vmem:[#allocation10 + $0x358] sm:$0xff]  ;;  %v5755_v35 = vcombine.low %v2258_v31, %v2266_v16 }
 0xa5d   : > { %v6804_v38 = vpop.eup %6803 }
 0xa5e   : > { %v2160_v40 = vmul.f32 %v5669_v7, %v2149_v37  ;;  %v7678_v46 = vadd.f32 %v5670_v39, %v2159_v36  ;;  %v2150_v48 = vmul.f32 %v6804_v38, %v7666_v24  ;;  %v5691_v24 = vcombine.low %v2194_v41, %v2202_v43  ;;  %v2291_v41 = vld [vmem:[#allocation10 + $0x398] sm:$0xff] }
 0xa5f   : > { %v6806_v42 = vpop.eup %6805  ;;  %v5757_v36 = vcombine.low %v2259_v32, %v2267_v6  ;;  %v5772_v37 = vcombine.high %v2274_v5, %v2282_v33  ;;  %v5771_v43 = vcombine.low %v2274_v5, %v2282_v33  ;;  %v2244_v6 = vld [vmem:[#allocation10 + $0x220] sm:$0xff] }
 0xa60   : > { %v7680_v47 = vadd.f32 %v5670_v39, %v2160_v40  ;;  %v2151_v12 = vmul.f32 %v6806_v42, %v7670_v10  ;;  %v2161_v1 = vmul.f32 %v5669_v7, %v2150_v48  ;;  %v5693_v10 = vcombine.low %v2195_v44, %v2203_v45  ;;  %v2298_v40 = vld [vmem:[#allocation10 + $0x3d0] sm:$0xff]  ;;  %v2299_v42 = vld [vmem:[#allocation10 + $0x3d8] sm:$0xff] }
 0xa61   : > { %v5790_v48 = vcombine.high %v2291_v41, %v2299_v42  ;;  %v5789_v62 = vcombine.low %v2291_v41, %v2299_v42  ;;  %v2276_v42 = vld [vmem:[#allocation10 + $0x320] sm:$0xff] }
 0xa62   : > { %v7686_v53 = vpack.c.bf16 %v7680_v47, %v7678_v46  ;;  %v2162_v20 = vmul.f32 %v5669_v7, %v2151_v12  ;;  %v7694_v11 = vadd.f32 %v5670_v39, %v2161_v1  ;;  %v2275_v7 = vld [vmem:[#allocation10 + $0x318] sm:$0xff]  ;;  %v2180_v12 = vld [vmem:[#allocation10 + $0x20] sm:$0xff] }
 0xa63   : > { %v5774_v38 = vcombine.high %v2275_v7, %v2283_v34  ;;  %v5773_v44 = vcombine.low %v2275_v7, %v2283_v34  ;;  %v2196_v1 = vld [vmem:[#allocation10 + $0xa0] sm:$0xff] }
 0xa64   : > { %3061 = vmatmul.mubr.bf16.vlgmr.msra.gmra.mrb[24].mxu1 %v7686_v53  ;;  %3114 = vmatmul.mubr.bf16.vlgmr.msra.gmra.mrb[28].mxu0 %v7686_v53  ;;  %v7690_v2 = vadd.f32 %v5670_v39, %v2162_v20  ;;  %v2290_v39 = vld [vmem:[#allocation10 + $0x390] sm:$0xff]  ;;  %v2188_v20 = vld [vmem:[#allocation10 + $0x60] sm:$0xff] }
 0xa65   : > { %3135 = vmatpush1.bf16.msra.mxu1 %v5675_v27  ;;  %3188 = vmatpush1.bf16.msra.mxu0 %v5677_v28  ;;  %v2243_v27 = vld [vmem:[#allocation10 + $0x218] sm:$0xff]  ;;  %v5788_v45 = vcombine.high %v2290_v39, %v2298_v40  ;;  %v5787_v60 = vcombine.low %v2290_v39, %v2298_v40  ;;  %v5680_v50 = vcombine.high %v2180_v12, %v2188_v20  ;;  %v2260_v34 = vld [vmem:[#allocation10 + $0x2a0] sm:$0xff] }
 0xa66   : > { %3136 = vmatprep.subr.bf16.mxu1 %v5692_v54  ;;  %3189 = vmatprep.subr.bf16.mxu0 %v5694_v56  ;;  %v7698_v21 = vpack.c.bf16 %v7690_v2, %v7694_v11  ;;  %v2251_v28 = vld [vmem:[#allocation10 + $0x258] sm:$0xff]  ;;  %v2181_v54 = vld [vmem:[#allocation10 + $0x28] sm:$0xff] }
 0xa67   : > { %3070 = vmatprep.mubr.bf16.mxu1 %v7096_v63  ;;  %3123 = vmatprep.mubr.bf16.mxu0 %v7096_v63  ;;  %v5742_v30 = vcombine.high %v2243_v27, %v2251_v28  ;;  %v5741_v15 = vcombine.low %v2243_v27, %v2251_v28  ;;  %v2189_v56 = vld [vmem:[#allocation10 + $0x68] sm:$0xff]  ;;  %v2228_v28 = vld [vmem:[#allocation10 + $0x1a0] sm:$0xff] }
 0xa68   : > { %v5682_v0 = vcombine.high %v2181_v54, %v2189_v56  ;;  %v5681_v52 = vcombine.low %v2181_v54, %v2189_v56  ;;  %v2292_v56 = vld [vmem:[#allocation10 + $0x3a0] sm:$0xff] }
 0xa69   : > { %3137 = vmatpush1.bf16.msra.mxu1 %v5691_v24  ;;  %3190 = vmatpush1.bf16.msra.mxu0 %v5693_v10  ;;  %v2204_v24 = vld [vmem:[#allocation10 + $0xe0] sm:$0xff]  ;;  %v2197_v10 = vld [vmem:[#allocation10 + $0xa8] sm:$0xff] }
 0xa6a   : > { %3138 = vmatprep.subr.bf16.mxu1 %v5708_v51  ;;  %3191 = vmatprep.subr.bf16.mxu0 %v5710_v3  ;;  %v2205_v51 = vld [vmem:[#allocation10 + $0xe8] sm:$0xff]  ;;  %v5679_v3 = vcombine.low %v2180_v12, %v2188_v20  ;;  %v5696_v49 = vcombine.high %v2196_v1, %v2204_v24 }
 0xa6b   : > { %v5698_v8 = vcombine.high %v2197_v10, %v2205_v51  ;;  %v5697_v25 = vcombine.low %v2197_v10, %v2205_v51  ;;  %v2182_v51 = vld [vmem:[#allocation10 + $0x30] sm:$0xff] }
 0xa6c   : > { %3071 = vmatmul.mubr.bf16.gmra.mrb[28].mxu1 %v7698_v21  ;;  %3124 = vmatmul.mubr.bf16.gmra.mrb[32].mxu0 %v7698_v21 }
 0xa6d   : > { %3139 = vmatpush1.bf16.msra.mxu1 %v5707_v13  ;;  %3192 = vmatpush1.bf16.msra.mxu0 %v5709_v18  ;;  %v2220_v13 = vld [vmem:[#allocation10 + $0x160] sm:$0xff]  ;;  %v2213_v18 = vld [vmem:[#allocation10 + $0x128] sm:$0xff] }
 0xa6e   : > { %3140 = vmatprep.subr.bf16.mxu1 %v5724_v22  ;;  %3193 = vmatprep.subr.bf16.mxu0 %v5726_v23  ;;  %v2221_v22 = vld [vmem:[#allocation10 + $0x168] sm:$0xff]  ;;  %v5695_v23 = vcombine.low %v2196_v1, %v2204_v24  ;;  %v5712_v26 = vcombine.high %v2212_v9, %v2220_v13 }
 0xa6f   : > { %3166 = vmatprep.mubr.bf16.mxu1 %v7096_v63  ;;  %3219 = vmatprep.mubr.bf16.mxu0 %v7096_v63  ;;  %v5714_v27 = vcombine.high %v2213_v18, %v2221_v22  ;;  %v5713_v31 = vcombine.low %v2213_v18, %v2221_v22  ;;  %v2198_v22 = vld [vmem:[#allocation10 + $0xb0] sm:$0xff] }
 0xa71   : > { %3141 = vmatpush1.bf16.msra.mxu1 %v5723_v19  ;;  %3194 = vmatpush1.bf16.msra.mxu0 %v5725_v55  ;;  %v2236_v19 = vld [vmem:[#allocation10 + $0x1e0] sm:$0xff]  ;;  %v2229_v55 = vld [vmem:[#allocation10 + $0x1a8] sm:$0xff] }
 0xa72   : > { %3142 = vmatprep.subr.bf16.mxu1 %v5740_v29  ;;  %3195 = vmatprep.subr.bf16.mxu0 %v5742_v30  ;;  %v2237_v29 = vld [vmem:[#allocation10 + $0x1e8] sm:$0xff]  ;;  %v5711_v30 = vcombine.low %v2212_v9, %v2220_v13  ;;  %v5728_v16 = vcombine.high %v2228_v28, %v2236_v19 }
 0xa73   : > { %v5730_v32 = vcombine.high %v2229_v55, %v2237_v29  ;;  %v5729_v5 = vcombine.low %v2229_v55, %v2237_v29  ;;  %v2214_v29 = vld [vmem:[#allocation10 + $0x130] sm:$0xff] }
 0xa75   : > { %3143 = vmatpush1.bf16.msra.mxu1 %v5739_v14  ;;  %3196 = vmatpush1.bf16.msra.mxu0 %v5741_v15  ;;  %v2252_v14 = vld [vmem:[#allocation10 + $0x260] sm:$0xff]  ;;  %v2245_v15 = vld [vmem:[#allocation10 + $0x228] sm:$0xff] }
 0xa76   : > { %3144 = vmatprep.subr.bf16.mxu1 %v5756_v4  ;;  %3197 = vmatprep.subr.bf16.mxu0 %v5758_v17  ;;  %v2253_v4 = vld [vmem:[#allocation10 + $0x268] sm:$0xff]  ;;  %v5727_v17 = vcombine.low %v2228_v28, %v2236_v19  ;;  %v5744_v33 = vcombine.high %v2244_v6, %v2252_v14 }
 0xa77   : > { %v5746_v7 = vcombine.high %v2245_v15, %v2253_v4  ;;  %v5745_v39 = vcombine.low %v2245_v15, %v2253_v4  ;;  %v2230_v4 = vld [vmem:[#allocation10 + $0x1b0] sm:$0xff] }
 0xa79   : > { %3145 = vmatpush1.bf16.msra.mxu1 %v5755_v35  ;;  %3198 = vmatpush1.bf16.msra.mxu0 %v5757_v36  ;;  %v2268_v35 = vld [vmem:[#allocation10 + $0x2e0] sm:$0xff]  ;;  %v2261_v36 = vld [vmem:[#allocation10 + $0x2a8] sm:$0xff] }
 0xa7a   : > { %3146 = vmatprep.subr.bf16.mxu1 %v5772_v37  ;;  %3199 = vmatprep.subr.bf16.mxu0 %v5774_v38  ;;  %v2269_v37 = vld [vmem:[#allocation10 + $0x2e8] sm:$0xff]  ;;  %v5743_v38 = vcombine.low %v2244_v6, %v2252_v14  ;;  %v5760_v40 = vcombine.high %v2260_v34, %v2268_v35 }
 0xa7b   : > { %v5762_v41 = vcombine.high %v2261_v36, %v2269_v37  ;;  %v5761_v12 = vcombine.low %v2261_v36, %v2269_v37  ;;  %v2246_v37 = vld [vmem:[#allocation10 + $0x230] sm:$0xff] }
 0xa7d   : > { %3147 = vmatpush1.bf16.msra.mxu1 %v5771_v43  ;;  %3200 = vmatpush1.bf16.msra.mxu0 %v5773_v44  ;;  %v2284_v43 = vld [vmem:[#allocation10 + $0x360] sm:$0xff]  ;;  %v2277_v44 = vld [vmem:[#allocation10 + $0x328] sm:$0xff] }
 0xa7e   : > { %3148 = vmatprep.subr.bf16.mxu1 %v5788_v45  ;;  %3201 = vmatprep.subr.bf16.mxu0 %v5790_v48  ;;  %v2285_v45 = vld [vmem:[#allocation10 + $0x368] sm:$0xff]  ;;  %v5759_v48 = vcombine.low %v2260_v34, %v2268_v35  ;;  %v5776_v20 = vcombine.high %v2276_v42, %v2284_v43 }
 0xa7f   : > { %v5778_v54 = vcombine.high %v2277_v44, %v2285_v45  ;;  %v5777_v1 = vcombine.low %v2277_v44, %v2285_v45  ;;  %v2262_v45 = vld [vmem:[#allocation10 + $0x2b0] sm:$0xff] }
 0xa81   : > { %3149 = vmatpush1.bf16.msra.mxu1 %v5787_v60  ;;  %3202 = vmatpush1.bf16.msra.mxu0 %v5789_v62  ;;  %v2300_v60 = vld [vmem:[#allocation10 + $0x3e0] sm:$0xff]  ;;  %v2293_v62 = vld [vmem:[#allocation10 + $0x3a8] sm:$0xff] }
 0xa82   : > { %3240 = vmatprep.subr.bf16.mxu1 %v5680_v50  ;;  %3293 = vmatprep.subr.bf16.mxu0 %v5682_v0  ;;  %v2301_v50 = vld [vmem:[#allocation10 + $0x3e8] sm:$0xff]  ;;  %v5775_v0 = vcombine.low %v2276_v42, %v2284_v43  ;;  %v5792_v24 = vcombine.high %v2292_v56, %v2300_v60 }
 0xa83   : > { %v5794_v10 = vcombine.high %v2293_v62, %v2301_v50  ;;  %v5793_v9 = vcombine.low %v2293_v62, %v2301_v50  ;;  %v2278_v50 = vld [vmem:[#allocation10 + $0x330] sm:$0xff] }
 0xa84   : > { %3167 = vmatmul.mubr.bf16.vlgmr.msra.gmra.mrb[32].mxu1 %v7686_v53  ;;  %3220 = vmatmul.mubr.bf16.vlgmr.msra.gmra.mrb[36].mxu0 %v7686_v53 }
 0xa85   : > { %3241 = vmatpush1.bf16.msra.mxu1 %v5679_v3  ;;  %3294 = vmatpush1.bf16.msra.mxu0 %v5681_v52  ;;  %v2190_v3 = vld [vmem:[#allocation10 + $0x70] sm:$0xff]  ;;  %v2183_v52 = vld [vmem:[#allocation10 + $0x38] sm:$0xff] }
 0xa86   : > { %3242 = vmatprep.subr.bf16.mxu1 %v5696_v49  ;;  %3295 = vmatprep.subr.bf16.mxu0 %v5698_v8  ;;  %v2191_v49 = vld [vmem:[#allocation10 + $0x78] sm:$0xff]  ;;  %v5791_v8 = vcombine.low %v2292_v56, %v2300_v60  ;;  %v5684_v13 = vcombine.high %v2182_v51, %v2190_v3 }
 0xa87   : > { %3176 = vmatprep.mubr.bf16.mxu1 %v7096_v63  ;;  %3229 = vmatprep.mubr.bf16.mxu0 %v7096_v63  ;;  %v5686_v18 = vcombine.high %v2183_v52, %v2191_v49  ;;  %v5685_v28 = vcombine.low %v2183_v52, %v2191_v49  ;;  %v2294_v49 = vld [vmem:[#allocation10 + $0x3b0] sm:$0xff] }
 0xa89   : > { %3243 = vmatpush1.bf16.msra.mxu1 %v5695_v23  ;;  %3296 = vmatpush1.bf16.msra.mxu0 %v5697_v25  ;;  %v2206_v23 = vld [vmem:[#allocation10 + $0xf0] sm:$0xff]  ;;  %v2199_v25 = vld [vmem:[#allocation10 + $0xb8] sm:$0xff] }
 0xa8a   : > { %3244 = vmatprep.subr.bf16.mxu1 %v5712_v26  ;;  %3297 = vmatprep.subr.bf16.mxu0 %v5714_v27  ;;  %v2207_v26 = vld [vmem:[#allocation10 + $0xf8] sm:$0xff]  ;;  %v5683_v27 = vcombine.low %v2182_v51, %v2190_v3  ;;  %v5700_v19 = vcombine.high %v2198_v22, %v2206_v23 }
 0xa8b   : > { %v5702_v55 = vcombine.high %v2199_v25, %v2207_v26  ;;  %v5701_v6 = vcombine.low %v2199_v25, %v2207_v26 }
 0xa8c   : > { %3177 = vmatmul.mubr.bf16.gmra.mrb[36].mxu1 %v7698_v21  ;;  %3230 = vmatmul.mubr.bf16.gmra.mrb[40].mxu0 %v7698_v21 }
 0xa8d   : > { %3245 = vmatpush1.bf16.msra.mxu1 %v5711_v30  ;;  %3298 = vmatpush1.bf16.msra.mxu0 %v5713_v31  ;;  %v2222_v30 = vld [vmem:[#allocation10 + $0x170] sm:$0xff]  ;;  %v2215_v31 = vld [vmem:[#allocation10 + $0x138] sm:$0xff] }
 0xa8e   : > { %3246 = vmatprep.subr.bf16.mxu1 %v5728_v16  ;;  %3299 = vmatprep.subr.bf16.mxu0 %v5730_v32  ;;  %v2223_v16 = vld [vmem:[#allocation10 + $0x178] sm:$0xff]  ;;  %v5699_v32 = vcombine.low %v2198_v22, %v2206_v23  ;;  %v5716_v14 = vcombine.high %v2214_v29, %v2222_v30 }
 0xa8f   : > { %3272 = vmatprep.mubr.bf16.mxu1 %v7096_v63  ;;  %3325 = vmatprep.mubr.bf16.mxu0 %v7096_v63  ;;  %v5718_v15 = vcombine.high %v2215_v31, %v2223_v16  ;;  %v5717_v34 = vcombine.low %v2215_v31, %v2223_v16  ;;  %v6610_v31 = vld [vmem:[#allocation11 + $0xc8] sm:$0xff]  }
 0xa90   : > { %v6611_v16 = vld [vmem:[#allocation11 + $0x8] sm:$0xff]  }
 0xa91   : > { %3247 = vmatpush1.bf16.msra.mxu1 %v5727_v17  ;;  %3300 = vmatpush1.bf16.msra.mxu0 %v5729_v5  ;;  %v2238_v17 = vld [vmem:[#allocation10 + $0x1f0] sm:$0xff]  ;;  %v2231_v5 = vld [vmem:[#allocation10 + $0x1b8] sm:$0xff] }
 0xa92   : > { %3248 = vmatprep.subr.bf16.mxu1 %v5744_v33  ;;  %3301 = vmatprep.subr.bf16.mxu0 %v5746_v7  ;;  %v2239_v33 = vld [vmem:[#allocation10 + $0x1f8] sm:$0xff]  ;;  %v5715_v7 = vcombine.low %v2214_v29, %v2222_v30  ;;  %v5732_v35 = vcombine.high %v2230_v4, %v2238_v17  ;;  %v6608_v29 = vld [vmem:[#allocation11 + $0x80] sm:$0xff]   ;;  %v6609_v30 = vld [vmem:[#allocation11 + $0x48] sm:$0xff]  }
 0xa93   : > { %v5734_v36 = vcombine.high %v2231_v5, %v2239_v33  ;;  %v5733_v42 = vcombine.low %v2231_v5, %v2239_v33  ;;  %v6619_v5 = vld [vmem:[#allocation11 + $0x18] sm:$0xff]  }
 0xa94   : > { %v6620_v33 = vld [vmem:[#allocation11 + $0x98] sm:$0xff]  }
 0xa95   : > { %3249 = vmatpush1.bf16.msra.mxu1 %v5743_v38  ;;  %3302 = vmatpush1.bf16.msra.mxu0 %v5745_v39  ;;  %v2254_v38 = vld [vmem:[#allocation10 + $0x270] sm:$0xff]  ;;  %v2247_v39 = vld [vmem:[#allocation10 + $0x238] sm:$0xff] }
 0xa96   : > { %3250 = vmatprep.subr.bf16.mxu1 %v5760_v40  ;;  %3303 = vmatprep.subr.bf16.mxu0 %v5762_v41  ;;  %v2255_v40 = vld [vmem:[#allocation10 + $0x278] sm:$0xff]  ;;  %v5731_v41 = vcombine.low %v2230_v4, %v2238_v17  ;;  %v5748_v43 = vcombine.high %v2246_v37, %v2254_v38  ;;  %v6616_v4 = vld [vmem:[#allocation11 + $0x90] sm:$0xff]  }
 0xa97   : > { %v5750_v44 = vcombine.high %v2247_v39, %v2255_v40  ;;  %v5749_v56 = vcombine.low %v2247_v39, %v2255_v40  ;;  %v6617_v17 = vld [vmem:[#allocation11 + $0x58] sm:$0xff]   ;;  %v6627_v39 = vld [vmem:[#allocation11 + $0x28] sm:$0xff]   ;;  %v6629_v40 = vld [vmem:[#allocation11 + $0x70] sm:$0xff]  }
 0xa99   : > { %3251 = vmatpush1.bf16.msra.mxu1 %v5759_v48  ;;  %3304 = vmatpush1.bf16.msra.mxu0 %v5761_v12  ;;  %v2270_v48 = vld [vmem:[#allocation10 + $0x2f0] sm:$0xff]  ;;  %v2263_v12 = vld [vmem:[#allocation10 + $0x2b8] sm:$0xff] }
 0xa9a   : > { %3252 = vmatprep.subr.bf16.mxu1 %v5776_v20  ;;  %3305 = vmatprep.subr.bf16.mxu0 %v5778_v54  ;;  %v2271_v20 = vld [vmem:[#allocation10 + $0x2f8] sm:$0xff]  ;;  %v5747_v54 = vcombine.low %v2246_v37, %v2254_v38  ;;  %v5764_v60 = vcombine.high %v2262_v45, %v2270_v48  ;;  %v6625_v37 = vld [vmem:[#allocation11 + $0x68] sm:$0xff]  }
 0xa9b   : > { %v5766_v62 = vcombine.high %v2263_v12, %v2271_v20  ;;  %v5765_v51 = vcombine.low %v2263_v12, %v2271_v20  ;;  %v6626_v38 = vld [vmem:[#allocation11 + $0xe8] sm:$0xff]   ;;  %v6636_v12 = vld [vmem:[#allocation11 + $0xb8] sm:$0xff]   ;;  %v6637_v20 = vld [vmem:[#allocation11 + $0x140] sm:$0xff]  }
 0xa9d   : > { %3253 = vmatpush1.bf16.msra.mxu1 %v5775_v0  ;;  %3306 = vmatpush1.bf16.msra.mxu0 %v5777_v1  ;;  %v2286_v0 = vld [vmem:[#allocation10 + $0x370] sm:$0xff]  ;;  %v2279_v1 = vld [vmem:[#allocation10 + $0x338] sm:$0xff] }
 0xa9e   : > { %3254 = vmatprep.subr.bf16.mxu1 %v5792_v24  ;;  %3307 = vmatprep.subr.bf16.mxu0 %v5794_v10  ;;  %v2287_v24 = vld [vmem:[#allocation10 + $0x378] sm:$0xff]  ;;  %v5763_v10 = vcombine.low %v2262_v45, %v2270_v48  ;;  %v5780_v3 = vcombine.high %v2278_v50, %v2286_v0 }
 0xa9f   : > { %v5782_v52 = vcombine.high %v2279_v1, %v2287_v24  ;;  %v5781_v22 = vcombine.low %v2279_v1, %v2287_v24  ;;  %v6634_v45 = vld [vmem:[#allocation11 + $0xf8] sm:$0xff]  }
 0xaa0   : > { %v6635_v48 = vld [vmem:[#allocation11 + $0x38] sm:$0xff]  }
 0xaa1   : > { %3255 = vmatpush1.bf16.msra.mxu1 %v5791_v8  ;;  %3308 = vmatpush1.bf16.msra.mxu0 %v5793_v9  ;;  %v2302_v8 = vld [vmem:[#allocation10 + $0x3f0] sm:$0xff]  ;;  %v2295_v9 = vld [vmem:[#allocation10 + $0x3b8] sm:$0xff] }
 0xaa2   : > { %3346 = vmatprep.subr.bf16.mxu1 %v5684_v13  ;;  %3399 = vmatprep.subr.bf16.mxu0 %v5686_v18  ;;  %v2303_v13 = vld [vmem:[#allocation10 + $0x3f8] sm:$0xff]  ;;  %v5779_v18 = vcombine.low %v2278_v50, %v2286_v0  ;;  %v5796_v23 = vcombine.high %v2294_v49, %v2302_v8  ;;  %v5795_v26 = vcombine.low %v2294_v49, %v2302_v8 }
 0xaa3   : > { %v5798_v25 = vcombine.high %v2295_v9, %v2303_v13 }
 0xaa4   : > { %3273 = vmatmul.mubr.bf16.vlgmr.msra.gmra.mrb[40].mxu1 %v7686_v53  ;;  %3326 = vmatmul.mubr.bf16.vlgmr.msra.gmra.mrb[44].mxu0 %v7686_v53 }
 0xaa5   : > { %3347 = vmatpush1.bf16.msra.mxu1 %v5683_v27  ;;  %3400 = vmatpush1.bf16.msra.mxu0 %v5685_v28  ;;  %v5797_v27 = vcombine.low %v2295_v9, %v2303_v13  ;;  %v6605_v28 = vld [vmem:[#allocation11 + $0x40] sm:$0xff]  }
 0xaa6   : > { %3348 = vmatprep.subr.bf16.mxu1 %v5700_v19  ;;  %3401 = vmatprep.subr.bf16.mxu0 %v5702_v55  ;;  %v6606_v19 = vld [vmem:[#allocation11 + $0xc0] sm:$0xff]  }
 0xaa7   : > { %3282 = vmatprep.mubr.bf16.mxu1 %v7096_v63  ;;  %3335 = vmatprep.mubr.bf16.mxu0 %v7096_v63  ;;  %v6607_v55 = vld [vmem:[#allocation11] sm:$0xff]  }
 0xaa9   : > { %3349 = vmatpush1.bf16.msra.mxu1 %v5699_v32  ;;  %3402 = vmatpush1.bf16.msra.mxu0 %v5701_v6  ;;  %v6612_v32 = vld [vmem:[#allocation11 + $0x88] sm:$0xff]   ;;  %v6613_v6 = vld [vmem:[#allocation11 + $0x50] sm:$0xff]  }
 0xaaa   : > { %3350 = vmatprep.subr.bf16.mxu1 %v5716_v14  ;;  %3403 = vmatprep.subr.bf16.mxu0 %v5718_v15  ;;  %v6614_v14 = vld [vmem:[#allocation11 + $0xd0] sm:$0xff]  }
 0xaab   : > { %v6615_v15 = vld [vmem:[#allocation11 + $0x10] sm:$0xff]  }
 0xaac   : > { %3283 = vmatmul.mubr.bf16.gmra.mrb[44].mxu1 %v7698_v21  ;;  %3336 = vmatmul.mubr.bf16.gmra.mrb[48].mxu0 %v7698_v21 }
 0xaad   : > { %3351 = vmatpush1.bf16.msra.mxu1 %v5715_v7  ;;  %3404 = vmatpush1.bf16.msra.mxu0 %v5717_v34  ;;  %v6621_v7 = vld [vmem:[#allocation11 + $0x60] sm:$0xff]  }
 0xaae   : > { %3352 = vmatprep.subr.bf16.mxu1 %v5732_v35  ;;  %3405 = vmatprep.subr.bf16.mxu0 %v5734_v36  ;;  %v6622_v34 = vld [vmem:[#allocation11 + $0xe0] sm:$0xff]  }
 0xaaf   : > { %3378 = vmatprep.mubr.bf16.mxu1 %v7096_v63  ;;  %3431 = vmatprep.mubr.bf16.mxu0 %v7096_v63  ;;  %v6623_v35 = vld [vmem:[#allocation11 + $0x20] sm:$0xff]  }
 0xab0   : > { %v6624_v36 = vld [vmem:[#allocation11 + $0xa0] sm:$0xff]  }
 0xab1   : > { %3353 = vmatpush1.bf16.msra.mxu1 %v5731_v41  ;;  %3406 = vmatpush1.bf16.msra.mxu0 %v5733_v42  ;;  %v6630_v41 = vld [vmem:[#allocation11 + $0xf0] sm:$0xff]  }
 0xab2   : > { %3354 = vmatprep.subr.bf16.mxu1 %v5748_v43  ;;  %3407 = vmatprep.subr.bf16.mxu0 %v5750_v44  ;;  %v6631_v42 = vld [vmem:[#allocation11 + $0x30] sm:$0xff]   ;;  %v6633_v44 = vld [vmem:[#allocation11 + $0x78] sm:$0xff]  }
 0xab3   : > { %v6632_v43 = vld [vmem:[#allocation11 + $0xb0] sm:$0xff]  }
 0xab5   : > { %3355 = vmatpush1.bf16.msra.mxu1 %v5747_v54  ;;  %3408 = vmatpush1.bf16.msra.mxu0 %v5749_v56  ;;  %v6638_v54 = vld [vmem:[#allocation11 + $0x1c0] sm:$0xff]   ;;  %v7726_v56 = vld [vmem:[#allocation2 + $0xa] sm:$0xff] }
 0xab6   : > { %3356 = vmatprep.subr.bf16.mxu1 %v5764_v60  ;;  %3409 = vmatprep.subr.bf16.mxu0 %v5766_v62  ;;  %v2322_v60 = vsub.s32 3, %v7604_v57  ;;  %v2311_v62 = vrot.slane %v7726_v56, %v7613_v61  ;;  %v2319_v50 = vrot.slane %v7726_v56, %v7610_v59  ;;  %v2315_v0 = vrot.slane %v7726_v56, %v7607_v58 }
 0xab8   : > { %v2323_v1 = vrot.slane %v7726_v56, %v2322_v60 }
 0xab9   : > { %3357 = vmatpush1.bf16.msra.mxu1 %v5763_v10  ;;  %3410 = vmatpush1.bf16.msra.mxu0 %v5765_v51 }
 0xaba   : > { %3358 = vmatprep.subr.bf16.mxu1 %v5780_v3  ;;  %3411 = vmatprep.subr.bf16.mxu0 %v5782_v52 }
 0xabd   : > { %3359 = vmatpush1.bf16.msra.mxu1 %v5779_v18  ;;  %3412 = vmatpush1.bf16.msra.mxu0 %v5781_v22 }
 0xabe   : > { %3360 = vmatprep.subr.bf16.mxu1 %v5796_v23  ;;  %3413 = vmatprep.subr.bf16.mxu0 %v5798_v25 }
 0xac1   : > { %3361 = vmatpush1.bf16.msra.mxu1 %v5795_v26  ;;  %3414 = vmatpush1.bf16.msra.mxu0 %v5797_v27 }
 0xac2   : > { %6028 = vmatprep.subr.bf16.mxu1 %v6605_v28  ;;  %6056 = vmatprep.subr.bf16.mxu0 %v6606_v19 }
 0xac4   : > { %3379 = vmatmul.mubr.bf16.vlgmr.msra.gmra.mrb[48].mxu1 %v7686_v53  ;;  %3432 = vmatmul.mubr.bf16.vlgmr.msra.gmra.mrb[52].mxu0 %v7686_v53  ;;  %v6618_v53 = vld [vmem:[#allocation11 + $0xd8] sm:$0xff]  }
 0xac5   : > { %3388 = vmatprep.mubr.bf16.mxu1 %v7096_v63  ;;  %3441 = vmatprep.mubr.bf16.mxu0 %v7096_v63 }
 0xac6   : > { %6029 = vmatpush3.bf16.msra.mxu1 %v6607_v55  ;;  %6057 = vmatpush3.bf16.msra.mxu0 %v6608_v29 }
 0xac7   : > { %6030 = vmatprep.subr.bf16.mxu1 %v6609_v30  ;;  %6058 = vmatprep.subr.bf16.mxu0 %v6610_v31 }
 0xaca   : > { %6031 = vmatpush3.bf16.msra.mxu1 %v6611_v16  ;;  %6059 = vmatpush3.bf16.msra.mxu0 %v6612_v32 }
 0xacb   : > { %6032 = vmatprep.subr.bf16.mxu1 %v6613_v6  ;;  %6060 = vmatprep.subr.bf16.mxu0 %v6614_v14 }
 0xacc   : > { %3389 = vmatmul.mubr.bf16.gmra.mrb[52].mxu1 %v7698_v21  ;;  %3442 = vmatmul.mubr.bf16.gmra.mrb[56].mxu0 %v7698_v21  ;;  %v6628_v21 = vld [vmem:[#allocation11 + $0xa8] sm:$0xff]  }
 0xace   : > { %6033 = vmatpush3.bf16.msra.mxu1 %v6615_v15  ;;  %6061 = vmatpush3.bf16.msra.mxu0 %v6616_v4 }
 0xacf   : > { %6034 = vmatprep.subr.bf16.mxu1 %v6617_v17  ;;  %6062 = vmatprep.subr.bf16.mxu0 %v6618_v53 }
 0xad2   : > { %6035 = vmatpush3.bf16.msra.mxu1 %v6619_v5  ;;  %6063 = vmatpush3.bf16.msra.mxu0 %v6620_v33  ;;  %v6639_v33 = vld [vmem:[#allocation11 + $0x100] sm:$0xff]  }
 0xad3   : > { %6036 = vmatprep.subr.bf16.mxu1 %v6621_v7  ;;  %6064 = vmatprep.subr.bf16.mxu0 %v6622_v34  ;;  %v6640_v7 = vld [vmem:[#allocation11 + $0x180] sm:$0xff]  }
 0xad6   : > { %6037 = vmatpush3.bf16.msra.mxu1 %v6623_v35  ;;  %6065 = vmatpush3.bf16.msra.mxu0 %v6624_v36 }
 0xad7   : > { %6038 = vmatprep.subr.bf16.mxu1 %v6625_v37  ;;  %6066 = vmatprep.subr.bf16.mxu0 %v6626_v38  ;;  %v6641_v38 = vld [vmem:[#allocation11 + $0x148] sm:$0xff]  }
 0xada   : > { %6039 = vmatpush3.bf16.msra.mxu1 %v6627_v39  ;;  %6067 = vmatpush3.bf16.msra.mxu0 %v6628_v21  ;;  %v6642_v39 = vld [vmem:[#allocation11 + $0x1c8] sm:$0xff]  }
 0xadb   : > { %6040 = vmatprep.subr.bf16.mxu1 %v6629_v40  ;;  %6068 = vmatprep.subr.bf16.mxu0 %v6630_v41 }
 0xade   : > { %6041 = vmatpush3.bf16.msra.mxu1 %v6631_v42  ;;  %6069 = vmatpush3.bf16.msra.mxu0 %v6632_v43 }
 0xadf   : > { %6042 = vmatprep.subr.bf16.mxu1 %v6633_v44  ;;  %6070 = vmatprep.subr.bf16.mxu0 %v6634_v45 }
 0xae2   : > { %6043 = vmatpush3.bf16.msra.mxu1 %v6635_v48  ;;  %6071 = vmatpush3.bf16.msra.mxu0 %v6636_v12 }
 0xae3   : > { %6084 = vmatprep.subr.bf16.mxu1 %v6637_v20  ;;  %6112 = vmatprep.subr.bf16.mxu0 %v6638_v54  ;;  %v6643_v54 = vld [vmem:[#allocation11 + $0x108] sm:$0xff]  }
 0xb37   : > { %v3062_v24 = vpop.f32.mrb[24].mxu1  ;;  %v3115_v10 = vpop.f32.mrb[28].mxu0 }
 0xb38   : > { %v3063_v51 = vadd.f32 %v3062_v24, %v2311_v62  ;;  %v3116_v3 = vadd.f32 %v3115_v10, %v2319_v50  ;;  %v3064_v52 = vpop.f32.mrb[25].mxu1  ;;  %v3117_v49 = vpop.f32.mrb[29].mxu0  ;;  %v6644_v24 = vld [vmem:[#allocation11 + $0x188] sm:$0xff]  }
 0xb39   : > { %v3065_v8 = vadd.f32 %v3064_v52, %v2315_v0  ;;  %v3118_v9 = vadd.f32 %v3117_v49, %v2323_v1  ;;  %v3066_v13 = vpop.f32.mrb[26].mxu1  ;;  %v3119_v18 = vpop.f32.mrb[30].mxu0  ;;  %v6645_v49 = vld [vmem:[#allocation11 + $0x150] sm:$0xff]  }
 0xb3a   : > { %v3067_v22 = vadd.f32 %v3066_v13, %v2311_v62  ;;  %v3120_v23 = vadd.f32 %v3119_v18, %v2319_v50  ;;  %v3068_v25 = vpop.f32.mrb[27].mxu1  ;;  %v3121_v26 = vpop.f32.mrb[31].mxu0  ;;  %v3452_v19 = vmax.f32 %v3063_v51, 0.0  ;;  %v3454_v55 = vmax.f32 %v3116_v3, 0.0 }
 0xb3b   : > { %v3069_v27 = vadd.f32 %v3068_v25, %v2315_v0  ;;  %v3122_v28 = vadd.f32 %v3121_v26, %v2323_v1  ;;  %v3453_v31 = vmax.f32 %v3065_v8, 0.0  ;;  %v3455_v16 = vmax.f32 %v3118_v9, 0.0  ;;  %v6646_v8 = vld [vmem:[#allocation11 + $0x1d0] sm:$0xff]   ;;  %v6649_v26 = vld [vmem:[#allocation11 + $0x158] sm:$0xff]  }
 0xb3c   : > { %v3468_v29 = vmax.f32 %v3067_v22, 0.0  ;;  %v3470_v30 = vmax.f32 %v3120_v23, 0.0  ;;  %v6647_v23 = vld [vmem:[#allocation11 + $0x110] sm:$0xff]  }
 0xb3d   : > { %v3469_v32 = vmax.f32 %v3069_v27, 0.0  ;;  %v3471_v6 = vmax.f32 %v3122_v28, 0.0  ;;  %v6648_v25 = vld [vmem:[#allocation11 + $0x190] sm:$0xff]   ;;  %v6650_v27 = vld [vmem:[#allocation11 + $0x1d8] sm:$0xff]  }
 0xb3e   : > { %v3516_v14 = vpack.c.bf16 %v3468_v29, %v3452_v19  ;;  %v3518_v15 = vpack.c.bf16 %v3470_v30, %v3454_v55  ;;  %v6651_v28 = vld [vmem:[#allocation11 + $0x118] sm:$0xff]   ;;  %v6653_v55 = vld [vmem:[#allocation11 + $0x160] sm:$0xff]  }
 0xb3f   : > { %v3517_v4 = vpack.c.bf16 %v3469_v32, %v3453_v31  ;;  %v3519_v17 = vpack.c.bf16 %v3471_v6, %v3455_v16  ;;  %v3072_v53 = vpop.f32.mrb[28].mxu1  ;;  %v3125_v5 = vpop.f32.mrb[32].mxu0  ;;  %v6652_v19 = vld [vmem:[#allocation11 + $0x198] sm:$0xff]   ;;  %v6654_v29 = vld [vmem:[#allocation11 + $0x1e0] sm:$0xff]   ;;  %v6657_v16 = vld [vmem:[#allocation11 + $0x168] sm:$0xff]   ;;  %v2326_v6 = vsub.s32 4, %v7604_v57 }
 0xb40   : > { %v3073_v34 = vadd.f32 %v3072_v53, %v2311_v62  ;;  %v3126_v35 = vadd.f32 %v3125_v5, %v2319_v50  ;;  %v3074_v36 = vpop.f32.mrb[29].mxu1  ;;  %v3127_v37 = vpop.f32.mrb[33].mxu0  ;;  %v6655_v30 = vld [vmem:[#allocation11 + $0x120] sm:$0xff]   ;;  %v6658_v32 = vld [vmem:[#allocation11 + $0x1e8] sm:$0xff]  }
 0xb41   : > { %v3075_v21 = vadd.f32 %v3074_v36, %v2315_v0  ;;  %v3128_v40 = vadd.f32 %v3127_v37, %v2323_v1  ;;  %v3076_v41 = vpop.f32.mrb[30].mxu1  ;;  %v3129_v42 = vpop.f32.mrb[34].mxu0  ;;  %4611 = vmatprep.mubr.bf16.mxu1 %v3517_v4  ;;  %4660 = vmatprep.mubr.bf16.mxu0 %v3519_v17  ;;  %v6656_v31 = vld [vmem:[#allocation11 + $0x1a0] sm:$0xff]   ;;  %v2338_v4 = vsub.s32 7, %v7604_v57  ;;  %v6659_v17 = vld [vmem:[#allocation11 + $0x128] sm:$0xff]   ;;  %v7745_v5 = vrot.slane %v7726_v56, %v2326_v6 }
 0xb42   : > { %v3077_v43 = vadd.f32 %v3076_v41, %v2311_v62  ;;  %v3130_v44 = vadd.f32 %v3129_v42, %v2319_v50  ;;  %v3078_v45 = vpop.f32.mrb[31].mxu1  ;;  %v3131_v48 = vpop.f32.mrb[35].mxu0  ;;  %4612 = vmatmul.mubr.bf16.vlgmr.msra.gmra.mrb[56].mxu1 %v3516_v14  ;;  %4661 = vmatmul.mubr.bf16.vlgmr.msra.gmra.mrb[60].mxu0 %v3518_v15  ;;  %v3484_v10 = vmax.f32 %v3073_v34, 0.0  ;;  %v3486_v51 = vmax.f32 %v3126_v35, 0.0  ;;  %v6660_v53 = vld [vmem:[#allocation11 + $0x1a8] sm:$0xff]   ;;  %v6662_v34 = vld [vmem:[#allocation11 + $0x1f0] sm:$0xff]  }
 0xb43   : > { %v3079_v12 = vadd.f32 %v3078_v45, %v2315_v0  ;;  %v3132_v20 = vadd.f32 %v3131_v48, %v2323_v1  ;;  %6085 = vmatpush3.bf16.msra.mxu1 %v6639_v33  ;;  %6113 = vmatpush3.bf16.msra.mxu0 %v6640_v7  ;;  %v3485_v62 = vmax.f32 %v3075_v21, 0.0  ;;  %v3487_v50 = vmax.f32 %v3128_v40, 0.0  ;;  %v6661_v7 = vld [vmem:[#allocation11 + $0x170] sm:$0xff]   ;;  %v6666_v45 = vld [vmem:[#allocation11 + $0x1f8] sm:$0xff]  }
 0xb44   : > { %v3500_v3 = vmax.f32 %v3077_v43, 0.0  ;;  %v3502_v52 = vmax.f32 %v3130_v44, 0.0  ;;  %6086 = vmatprep.subr.bf16.mxu1 %v6641_v38  ;;  %6114 = vmatprep.subr.bf16.mxu0 %v6642_v39  ;;  %v2334_v14 = vsub.s32 6, %v7604_v57  ;;  %v2330_v15 = vsub.s32 5, %v7604_v57  ;;  %v6663_v39 = vld [vmem:[#allocation11 + $0x130] sm:$0xff]   ;;  %v6665_v44 = vld [vmem:[#allocation11 + $0x178] sm:$0xff]  }
 0xb45   : > { %v3501_v9 = vmax.f32 %v3079_v12, 0.0  ;;  %v3503_v13 = vmax.f32 %v3132_v20, 0.0  ;;  %v7760_v36 = vrot.slane %v7726_v56, %v2338_v4  ;;  %v6664_v21 = vld [vmem:[#allocation11 + $0x1b0] sm:$0xff]  }
 0xb46   : > { %v3532_v18 = vpack.c.bf16 %v3500_v3, %v3484_v10  ;;  %v3534_v22 = vpack.c.bf16 %v3502_v52, %v3486_v51  ;;  %v7750_v33 = vrot.slane %v7726_v56, %v2334_v14  ;;  %v7755_v35 = vrot.slane %v7726_v56, %v2330_v15 }
 0xb47   : > { %v3533_v0 = vpack.c.bf16 %v3501_v9, %v3485_v62  ;;  %v3535_v1 = vpack.c.bf16 %v3503_v13, %v3487_v50  ;;  %6087 = vmatpush3.bf16.msra.mxu1 %v6643_v54  ;;  %6115 = vmatpush3.bf16.msra.mxu0 %v6644_v24 }
 0xb48   : > { %6088 = vmatprep.subr.bf16.mxu1 %v6645_v49  ;;  %6116 = vmatprep.subr.bf16.mxu0 %v6646_v8  ;;  %v6667_v49 = vld [vmem:[#allocation11 + $0x138] sm:$0xff]  }
 0xb49   : > { %4619 = vmatprep.mubr.bf16.mxu1 %v3533_v0  ;;  %4668 = vmatprep.mubr.bf16.mxu0 %v3535_v1  ;;  %v6668_v8 = vld [vmem:[#allocation11 + $0x1b8] sm:$0xff]  }
 0xb4a   : > { %4620 = vmatmul.mubr.bf16.gmra.mrb[60].mxu1 %v3532_v18  ;;  %4669 = vmatmul.mubr.bf16.gmra.mrb[64].mxu0 %v3534_v22  ;;  %v6669_v18 = vld [vmem:[#allocation11 + $0x240] sm:$0xff]  }
 0xb4b   : > { %6089 = vmatpush3.bf16.msra.mxu1 %v6647_v23  ;;  %6117 = vmatpush3.bf16.msra.mxu0 %v6648_v25  ;;  %v6670_v22 = vld [vmem:[#allocation11 + $0x2c0] sm:$0xff]  }
 0xb4c   : > { %6090 = vmatprep.subr.bf16.mxu1 %v6649_v26  ;;  %6118 = vmatprep.subr.bf16.mxu0 %v6650_v27 }
 0xb4f   : > { %6091 = vmatpush3.bf16.msra.mxu1 %v6651_v28  ;;  %6119 = vmatpush3.bf16.msra.mxu0 %v6652_v19 }
 0xb50   : > { %6092 = vmatprep.subr.bf16.mxu1 %v6653_v55  ;;  %6120 = vmatprep.subr.bf16.mxu0 %v6654_v29 }
 0xb53   : > { %6093 = vmatpush3.bf16.msra.mxu1 %v6655_v30  ;;  %6121 = vmatpush3.bf16.msra.mxu0 %v6656_v31  ;;  %v6671_v30 = vld [vmem:[#allocation11 + $0x200] sm:$0xff]  }
 0xb54   : > { %6094 = vmatprep.subr.bf16.mxu1 %v6657_v16  ;;  %6122 = vmatprep.subr.bf16.mxu0 %v6658_v32  ;;  %v6672_v31 = vld [vmem:[#allocation11 + $0x280] sm:$0xff]  }
 0xb57   : > { %v3168_v37 = vpop.f32.mrb[32].mxu1  ;;  %v3221_v38 = vpop.f32.mrb[36].mxu0  ;;  %6095 = vmatpush3.bf16.msra.mxu1 %v6659_v17  ;;  %6123 = vmatpush3.bf16.msra.mxu0 %v6660_v53 }
 0xb58   : > { %v3169_v40 = vadd.f32 %v3168_v37, %v7745_v5  ;;  %v3222_v41 = vadd.f32 %v3221_v38, %v7750_v33  ;;  %v3170_v42 = vpop.f32.mrb[33].mxu1  ;;  %v3223_v43 = vpop.f32.mrb[37].mxu0  ;;  %6096 = vmatprep.subr.bf16.mxu1 %v6661_v7  ;;  %6124 = vmatprep.subr.bf16.mxu0 %v6662_v34  ;;  %v6673_v7 = vld [vmem:[#allocation11 + $0x248] sm:$0xff]  }
 0xb59   : > { %v3171_v48 = vadd.f32 %v3170_v42, %v7755_v35  ;;  %v3224_v56 = vadd.f32 %v3223_v43, %v7760_v36  ;;  %v3172_v12 = vpop.f32.mrb[34].mxu1  ;;  %v3225_v20 = vpop.f32.mrb[38].mxu0  ;;  %v6674_v34 = vld [vmem:[#allocation11 + $0x2c8] sm:$0xff]  }
 0xb5a   : > { %v3173_v54 = vadd.f32 %v3172_v12, %v7745_v5  ;;  %v3226_v24 = vadd.f32 %v3225_v20, %v7750_v33  ;;  %v3174_v10 = vpop.f32.mrb[35].mxu1  ;;  %v3227_v51 = vpop.f32.mrb[39].mxu0  ;;  %v3456_v62 = vmax.f32 %v3169_v40, 0.0  ;;  %v3458_v50 = vmax.f32 %v3222_v41, 0.0 }
 0xb5b   : > { %v3175_v3 = vadd.f32 %v3174_v10, %v7755_v35  ;;  %v3228_v52 = vadd.f32 %v3227_v51, %v7760_v36  ;;  %6097 = vmatpush3.bf16.msra.mxu1 %v6663_v39  ;;  %6125 = vmatpush3.bf16.msra.mxu0 %v6664_v21  ;;  %v3457_v0 = vmax.f32 %v3171_v48, 0.0  ;;  %v3459_v1 = vmax.f32 %v3224_v56, 0.0  ;;  %v6675_v48 = vld [vmem:[#allocation11 + $0x208] sm:$0xff]  }
 0xb5c   : > { %v3472_v9 = vmax.f32 %v3173_v54, 0.0  ;;  %v3474_v13 = vmax.f32 %v3226_v24, 0.0  ;;  %6098 = vmatprep.subr.bf16.mxu1 %v6665_v44  ;;  %6126 = vmatprep.subr.bf16.mxu0 %v6666_v45  ;;  %v6676_v56 = vld [vmem:[#allocation11 + $0x288] sm:$0xff]  }
 0xb5d   : > { %v3473_v23 = vmax.f32 %v3175_v3, 0.0  ;;  %v3475_v25 = vmax.f32 %v3228_v52, 0.0 }
 0xb5e   : > { %v3520_v26 = vpack.c.bf16 %v3472_v9, %v3456_v62  ;;  %v3522_v27 = vpack.c.bf16 %v3474_v13, %v3458_v50  ;;  %v6679_v62 = vld [vmem:[#allocation11 + $0x210] sm:$0xff]   ;;  %v6681_v9 = vld [vmem:[#allocation11 + $0x258] sm:$0xff]  }
 0xb5f   : > { %v3521_v28 = vpack.c.bf16 %v3473_v23, %v3457_v0  ;;  %v3523_v19 = vpack.c.bf16 %v3475_v25, %v3459_v1  ;;  %v3178_v55 = vpop.f32.mrb[36].mxu1  ;;  %v3231_v29 = vpop.f32.mrb[40].mxu0  ;;  %6099 = vmatpush3.bf16.msra.mxu1 %v6667_v49  ;;  %6127 = vmatpush3.bf16.msra.mxu0 %v6668_v8  ;;  %v6680_v50 = vld [vmem:[#allocation11 + $0x290] sm:$0xff]   ;;  %v6682_v13 = vld [vmem:[#allocation11 + $0x2d8] sm:$0xff]   ;;  %v6685_v0 = vld [vmem:[#allocation11 + $0x260] sm:$0xff]  }
 0xb60   : > { %v3179_v16 = vadd.f32 %v3178_v55, %v7745_v5  ;;  %v3232_v32 = vadd.f32 %v3231_v29, %v7750_v33  ;;  %v3180_v17 = vpop.f32.mrb[37].mxu1  ;;  %v3233_v53 = vpop.f32.mrb[41].mxu0  ;;  %6140 = vmatprep.subr.bf16.mxu1 %v6669_v18  ;;  %6168 = vmatprep.subr.bf16.mxu0 %v6670_v22  ;;  %v6683_v18 = vld [vmem:[#allocation11 + $0x218] sm:$0xff]   ;;  %v6686_v1 = vld [vmem:[#allocation11 + $0x2e0] sm:$0xff]   ;;  %v6692_v55 = vld [vmem:[#allocation11 + $0x2a8] sm:$0xff]  }
 0xb61   : > { %v3181_v37 = vadd.f32 %v3180_v17, %v7755_v35  ;;  %v3234_v38 = vadd.f32 %v3233_v53, %v7760_v36  ;;  %v3182_v39 = vpop.f32.mrb[38].mxu1  ;;  %v3235_v21 = vpop.f32.mrb[42].mxu0  ;;  %4709 = vmatprep.mubr.bf16.mxu1 %v3521_v28  ;;  %4758 = vmatprep.mubr.bf16.mxu0 %v3523_v19  ;;  %v6684_v22 = vld [vmem:[#allocation11 + $0x298] sm:$0xff]   ;;  %v6687_v23 = vld [vmem:[#allocation11 + $0x220] sm:$0xff]   ;;  %v7778_v28 = vld [vmem:[#allocation2 + $0x12] sm:$0xff] }
 0xb62   : > { %v3183_v40 = vadd.f32 %v3182_v39, %v7745_v5  ;;  %v3236_v41 = vadd.f32 %v3235_v21, %v7750_v33  ;;  %v3184_v42 = vpop.f32.mrb[39].mxu1  ;;  %v3237_v43 = vpop.f32.mrb[43].mxu0  ;;  %4710 = vmatmul.mubr.bf16.vlgmr.msra.gmra.mrb[64].mxu1 %v3520_v26  ;;  %4759 = vmatmul.mubr.bf16.vlgmr.msra.gmra.mrb[68].mxu0 %v3522_v27  ;;  %v3488_v12 = vmax.f32 %v3179_v16, 0.0  ;;  %v3490_v20 = vmax.f32 %v3232_v32, 0.0  ;;  %v6677_v5 = vld [vmem:[#allocation11 + $0x250] sm:$0xff]   ;;  %v6688_v25 = vld [vmem:[#allocation11 + $0x2a0] sm:$0xff]  }
 0xb63   : > { %v3185_v44 = vadd.f32 %v3184_v42, %v7755_v35  ;;  %v3238_v45 = vadd.f32 %v3237_v43, %v7760_v36  ;;  %6141 = vmatpush3.bf16.msra.mxu1 %v6671_v30  ;;  %6169 = vmatpush3.bf16.msra.mxu0 %v6672_v31  ;;  %v6678_v33 = vld [vmem:[#allocation11 + $0x2d0] sm:$0xff]   ;;  %v3489_v10 = vmax.f32 %v3181_v37, 0.0  ;;  %v3491_v51 = vmax.f32 %v3234_v38, 0.0  ;;  %v6689_v26 = vld [vmem:[#allocation11 + $0x268] sm:$0xff]  }
 0xb64   : > { %v3504_v54 = vmax.f32 %v3183_v40, 0.0  ;;  %v3506_v24 = vmax.f32 %v3236_v41, 0.0  ;;  %6142 = vmatprep.subr.bf16.mxu1 %v6673_v7  ;;  %6170 = vmatprep.subr.bf16.mxu0 %v6674_v34  ;;  %v6690_v27 = vld [vmem:[#allocation11 + $0x2e8] sm:$0xff]   ;;  %v7782_v29 = vrot.slane %v7778_v28, %v7613_v61  ;;  %v7786_v30 = vrot.slane %v7778_v28, %v7610_v59  ;;  %v6693_v31 = vld [vmem:[#allocation11 + $0x270] sm:$0xff]   ;;  %v6697_v40 = vld [vmem:[#allocation11 + $0x278] sm:$0xff]  }
 0xb65   : > { %v3505_v3 = vmax.f32 %v3185_v44, 0.0  ;;  %v3507_v52 = vmax.f32 %v3238_v45, 0.0  ;;  %v6691_v19 = vld [vmem:[#allocation11 + $0x228] sm:$0xff]   ;;  %v6694_v16 = vld [vmem:[#allocation11 + $0x2f0] sm:$0xff]   ;;  %v7790_v32 = vrot.slane %v7778_v28, %v7607_v58  ;;  %v7795_v17 = vrot.slane %v7778_v28, %v2322_v60  ;;  %v6698_v41 = vld [vmem:[#allocation11 + $0x2f8] sm:$0xff]  }
 0xb66   : > { %v3536_v49 = vpack.c.bf16 %v3504_v54, %v3488_v12  ;;  %v3538_v35 = vpack.c.bf16 %v3506_v24, %v3490_v20  ;;  %v6695_v34 = vld [vmem:[#allocation11 + $0x230] sm:$0xff]   ;;  %v6699_v24 = vld [vmem:[#allocation11 + $0x238] sm:$0xff]  }
 0xb67   : > { %v3537_v8 = vpack.c.bf16 %v3505_v3, %v3489_v10  ;;  %v3539_v36 = vpack.c.bf16 %v3507_v52, %v3491_v51  ;;  %6143 = vmatpush3.bf16.msra.mxu1 %v6675_v48  ;;  %6171 = vmatpush3.bf16.msra.mxu0 %v6676_v56  ;;  %v6696_v37 = vld [vmem:[#allocation11 + $0x2b0] sm:$0xff]   ;;  %v6701_v52 = vld [vmem:[#allocation11 + $0x340] sm:$0xff]  }
 0xb68   : > { %6144 = vmatprep.subr.bf16.mxu1 %v6677_v5  ;;  %6172 = vmatprep.subr.bf16.mxu0 %v6678_v33  ;;  %v6700_v5 = vld [vmem:[#allocation11 + $0x2b8] sm:$0xff]  }
 0xb69   : > { %4717 = vmatprep.mubr.bf16.mxu1 %v3537_v8  ;;  %4766 = vmatprep.mubr.bf16.mxu0 %v3539_v36 }
 0xb6a   : > { %4718 = vmatmul.mubr.bf16.gmra.mrb[68].mxu1 %v3536_v49  ;;  %4767 = vmatmul.mubr.bf16.gmra.mrb[72].mxu0 %v3538_v35  ;;  %v6702_v49 = vld [vmem:[#allocation11 + $0x3c0] sm:$0xff]  }
 0xb6b   : > { %6145 = vmatpush3.bf16.msra.mxu1 %v6679_v62  ;;  %6173 = vmatpush3.bf16.msra.mxu0 %v6680_v50 }
 0xb6c   : > { %6146 = vmatprep.subr.bf16.mxu1 %v6681_v9  ;;  %6174 = vmatprep.subr.bf16.mxu0 %v6682_v13 }
 0xb6f   : > { %6147 = vmatpush3.bf16.msra.mxu1 %v6683_v18  ;;  %6175 = vmatpush3.bf16.msra.mxu0 %v6684_v22 }
 0xb70   : > { %6148 = vmatprep.subr.bf16.mxu1 %v6685_v0  ;;  %6176 = vmatprep.subr.bf16.mxu0 %v6686_v1  ;;  %v6703_v1 = vld [vmem:[#allocation11 + $0x300] sm:$0xff]  }
 0xb73   : > { %6149 = vmatpush3.bf16.msra.mxu1 %v6687_v23  ;;  %6177 = vmatpush3.bf16.msra.mxu0 %v6688_v25  ;;  %v6704_v23 = vld [vmem:[#allocation11 + $0x380] sm:$0xff]  }
 0xb74   : > { %6150 = vmatprep.subr.bf16.mxu1 %v6689_v26  ;;  %6178 = vmatprep.subr.bf16.mxu0 %v6690_v27 }
 0xb77   : > { %v3274_v53 = vpop.f32.mrb[40].mxu1  ;;  %v3327_v7 = vpop.f32.mrb[44].mxu0  ;;  %6151 = vmatpush3.bf16.msra.mxu1 %v6691_v19  ;;  %6179 = vmatpush3.bf16.msra.mxu0 %v6692_v55  ;;  %v6705_v55 = vld [vmem:[#allocation11 + $0x348] sm:$0xff]  }
 0xb78   : > { %v3275_v59 = vadd.f32 %v3274_v53, %v7782_v29  ;;  %v3328_v38 = vadd.f32 %v3327_v7, %v7786_v30  ;;  %v3276_v39 = vpop.f32.mrb[41].mxu1  ;;  %v3329_v21 = vpop.f32.mrb[45].mxu0  ;;  %6152 = vmatprep.subr.bf16.mxu1 %v6693_v31  ;;  %6180 = vmatprep.subr.bf16.mxu0 %v6694_v16  ;;  %v6706_v31 = vld [vmem:[#allocation11 + $0x3c8] sm:$0xff]  }
 0xb79   : > { %v3277_v42 = vadd.f32 %v3276_v39, %v7790_v32  ;;  %v3330_v60 = vadd.f32 %v3329_v21, %v7795_v17  ;;  %v3278_v43 = vpop.f32.mrb[42].mxu1  ;;  %v3331_v44 = vpop.f32.mrb[46].mxu0 }
 0xb7a   : > { %v3279_v45 = vadd.f32 %v3278_v43, %v7782_v29  ;;  %v3332_v48 = vadd.f32 %v3331_v44, %v7786_v30  ;;  %v3280_v56 = vpop.f32.mrb[43].mxu1  ;;  %v3333_v12 = vpop.f32.mrb[47].mxu0  ;;  %v3460_v33 = vmax.f32 %v3275_v59, 0.0  ;;  %v3462_v10 = vmax.f32 %v3328_v38, 0.0 }
 0xb7b   : > { %v3281_v20 = vadd.f32 %v3280_v56, %v7790_v32  ;;  %v3334_v54 = vadd.f32 %v3333_v12, %v7795_v17  ;;  %6153 = vmatpush3.bf16.msra.mxu1 %v6695_v34  ;;  %6181 = vmatpush3.bf16.msra.mxu0 %v6696_v37  ;;  %v3461_v35 = vmax.f32 %v3277_v42, 0.0  ;;  %v3463_v8 = vmax.f32 %v3330_v60, 0.0  ;;  %v6708_v42 = vld [vmem:[#allocation11 + $0x388] sm:$0xff]  }
 0xb7c   : > { %v3476_v51 = vmax.f32 %v3279_v45, 0.0  ;;  %v3478_v3 = vmax.f32 %v3332_v48, 0.0  ;;  %6154 = vmatprep.subr.bf16.mxu1 %v6697_v40  ;;  %6182 = vmatprep.subr.bf16.mxu0 %v6698_v41  ;;  %v6707_v41 = vld [vmem:[#allocation11 + $0x308] sm:$0xff]  }
 0xb7d   : > { %v3477_v36 = vmax.f32 %v3281_v20, 0.0  ;;  %v3479_v62 = vmax.f32 %v3334_v54, 0.0 }
 0xb7e   : > { %v3524_v50 = vpack.c.bf16 %v3476_v51, %v3460_v33  ;;  %v3526_v9 = vpack.c.bf16 %v3478_v3, %v3462_v10  ;;  %v6712_v33 = vld [vmem:[#allocation11 + $0x390] sm:$0xff]   ;;  %v6713_v10 = vld [vmem:[#allocation11 + $0x358] sm:$0xff]  }
 0xb7f   : > { %v3525_v13 = vpack.c.bf16 %v3477_v36, %v3461_v35  ;;  %v3527_v18 = vpack.c.bf16 %v3479_v62, %v3463_v8  ;;  %v3284_v22 = vpop.f32.mrb[44].mxu1  ;;  %v3337_v0 = vpop.f32.mrb[48].mxu0  ;;  %6155 = vmatpush3.bf16.msra.mxu1 %v6699_v24  ;;  %6183 = vmatpush3.bf16.msra.mxu0 %v6700_v5  ;;  %v6711_v5 = vld [vmem:[#allocation11 + $0x310] sm:$0xff]   ;;  %v6714_v51 = vld [vmem:[#allocation11 + $0x3d8] sm:$0xff]   ;;  %v6718_v35 = vld [vmem:[#allocation11 + $0x3e0] sm:$0xff]  }
 0xb80   : > { %v3285_v25 = vadd.f32 %v3284_v22, %v7782_v29  ;;  %v3338_v26 = vadd.f32 %v3337_v0, %v7786_v30  ;;  %v3286_v27 = vpop.f32.mrb[45].mxu1  ;;  %v3339_v19 = vpop.f32.mrb[49].mxu0  ;;  %6196 = vmatprep.subr.bf16.mxu1 %v6701_v52  ;;  %6224 = vmatprep.subr.bf16.mxu0 %v6702_v49  ;;  %v6715_v3 = vld [vmem:[#allocation11 + $0x318] sm:$0xff]   ;;  %v6717_v49 = vld [vmem:[#allocation11 + $0x360] sm:$0xff]   ;;  %v6721_v62 = vld [vmem:[#allocation11 + $0x368] sm:$0xff]   ;;  %v2367_v22 = vrot.slane %v7778_v28, %v2334_v14 }
 0xb81   : > { %v3287_v16 = vadd.f32 %v3286_v27, %v7790_v32  ;;  %v3340_v53 = vadd.f32 %v3339_v19, %v7795_v17  ;;  %v3288_v7 = vpop.f32.mrb[46].mxu1  ;;  %v3341_v34 = vpop.f32.mrb[50].mxu0  ;;  %4807 = vmatprep.mubr.bf16.mxu1 %v3525_v13  ;;  %4856 = vmatprep.mubr.bf16.mxu0 %v3527_v18  ;;  %v6716_v52 = vld [vmem:[#allocation11 + $0x398] sm:$0xff]   ;;  %v6719_v8 = vld [vmem:[#allocation11 + $0x320] sm:$0xff]   ;;  %v6724_v13 = vld [vmem:[#allocation11 + $0x3a8] sm:$0xff]   ;;  %v2359_v18 = vrot.slane %v7778_v28, %v2326_v6 }
 0xb82   : > { %v3289_v37 = vadd.f32 %v3288_v7, %v7782_v29  ;;  %v3342_v59 = vadd.f32 %v3341_v34, %v7786_v30  ;;  %v3290_v38 = vpop.f32.mrb[47].mxu1  ;;  %v3343_v39 = vpop.f32.mrb[51].mxu0  ;;  %4808 = vmatmul.mubr.bf16.vlgmr.msra.gmra.mrb[72].mxu1 %v3524_v50  ;;  %4857 = vmatmul.mubr.bf16.vlgmr.msra.gmra.mrb[76].mxu0 %v3526_v9  ;;  %v3492_v60 = vmax.f32 %v3285_v25, 0.0  ;;  %v3494_v43 = vmax.f32 %v3338_v26, 0.0  ;;  %v6709_v29 = vld [vmem:[#allocation11 + $0x350] sm:$0xff]   ;;  %v6720_v36 = vld [vmem:[#allocation11 + $0x3a0] sm:$0xff]  }
 0xb83   : > { %v3291_v21 = vadd.f32 %v3290_v38, %v7790_v32  ;;  %v3344_v40 = vadd.f32 %v3343_v39, %v7795_v17  ;;  %6197 = vmatpush3.bf16.msra.mxu1 %v6703_v1  ;;  %6225 = vmatpush3.bf16.msra.mxu0 %v6704_v23  ;;  %v6710_v30 = vld [vmem:[#allocation11 + $0x3d0] sm:$0xff]   ;;  %v3493_v48 = vmax.f32 %v3287_v16, 0.0  ;;  %v3495_v56 = vmax.f32 %v3340_v53, 0.0  ;;  %v6722_v50 = vld [vmem:[#allocation11 + $0x3e8] sm:$0xff]   ;;  %v6729_v53 = vld [vmem:[#allocation11 + $0x378] sm:$0xff]  }
 0xb84   : > { %v3508_v44 = vmax.f32 %v3289_v37, 0.0  ;;  %v3510_v45 = vmax.f32 %v3342_v59, 0.0  ;;  %6198 = vmatprep.subr.bf16.mxu1 %v6705_v55  ;;  %6226 = vmatprep.subr.bf16.mxu0 %v6706_v31  ;;  %v6723_v9 = vld [vmem:[#allocation11 + $0x328] sm:$0xff]   ;;  %v6725_v0 = vld [vmem:[#allocation11 + $0x370] sm:$0xff]   ;;  %v7822_v23 = vrot.slane %v7778_v28, %v2330_v15  ;;  %v7827_v25 = vrot.slane %v7778_v28, %v2338_v4  ;;  %v6730_v15 = vld [vmem:[#allocation11 + $0x3f8] sm:$0xff]  }
 0xb85   : > { %v3509_v12 = vmax.f32 %v3291_v21, 0.0  ;;  %v3511_v20 = vmax.f32 %v3344_v40, 0.0  ;;  %v6726_v1 = vld [vmem:[#allocation11 + $0x3f0] sm:$0xff]   ;;  %v6731_v40 = vld [vmem:[#allocation11 + $0x338] sm:$0xff]  }
 0xb86   : > { %v3540_v54 = vpack.c.bf16 %v3508_v44, %v3492_v60  ;;  %v3542_v32 = vpack.c.bf16 %v3510_v45, %v3494_v43  ;;  %v6727_v6 = vld [vmem:[#allocation11 + $0x330] sm:$0xff]  }
 0xb87   : > { %v3541_v24 = vpack.c.bf16 %v3509_v12, %v3493_v48  ;;  %v3543_v17 = vpack.c.bf16 %v3511_v20, %v3495_v56  ;;  %6199 = vmatpush3.bf16.msra.mxu1 %v6707_v41  ;;  %6227 = vmatpush3.bf16.msra.mxu0 %v6708_v42  ;;  %v6728_v19 = vld [vmem:[#allocation11 + $0x3b0] sm:$0xff]   ;;  %v6732_v41 = vld [vmem:[#allocation11 + $0x3b8] sm:$0xff]  }
 0xb88   : > { %6200 = vmatprep.subr.bf16.mxu1 %v6709_v29  ;;  %6228 = vmatprep.subr.bf16.mxu0 %v6710_v30 }
 0xb89   : > { %4815 = vmatprep.mubr.bf16.mxu1 %v3541_v24  ;;  %4864 = vmatprep.mubr.bf16.mxu0 %v3543_v17 }
 0xb8a   : > { %4816 = vmatmul.mubr.bf16.gmra.mrb[76].mxu1 %v3540_v54  ;;  %4865 = vmatmul.mubr.bf16.gmra.mrb[80].mxu0 %v3542_v32 }
 0xb8b   : > { %6201 = vmatpush3.bf16.msra.mxu1 %v6711_v5  ;;  %6229 = vmatpush3.bf16.msra.mxu0 %v6712_v33 }
 0xb8c   : > { %6202 = vmatprep.subr.bf16.mxu1 %v6713_v10  ;;  %6230 = vmatprep.subr.bf16.mxu0 %v6714_v51 }
 0xb8f   : > { %6203 = vmatpush3.bf16.msra.mxu1 %v6715_v3  ;;  %6231 = vmatpush3.bf16.msra.mxu0 %v6716_v52 }
 0xb90   : > { %6204 = vmatprep.subr.bf16.mxu1 %v6717_v49  ;;  %6232 = vmatprep.subr.bf16.mxu0 %v6718_v35 }
 0xb93   : > { %6205 = vmatpush3.bf16.msra.mxu1 %v6719_v8  ;;  %6233 = vmatpush3.bf16.msra.mxu0 %v6720_v36 }
 0xb94   : > { %6206 = vmatprep.subr.bf16.mxu1 %v6721_v62  ;;  %6234 = vmatprep.subr.bf16.mxu0 %v6722_v50 }
 0xb97   : > { %v3380_v26 = vpop.f32.mrb[48].mxu1  ;;  %v3433_v27 = vpop.f32.mrb[52].mxu0  ;;  %6207 = vmatpush3.bf16.msra.mxu1 %v6723_v9  ;;  %6235 = vmatpush3.bf16.msra.mxu0 %v6724_v13 }
 0xb98   : > { %v3381_v55 = vadd.f32 %v3380_v26, %v2359_v18  ;;  %v3434_v14 = vadd.f32 %v3433_v27, %v2367_v22  ;;  %v3382_v31 = vpop.f32.mrb[49].mxu1  ;;  %v3435_v16 = vpop.f32.mrb[53].mxu0  ;;  %6208 = vmatprep.subr.bf16.mxu1 %v6725_v0  ;;  %6236 = vmatprep.subr.bf16.mxu0 %v6726_v1 }
 0xb99   : > { %v3383_v7 = vadd.f32 %v3382_v31, %v7822_v23  ;;  %v3436_v57 = vadd.f32 %v3435_v16, %v7827_v25  ;;  %v3384_v4 = vpop.f32.mrb[50].mxu1  ;;  %v3437_v28 = vpop.f32.mrb[54].mxu0 }
 0xb9a   : > { %v3385_v34 = vadd.f32 %v3384_v4, %v2359_v18  ;;  %v3438_v37 = vadd.f32 %v3437_v28, %v2367_v22  ;;  %v3386_v59 = vpop.f32.mrb[51].mxu1  ;;  %v3439_v38 = vpop.f32.mrb[55].mxu0  ;;  %v3464_v42 = vmax.f32 %v3381_v55, 0.0  ;;  %v3466_v60 = vmax.f32 %v3434_v14, 0.0 }
 0xb9b   : > { %v3387_v39 = vadd.f32 %v3386_v59, %v7822_v23  ;;  %v3440_v21 = vadd.f32 %v3439_v38, %v7827_v25  ;;  %6209 = vmatpush3.bf16.msra.mxu1 %v6727_v6  ;;  %6237 = vmatpush3.bf16.msra.mxu0 %v6728_v19  ;;  %v3465_v45 = vmax.f32 %v3383_v7, 0.0  ;;  %v3467_v29 = vmax.f32 %v3436_v57, 0.0 }
 0xb9c   : > { %v3480_v43 = vmax.f32 %v3385_v34, 0.0  ;;  %v3482_v44 = vmax.f32 %v3438_v37, 0.0  ;;  %6210 = vmatprep.subr.bf16.mxu1 %v6729_v53  ;;  %6238 = vmatprep.subr.bf16.mxu0 %v6730_v15  ;;  %v5799_v53 = vld [vmem:[#allocation2 + $0x1a] ss:$0 sm:$0xff] }
 0xb9d   : > { %v3481_v30 = vmax.f32 %v3387_v39, 0.0  ;;  %v3483_v48 = vmax.f32 %v3440_v21, 0.0 }
 0xb9e   : > { %v3528_v56 = vpack.c.bf16 %v3480_v43, %v3464_v42  ;;  %v3530_v12 = vpack.c.bf16 %v3482_v44, %v3466_v60 }
 0xb9f   : > { %v3529_v20 = vpack.c.bf16 %v3481_v30, %v3465_v45  ;;  %v3531_v54 = vpack.c.bf16 %v3483_v48, %v3467_v29  ;;  %v3390_v32 = vpop.f32.mrb[52].mxu1  ;;  %v3443_v24 = vpop.f32.mrb[56].mxu0  ;;  %6211 = vmatpush3.bf16.msra.mxu1 %v6731_v40  ;;  %6239 = vmatpush3.bf16.msra.mxu0 %v6732_v41 }
 0xba0   : > { %v3391_v17 = vadd.f32 %v3390_v32, %v2359_v18  ;;  %v3444_v5 = vadd.f32 %v3443_v24, %v2367_v22  ;;  %v3392_v33 = vpop.f32.mrb[53].mxu1  ;;  %v3445_v10 = vpop.f32.mrb[57].mxu0 }
 0xba1   : > { %v3393_v51 = vadd.f32 %v3392_v33, %v7822_v23  ;;  %v3446_v3 = vadd.f32 %v3445_v10, %v7827_v25  ;;  %v3394_v52 = vpop.f32.mrb[54].mxu1  ;;  %v3447_v49 = vpop.f32.mrb[58].mxu0  ;;  %4905 = vmatprep.mubr.bf16.mxu1 %v3529_v20  ;;  %4954 = vmatprep.mubr.bf16.mxu0 %v3531_v54 }
 0xba2   : > { %v3395_v35 = vadd.f32 %v3394_v52, %v2359_v18  ;;  %v3448_v8 = vadd.f32 %v3447_v49, %v2367_v22  ;;  %v3396_v36 = vpop.f32.mrb[55].mxu1  ;;  %v3449_v62 = vpop.f32.mrb[59].mxu0  ;;  %4906 = vmatmul.mubr.bf16.vlgmr.msra.gmra.mrb[80].mxu1 %v3528_v56  ;;  %4955 = vmatmul.mubr.bf16.vlgmr.msra.gmra.mrb[84].mxu0 %v3530_v12  ;;  %v3496_v13 = vmax.f32 %v3391_v17, 0.0  ;;  %v3498_v0 = vmax.f32 %v3444_v5, 0.0 }
 0xba3   : > { %v3397_v50 = vadd.f32 %v3396_v36, %v7822_v23  ;;  %v3450_v9 = vadd.f32 %v3449_v62, %v7827_v25  ;;  %v3497_v27 = vmax.f32 %v3393_v51, 0.0  ;;  %v3499_v6 = vmax.f32 %v3446_v3, 0.0 }
 0xba4   : > { %v3512_v1 = vmax.f32 %v3395_v35, 0.0  ;;  %v3514_v26 = vmax.f32 %v3448_v8, 0.0 }
 0xba5   : > { %v3513_v19 = vmax.f32 %v3397_v50, 0.0  ;;  %v3515_v55 = vmax.f32 %v3450_v9, 0.0 }
 0xba6   : > { %v3544_v14 = vpack.c.bf16 %v3512_v1, %v3496_v13  ;;  %v3546_v31 = vpack.c.bf16 %v3514_v26, %v3498_v0 }
 0xba7   : > { %v3545_v18 = vpack.c.bf16 %v3513_v19, %v3497_v27  ;;  %v3547_v22 = vpack.c.bf16 %v3515_v55, %v3499_v6 }
 0xba9   : > { %4913 = vmatprep.mubr.bf16.mxu1 %v3545_v18  ;;  %4962 = vmatprep.mubr.bf16.mxu0 %v3547_v22 }
 0xbaa   : > { %4914 = vmatmul.mubr.bf16.gmra.mrb[84].mxu1 %v3544_v14  ;;  %4963 = vmatmul.mubr.bf16.gmra.mrb[88].mxu0 %v3546_v31 }
 0xc15   : > { %v6044_v16 = vpop.f32.mrb[56].mxu1  ;;  %v6072_v23 = vpop.f32.mrb[60].mxu0 }
 0xc16   : > { %v6045_v25 = vpop.f32.mrb[57].mxu1  ;;  %v6073_v15 = vpop.f32.mrb[61].mxu0 }
 0xc17   : > { %v6046_v7 = vadd.f32 %v6045_v25, %v6044_v16  ;;  %v6074_v57 = vadd.f32 %v6073_v15, %v6072_v23  ;;  %v6047_v4 = vpop.f32.mrb[58].mxu1  ;;  %v6075_v28 = vpop.f32.mrb[62].mxu0 }
 0xc18   : > { %v6048_v34 = vpop.f32.mrb[59].mxu1  ;;  %v6076_v37 = vpop.f32.mrb[63].mxu0 }
 0xc19   : > { %v4614_v59 = vadd.f32 %v6046_v7, %v5799_v53  ;;  %v6049_v38 = vadd.f32 %v6048_v34, %v6047_v4  ;;  %v6077_v39 = vadd.f32 %v6076_v37, %v6075_v28 }
 0xc1b   : > { %v4663_v21 = vadd.f32 %v6074_v57, %v4614_v59  ;;  %v4617_v40 = vadd.f32 %v6049_v38, %v5799_v53 }
 0xc1d   : > { %v4666_v41 = vadd.f32 %v6077_v39, %v4617_v40  ;;  %v6050_v42 = vpop.f32.mrb[60].mxu1  ;;  %v6078_v60 = vpop.f32.mrb[64].mxu0 }
 0xc1e   : > { %v6051_v43 = vpop.f32.mrb[61].mxu1  ;;  %v6079_v44 = vpop.f32.mrb[65].mxu0 }
 0xc1f   : > { %v6052_v45 = vadd.f32 %v6051_v43, %v6050_v42  ;;  %v6080_v29 = vadd.f32 %v6079_v44, %v6078_v60  ;;  %v6053_v30 = vpop.f32.mrb[62].mxu1  ;;  %v6081_v48 = vpop.f32.mrb[66].mxu0 }
 0xc20   : > { %v6054_v56 = vpop.f32.mrb[63].mxu1  ;;  %v6082_v12 = vpop.f32.mrb[67].mxu0 }
 0xc21   : > { %v4622_v20 = vadd.f32 %v6052_v45, %v5799_v53  ;;  %v6055_v54 = vadd.f32 %v6054_v56, %v6053_v30  ;;  %v6083_v32 = vadd.f32 %v6082_v12, %v6081_v48 }
 0xc23   : > { %v4671_v24 = vadd.f32 %v6080_v29, %v4622_v20  ;;  %v4625_v17 = vadd.f32 %v6055_v54, %v5799_v53 }
 0xc25   : > { %v4674_v5 = vadd.f32 %v6083_v32, %v4625_v17 }
 0xc35   : > { %v6100_v33 = vpop.f32.mrb[64].mxu1  ;;  %v6128_v10 = vpop.f32.mrb[68].mxu0 }
 0xc36   : > { %v6101_v51 = vpop.f32.mrb[65].mxu1  ;;  %v6129_v3 = vpop.f32.mrb[69].mxu0 }
 0xc37   : > { %v6102_v52 = vadd.f32 %v6101_v51, %v6100_v33  ;;  %v6130_v49 = vadd.f32 %v6129_v3, %v6128_v10  ;;  %v6103_v35 = vpop.f32.mrb[66].mxu1  ;;  %v6131_v8 = vpop.f32.mrb[70].mxu0 }
 0xc38   : > { %v6104_v36 = vpop.f32.mrb[67].mxu1  ;;  %v6132_v62 = vpop.f32.mrb[71].mxu0 }
 0xc39   : > { %v4712_v50 = vadd.f32 %v6102_v52, %v4663_v21  ;;  %v6105_v9 = vadd.f32 %v6104_v36, %v6103_v35  ;;  %v6133_v13 = vadd.f32 %v6132_v62, %v6131_v8 }
 0xc3b   : > { %v4761_v0 = vadd.f32 %v6130_v49, %v4712_v50  ;;  %v4715_v1 = vadd.f32 %v6105_v9, %v4666_v41 }
 0xc3d   : > { %v4764_v26 = vadd.f32 %v6133_v13, %v4715_v1  ;;  %v6106_v27 = vpop.f32.mrb[68].mxu1  ;;  %v6134_v6 = vpop.f32.mrb[72].mxu0 }
 0xc3e   : > { %v6107_v19 = vpop.f32.mrb[69].mxu1  ;;  %v6135_v55 = vpop.f32.mrb[73].mxu0 }
 0xc3f   : > { %v6108_v14 = vadd.f32 %v6107_v19, %v6106_v27  ;;  %v6136_v31 = vadd.f32 %v6135_v55, %v6134_v6  ;;  %v6109_v18 = vpop.f32.mrb[70].mxu1  ;;  %v6137_v22 = vpop.f32.mrb[74].mxu0 }
 0xc40   : > { %v6110_v16 = vpop.f32.mrb[71].mxu1  ;;  %v6138_v23 = vpop.f32.mrb[75].mxu0 }
 0xc41   : > { %v4720_v53 = vadd.f32 %v6108_v14, %v4671_v24  ;;  %v6111_v25 = vadd.f32 %v6110_v16, %v6109_v18  ;;  %v6139_v15 = vadd.f32 %v6138_v23, %v6137_v22 }
 0xc43   : > { %v4769_v7 = vadd.f32 %v6136_v31, %v4720_v53  ;;  %v4723_v57 = vadd.f32 %v6111_v25, %v4674_v5 }
 0xc45   : > { %v4772_v4 = vadd.f32 %v6139_v15, %v4723_v57 }
 0xc55   : > { %v6156_v28 = vpop.f32.mrb[72].mxu1  ;;  %v6184_v34 = vpop.f32.mrb[76].mxu0 }
 0xc56   : > { %v6157_v37 = vpop.f32.mrb[73].mxu1  ;;  %v6185_v59 = vpop.f32.mrb[77].mxu0 }
 0xc57   : > { %v6158_v38 = vadd.f32 %v6157_v37, %v6156_v28  ;;  %v6186_v39 = vadd.f32 %v6185_v59, %v6184_v34  ;;  %v6159_v21 = vpop.f32.mrb[74].mxu1  ;;  %v6187_v40 = vpop.f32.mrb[78].mxu0 }
 0xc58   : > { %v6160_v41 = vpop.f32.mrb[75].mxu1  ;;  %v6188_v42 = vpop.f32.mrb[79].mxu0 }
 0xc59   : > { %v4810_v60 = vadd.f32 %v6158_v38, %v4761_v0  ;;  %v6161_v43 = vadd.f32 %v6160_v41, %v6159_v21  ;;  %v6189_v44 = vadd.f32 %v6188_v42, %v6187_v40 }
 0xc5b   : > { %v4859_v45 = vadd.f32 %v6186_v39, %v4810_v60  ;;  %v4813_v29 = vadd.f32 %v6161_v43, %v4764_v26 }
 0xc5d   : > { %v4862_v30 = vadd.f32 %v6189_v44, %v4813_v29  ;;  %v6162_v48 = vpop.f32.mrb[76].mxu1  ;;  %v6190_v56 = vpop.f32.mrb[80].mxu0 }
 0xc5e   : > { %v6163_v12 = vpop.f32.mrb[77].mxu1  ;;  %v6191_v20 = vpop.f32.mrb[81].mxu0 }
 0xc5f   : > { %v6164_v54 = vadd.f32 %v6163_v12, %v6162_v48  ;;  %v6192_v32 = vadd.f32 %v6191_v20, %v6190_v56  ;;  %v6165_v24 = vpop.f32.mrb[78].mxu1  ;;  %v6193_v17 = vpop.f32.mrb[82].mxu0 }
 0xc60   : > { %v6166_v5 = vpop.f32.mrb[79].mxu1  ;;  %v6194_v33 = vpop.f32.mrb[83].mxu0 }
 0xc61   : > { %v4818_v10 = vadd.f32 %v6164_v54, %v4769_v7  ;;  %v6167_v51 = vadd.f32 %v6166_v5, %v6165_v24  ;;  %v6195_v3 = vadd.f32 %v6194_v33, %v6193_v17  ;;  %v6733_v17 = vld [vmem:[%s8027_s11] sm:$0xff]   ;;  %v6734_v5 = vld [vmem:[%s8027_s11 + $0x8] sm:$0xff]   ;;  %v6735_v33 = vld [vmem:[%s8027_s11 + $0x10] sm:$0xff]  }
 0xc62   : > { %6404 = vmatprep.subr.bf16.mxu1 %v6733_v17 }
 0xc63   : > { %v4867_v52 = vadd.f32 %v6192_v32, %v4818_v10  ;;  %v4821_v49 = vadd.f32 %v6167_v51, %v4772_v4  ;;  %6405 = vmatpush3.bf16.msra.mxu1 %v6733_v17  ;;  %v6736_v10 = vld [vmem:[%s8027_s11 + $0x18] sm:$0xff]   ;;  %v6737_v51 = vld [vmem:[%s8027_s11 + $0x20] sm:$0xff]  }
 0xc64   : > { %6406 = vmatprep.subr.bf16.mxu1 %v6734_v5  ;;  %v6750_v17 = vld [vmem:[%s8075_s14 + $0x14] ss:$8 sps:$4 sm:$0xff]  }
 0xc65   : > { %v4870_v35 = vadd.f32 %v6195_v3, %v4821_v49  ;;  %v6738_v3 = vld [vmem:[%s8027_s11 + $0x28] sm:$0xff]   ;;  %v6740_v49 = vld [vmem:[%s8027_s11 + $0x38] sm:$0xff]  }
 0xc67   : > { %6407 = vmatpush3.bf16.msra.mxu1 %v6734_v5  ;;  %v6748_v5 = vld [vmem:[%s8075_s14 + $0x10] ss:$8 sps:$4 sm:$0xff]  }
 0xc68   : > { %6408 = vmatprep.subr.bf16.mxu1 %v6735_v33 }
 0xc6b   : > { %6409 = vmatpush3.bf16.msra.mxu1 %v6735_v33  ;;  %v5939_v33 = vld [vmem:[#allocation2 + $0x1e] ss:$0 sm:$0xff] }
 0xc6c   : > { %6410 = vmatprep.subr.bf16.mxu1 %v6736_v10 }
 0xc6f   : > { %6411 = vmatpush3.bf16.msra.mxu1 %v6736_v10 }
 0xc70   : > { %6412 = vmatprep.subr.bf16.mxu1 %v6737_v51 }
 0xc73   : > { %6413 = vmatpush3.bf16.msra.mxu1 %v6737_v51 }
 0xc74   : > { %6414 = vmatprep.subr.bf16.mxu1 %v6738_v3 }
 0xc75   : > { %v6212_v8 = vpop.f32.mrb[80].mxu1  ;;  %v6240_v36 = vpop.f32.mrb[84].mxu0 }
 0xc76   : > { %v6213_v62 = vpop.f32.mrb[81].mxu1  ;;  %v6241_v50 = vpop.f32.mrb[85].mxu0 }
 0xc77   : > { %v6214_v9 = vadd.f32 %v6213_v62, %v6212_v8  ;;  %v6242_v13 = vadd.f32 %v6241_v50, %v6240_v36  ;;  %v6215_v0 = vpop.f32.mrb[82].mxu1  ;;  %v6243_v1 = vpop.f32.mrb[86].mxu0  ;;  %6415 = vmatpush3.bf16.msra.mxu1 %v6738_v3  ;;  %v6742_v8 = vld [vmem:[%s8028_s12 + $0x8] sm:$0xff]  }
 0xc78   : > { %v6216_v26 = vpop.f32.mrb[83].mxu1  ;;  %v6244_v27 = vpop.f32.mrb[87].mxu0 }
 0xc79   : > { %v4908_v6 = vadd.f32 %v6214_v9, %v4859_v45  ;;  %v6217_v19 = vadd.f32 %v6216_v26, %v6215_v0  ;;  %v6245_v55 = vadd.f32 %v6244_v27, %v6243_v1 }
 0xc7b   : > { %v4957_v14 = vadd.f32 %v6242_v13, %v4908_v6  ;;  %v4911_v31 = vadd.f32 %v6217_v19, %v4862_v30 }
 0xc7d   : > { %v4960_v18 = vadd.f32 %v6245_v55, %v4911_v31  ;;  %v6218_v22 = vpop.f32.mrb[84].mxu1  ;;  %v6246_v16 = vpop.f32.mrb[88].mxu0  ;;  %v4971_v23 = vadd.f32 %v4957_v14, %v7678_v46  ;;  %v5928_v31 = vld [vmem:[#allocation2 + $0x1b] ss:$0 sm:$0xff] }
 0xc7e   : > { %v6219_v53 = vpop.f32.mrb[85].mxu1  ;;  %v6247_v25 = vpop.f32.mrb[89].mxu0 }
 0xc7f   : > { %v6220_v15 = vadd.f32 %v6219_v53, %v6218_v22  ;;  %v6248_v7 = vadd.f32 %v6247_v25, %v6246_v16  ;;  %v6221_v57 = vpop.f32.mrb[86].mxu1  ;;  %v6249_v4 = vpop.f32.mrb[90].mxu0  ;;  %4975 = vadd.xlane.f32.xlu0 %v4971_v23  ;;  %v4972_v28 = vadd.f32 %v4960_v18, %v7680_v47  ;;  %v5929_v53 = vld [vmem:[#allocation2 + $0x1c] ss:$0 sm:$0xff] }
 0xc80   : > { %v6222_v34 = vpop.f32.mrb[87].mxu1  ;;  %v6250_v37 = vpop.f32.mrb[91].mxu0 }
 0xc81   : > { %v4916_v59 = vadd.f32 %v6220_v15, %v4867_v52  ;;  %v6223_v38 = vadd.f32 %v6222_v34, %v6221_v57  ;;  %v6251_v39 = vadd.f32 %v6250_v37, %v6249_v4  ;;  %4977 = vadd.xlane.f32.xlu1 %v4972_v28  ;;  %v6739_v52 = vld [vmem:[%s8027_s11 + $0x30] sm:$0xff]  }
 0xc82   : > { %6416 = vmatprep.subr.bf16.mxu1 %v6739_v52 }
 0xc83   : > { %v4965_v21 = vadd.f32 %v6248_v7, %v4916_v59  ;;  %v4919_v40 = vadd.f32 %v6223_v38, %v4870_v35  ;;  %6417 = vmatpush3.bf16.msra.mxu1 %v6739_v52  ;;  %v6741_v35 = vld [vmem:[%s8028_s12] sm:$0xff]  }
 0xc84   : > { %6418 = vmatprep.subr.bf16.mxu1 %v6740_v49  ;;  %6424 = vmatprep.subr.bf16.mxu0 %v6741_v35 }
 0xc85   : > { %v4968_v41 = vadd.f32 %v6251_v39, %v4919_v40  ;;  %v4973_v46 = vadd.f32 %v4965_v21, %v7694_v11  ;;  %6425 = vmatpush3.bf16.msra.mxu0 %v6741_v35 }
 0xc86   : > { %6426 = vmatprep.subr.bf16.mxu0 %v6742_v8 }
 0xc87   : > { %4979 = vadd.xlane.f32.xlu0 %v4973_v46  ;;  %v4974_v42 = vadd.f32 %v4968_v41, %v7690_v2  ;;  %6419 = vmatpush3.bf16.msra.mxu1 %v6740_v49  ;;  %v6743_v41 = vld [vmem:[%s8028_s12 + $0x10] sm:$0xff]  }
 0xc89   : > { %4981 = vadd.xlane.f32.xlu1 %v4974_v42  ;;  %6427 = vmatpush3.bf16.msra.mxu0 %v6742_v8 }
 0xc8a   : > { %6428 = vmatprep.subr.bf16.mxu0 %v6743_v41 }
 0xc8d   : > { %6429 = vmatpush3.bf16.msra.mxu0 %v6743_v41 }
 0xd0c   : > { %v4976_v60 = vpop.xlane.xlu0 %4975 }
 0xd0d   : > { %v4983_v43 = vmul.f32 0.0078125, %v4976_v60 }
 0xd0e   : > { %v4978_v44 = vpop.xlane.xlu1 %4977 }
 0xd0f   : > { %v7841_v45 = vsub.f32 %v4971_v23, %v4983_v43  ;;  %v4984_v47 = vmul.f32 0.0078125, %v4978_v44 }
 0xd11   : > { %v7843_v29 = vsub.f32 %v4972_v28, %v4984_v47  ;;  %v4991_v30 = vmul.f32 %v7841_v45, %v7841_v45 }
 0xd13   : > { %4995 = vadd.xlane.f32.xlu0 %v4991_v30  ;;  %v4992_v48 = vmul.f32 %v7843_v29, %v7843_v29 }
 0xd14   : > { %v4980_v11 = vpop.xlane.xlu0 %4979 }
 0xd15   : > { %v4985_v56 = vmul.f32 0.0078125, %v4980_v11  ;;  %4997 = vadd.xlane.f32.xlu1 %v4992_v48 }
 0xd16   : > { %v4982_v2 = vpop.xlane.xlu1 %4981 }
 0xd17   : > { %v7849_v12 = vsub.f32 %v4973_v46, %v4985_v56  ;;  %v4986_v20 = vmul.f32 0.0078125, %v4982_v2  ;;  %v6744_v46 = vld [vmem:[%s8028_s12 + $0x18] sm:$0xff]  }
 0xd18   : > { %6430 = vmatprep.subr.bf16.mxu0 %v6744_v46 }
 0xd19   : > { %v7851_v54 = vsub.f32 %v4974_v42, %v4986_v20  ;;  %v4993_v32 = vmul.f32 %v7849_v12, %v7849_v12  ;;  %6431 = vmatpush3.bf16.msra.mxu0 %v6744_v46  ;;  %v5930_v42 = vld [vmem:[#allocation2 + $0x1d] ss:$0 sm:$0xff] }
 0xd1b   : > { %4999 = vadd.xlane.f32.xlu0 %v4993_v32  ;;  %v4994_v24 = vmul.f32 %v7851_v54, %v7851_v54  ;;  %v6747_v32 = vld [vmem:[%s8075_s14 + $0x4] ss:$8 sps:$4 sm:$0xff]  }
 0xd1c   : > { %5312 = vmatprep.subr.bf16.mxu1 %v6747_v32 }
 0xd1d   : > { %5001 = vadd.xlane.f32.xlu1 %v4994_v24  ;;  %v6745_v24 = vld [vmem:[%s8075_s14] ss:$8 sps:$4 sm:$0xff]  }
 0xda0   : > { %v4996_v36 = vpop.xlane.xlu0 %4995 }
 0xda1   : > { %v5003_v62 = vmul.f32 0.0078125, %v4996_v36 }
 0xda2   : > { %v4998_v50 = vpop.xlane.xlu1 %4997 }
 0xda3   : > { %v5007_v9 = vadd.f32 1e-05, %v5003_v62  ;;  %v5004_v13 = vmul.f32 0.0078125, %v4998_v50 }
 0xda5   : > { %6807 = vrsqrt.f32 %v5007_v9  ;;  %v5008_v0 = vadd.f32 1e-05, %v5004_v13 }
 0xda7   : > { %6809 = vrsqrt.f32 %v5008_v0 }
 0xda8   : > { %v5000_v1 = vpop.xlane.xlu0 %4999 }
 0xda9   : > { %v5005_v26 = vmul.f32 0.0078125, %v5000_v1 }
 0xdaa   : > { %v5002_v27 = vpop.xlane.xlu1 %5001 }
 0xdab   : > { %v5009_v6 = vadd.f32 1e-05, %v5005_v26  ;;  %v5006_v19 = vmul.f32 0.0078125, %v5002_v27  ;;  %v5274_v26 = vld [vmem:[#allocation2 + $0x1f] sm:$0x3] }
 0xdac   : > { %v5279_v27 = vrot.slane %v5274_v26, %v7613_v61 }
 0xdad   : > { %6811 = vrsqrt.f32 %v5009_v6  ;;  %v5010_v55 = vadd.f32 1e-05, %v5006_v19  ;;  %v5283_v6 = vrot.slane %v5274_v26, %v7607_v58 }
 0xdaf   : > { %v6808_v14 = vpop.eup %6807  ;;  %6813 = vrsqrt.f32 %v5010_v55 }
 0xdb0   : > { %v5015_v18 = vmul.f32 %v6808_v14, %v7841_v45 }
 0xdb1   : > { %v6810_v22 = vpop.eup %6809 }
 0xdb2   : > { %v5016_v16 = vmul.f32 %v6810_v22, %v7843_v29  ;;  %v5026_v23 = vmul.f32 %v5928_v31, %v5015_v18 }
 0xdb4   : > { %v5027_v25 = vmul.f32 %v5928_v31, %v5016_v16  ;;  %v5037_v15 = vadd.f32 %v5929_v53, %v5026_v23 }
 0xdb6   : > { %v5038_v7 = vadd.f32 %v5929_v53, %v5027_v25 }
 0xdb7   : > { %v6812_v57 = vpop.eup %6811 }
 0xdb8   : > { %v5017_v4 = vmul.f32 %v6812_v57, %v7849_v12  ;;  %v5041_v28 = vpack.c.bf16 %v5038_v7, %v5037_v15 }
 0xdb9   : > { %v6814_v34 = vpop.eup %6813 }
 0xdba   : > { %v5018_v37 = vmul.f32 %v6814_v34, %v7851_v54  ;;  %6420 = vmatprep.mubr.bf16.mxu1 %v5041_v28  ;;  %v5028_v59 = vmul.f32 %v5928_v31, %v5017_v4 }
 0xdbc   : > { %v5029_v38 = vmul.f32 %v5928_v31, %v5018_v37  ;;  %v5039_v39 = vadd.f32 %v5929_v53, %v5028_v59 }
 0xdbe   : > { %v5040_v21 = vadd.f32 %v5929_v53, %v5029_v38 }
 0xdc0   : > { %v5042_v40 = vpack.c.bf16 %v5040_v21, %v5039_v39 }
 0xdc2   : > { %6421 = vmatmul.mubr.bf16.vlgmr.msra.gmra.mrb[88].mxu1 %v5042_v40 }
 0xdc3   : > { %5344 = vmatprep.mubr.bf16.mxu1 %v7096_v63  ;;  %5313 = vmatpush1.bf16.msra.mxu1 %v6745_v24 }
 0xdc4   : > { %5314 = vmatprep.subr.bf16.mxu1 %v6750_v17 }
 0xdc7   : > { %5315 = vmatpush1.bf16.msra.mxu1 %v6748_v5 }
 0xe95   : > { %v6422_v60 = vpop.f32.mrb[88].mxu1 }
 0xe96   : > { %v5157_v43 = vadd.f32 %v6422_v60, %v5930_v42  ;;  %v5148_v44 = vpop.f32.mrb[89].mxu1 }
 0xe97   : > { %v5149_v45 = vadd.f32 %v5930_v42, %v5148_v44  ;;  %v6423_v47 = vpop.f32.mrb[90].mxu1 }
 0xe98   : > { %v5160_v29 = vadd.f32 %v6423_v47, %v5930_v42  ;;  %v5151_v30 = vpop.f32.mrb[91].mxu1  ;;  %v5165_v11 = vmax.f32 %v5157_v43, 0.0 }
 0xe99   : > { %v5152_v48 = vadd.f32 %v5930_v42, %v5151_v30  ;;  %v5163_v2 = vmax.f32 %v5149_v45, 0.0 }
 0xe9a   : > { %v5166_v56 = vmax.f32 %v5160_v29, 0.0 }
 0xe9b   : > { %v5164_v12 = vmax.f32 %v5152_v48, 0.0 }
 0xe9c   : > { %v5168_v20 = vpack.c.bf16 %v5166_v56, %v5165_v11 }
 0xe9d   : > { %v5167_v54 = vpack.c.bf16 %v5164_v12, %v5163_v2 }
 0xe9f   : > { %6432 = vmatprep.mubr.msk.bf16.mxu0 %vm5208_vm3, %v5167_v54 }
 0xea0   : > { %6433 = vmatmul.mubr.msk.bf16.vlgmr.msra.gmra.mrb[92].mxu0 %vm5208_vm3, %v5168_v20 }
 0xf73   : > { %v6434_v10 = vpop.f32.mrb[92].mxu0 }
 0xf74   : > { %v5249_v51 = vpop.f32.mrb[93].mxu0  ;;  %v7922_v9 = vadd.f32 %v6434_v10, %v5939_v33 }
 0xf75   : > { %v7910_v3 = vadd.f32 %v5939_v33, %v5249_v51  ;;  %v6435_v52 = vpop.f32.mrb[94].mxu0 }
 0xf76   : > { %v5252_v49 = vpop.f32.mrb[95].mxu0  ;;  %v7916_v62 = vadd.f32 %v6435_v52, %v5939_v33  ;;  %v5266_v0 = vmax.f32 %v7922_v9, 0.0 }
 0xf77   : > { %v7912_v35 = vadd.f32 %v5939_v33, %v5252_v49  ;;  %v5264_v8 = vmax.f32 %v7910_v3, 0.0 }
 0xf78   : > { %v5267_v13 = vmax.f32 %v7916_v62, 0.0 }
 0xf79   : > { %v5265_v36 = vmax.f32 %v7912_v35, 0.0 }
 0xf7a   : > { %v5269_v1 = vpack.c.bf16 %v5267_v13, %v5266_v0 }
 0xf7b   : > { %v5268_v50 = vpack.c.bf16 %v5265_v36, %v5264_v8 }
 0xf7d   : > { %5950 = vmatmul.mubr.msk.bf16.vlgmr.msra.gmra.mrb[92].mxu1 %vm741_vm0, %v5268_v50 }
 0xf7e   : > { %5354 = vmatprep.mubr.bf16.mxu1 %v7096_v63 }
 0xf85   : > { %5951 = vmatmul.mubr.msk.bf16.gmra.mrb[96].mxu1 %vm741_vm0, %v5269_v1 }
0x1050   : > { %v5346_v63 = vpop.f32.mrb[92].mxu1 }
0x1051   : > { %v5347_v19 = vadd.f32 %v5346_v63, %v5279_v27  ;;  %v5348_v55 = vpop.f32.mrb[93].mxu1 }
0x1052   : > { %v5349_v14 = vadd.f32 %v5348_v55, %v5283_v6  ;;  %v5350_v31 = vpop.f32.mrb[94].mxu1 }
0x1053   : > { %v5365_v18 = vmax.f32 %v5347_v19, 0.0  ;;  %v5351_v22 = vadd.f32 %v5350_v31, %v5279_v27  ;;  %v5352_v16 = vpop.f32.mrb[95].mxu1 }
0x1054   : > { %v5952_v23 = vmul.f32 -1.442695, %v5349_v14  ;;  %v5353_v53 = vadd.f32 %v5352_v16, %v5283_v6 }
0x1055   : > { %5418 = vst [vmem:[%s7938_s22] sm:$0xff] %v5365_v18  ;;  %v5366_v61 = vmax.f32 %v5351_v22, 0.0 }
0x1056   : > { %6815 = vpow2.f32 %v5952_v23  ;;  %v5953_v58 = vmul.f32 -1.442695, %v5353_v53 }
0x1057   : > { %5420 = vst [vmem:[%s7938_s22 + $0x10] sm:$0xff] %v5366_v61 }
0x1058   : > { %6817 = vpow2.f32 %v5953_v58  ;;  %v5356_v25 = vpop.f32.mrb[96].mxu1 }
0x1059   : > { %v5357_v15 = vadd.f32 %v5356_v25, %v5279_v27  ;;  %v5358_v7 = vpop.f32.mrb[97].mxu1 }
0x105a   : > { %v5359_v57 = vadd.f32 %v5358_v7, %v5283_v6  ;;  %v5360_v4 = vpop.f32.mrb[98].mxu1 }
0x105b   : > { %v5367_v28 = vmax.f32 %v5357_v15, 0.0  ;;  %v5361_v34 = vadd.f32 %v5360_v4, %v5279_v27  ;;  %v5362_v37 = vpop.f32.mrb[99].mxu1 }
0x105c   : > { %v5954_v59 = vmul.f32 -1.442695, %v5359_v57  ;;  %v5363_v38 = vadd.f32 %v5362_v37, %v5283_v6 }
0x105d   : > { %5422 = vst [vmem:[%s7938_s22 + $0x20] sm:$0xff] %v5367_v28  ;;  %v5368_v39 = vmax.f32 %v5361_v34, 0.0 }
0x105e   : > { %6819 = vpow2.f32 %v5954_v59  ;;  %v5955_v21 = vmul.f32 -1.442695, %v5363_v38 }
0x105f   : > { %5424 = vst [vmem:[%s7938_s22 + $0x30] sm:$0xff] %v5368_v39 }
0x1060   : > { %v6816_v40 = vpop.eup %6815  ;;  %6821 = vpow2.f32 %v5955_v21 }
0x1061   : > { %v5381_v41 = vadd.f32 1.0, %v6816_v40 }
0x1062   : > { %v6818_v46 = vpop.eup %6817 }
0x1063   : > { %6823 = vrcp.f32 %v5381_v41  ;;  %v5382_v42 = vadd.f32 1.0, %v6818_v46 }
0x1065   : > { %6825 = vrcp.f32 %v5382_v42 }
0x1068   : > { %v6820_v60 = vpop.eup %6819 }
0x1069   : > { %v5383_v43 = vadd.f32 1.0, %v6820_v60 }
0x106a   : > { %v6822_v44 = vpop.eup %6821 }
0x106b   : > { %6827 = vrcp.f32 %v5383_v43  ;;  %v5384_v45 = vadd.f32 1.0, %v6822_v44 }
0x106d   : > { %v6824_v47 = vpop.eup %6823  ;;  %6829 = vrcp.f32 %v5384_v45 }
0x106e   : > { %5397 = vrot.lane.b32.xlu0 %v6824_v47, %s7099_s23 }
0x106f   : > { %v6826_v29 = vpop.eup %6825 }
0x1070   : > { %5399 = vrot.lane.b32.xlu1 %v6826_v29, %s7099_s23 }
0x1075   : > { %v6828_v30 = vpop.eup %6827 }
0x1076   : > { %5401 = vrot.lane.b32.xlu1 %v6828_v30, %s7099_s23 }
0x1077   : > { %v6830_v48 = vpop.eup %6829 }
0x107a   : > { %5403 = vrot.lane.b32.xlu1 %v6830_v48, %s7099_s23 }
0x10e0   : > { %v5398_v11 = vpop.permute.xlu0 %5397 }
0x10e1   : > { %v5409_v56 = vsel %vm741_vm0, %v5264_v8, %v5398_v11 }
0x10e2   : > { %v5414_v2 = vsel %vm5413_vm4, %v5409_v56, 0.0  ;;  %v5400_v12 = vpop.permute.xlu1 %5399 }
0x10e3   : > { %5419 = vst [vmem:[%s7938_s22 + $0x8] sm:$0xff] %v5414_v2  ;;  %v5410_v20 = vsel %vm741_vm0, %v5265_v36, %v5400_v12 }
0x10e4   : > { %v5415_v54 = vsel %vm5413_vm4, %v5410_v20, 0.0 }
0x10e5   : > { %5421 = vst [vmem:[%s7938_s22 + $0x18] sm:$0xff] %v5415_v54 }
0x10e8   : > { %v5402_v32 = vpop.permute.xlu1 %5401 }
0x10e9   : > { %v5411_v24 = vsel %vm741_vm0, %v5266_v0, %v5402_v32 }
0x10ea   : > { %v5416_v17 = vsel %vm5413_vm4, %v5411_v24, 0.0 }
0x10eb   : > { %5423 = vst [vmem:[%s7938_s22 + $0x28] sm:$0xff] %v5416_v17 }
0x10ec   : > { %v5404_v5 = vpop.permute.xlu1 %5403 }
0x10ed   : > { %v5412_v33 = vsel %vm741_vm0, %v5267_v13, %v5404_v5 }
0x10ee   : > { %v5417_v10 = vsel %vm5413_vm4, %v5412_v33, 0.0 }
0x10ef   : > { %5425 = vst [vmem:[%s7938_s22 + $0x38] sm:$0xff] %v5417_v10 }
0x10f0   : > { %7020 = shalt.err (!%p7017_p2)
}
0x10f1   : > { %s7021_s13 = scalar_lea.hbm %s7966_s18, 1024  ;;  %s7025_s23 = scalar_lea.hbm %s8079_s24, 2048 }
0x10f2   : > { %p7022_p3 = scmp.ne.s32.totalorder %s7966_s18, %s7021_s13  ;;  %p7026_p7 = scmp.lt.u32.totalorder %s7966_s18, %s8079_s24 }
0x10f3   : > { %p7027_p8 = scmp.lt.u32.totalorder %s7025_s23, %s7021_s13  ;;  %p7029_p13 = scmp.lt.u32.totalorder %s7021_s13, %s7966_s18 }
0x10f4   : > { %p7023_p4 = pnand %p7022_p3, %p8080_p1 }
0x10f5   : > { %p7028_p11 = por %p7027_p8, %p7026_p7 }
0x10f6   : > { %p7024_p12 = pneg %p7023_p4 }
0x10f7   : > { %p7030_p6 = por %p7029_p13, %p7028_p11 }
0x10f9   : > { %p7031_p9 = pnand %p7030_p6, %p7024_p12 }
0x10fb   : > { %7034 = shalt.err (!%p7031_p9)
}
0x10fc   : > { %s7101_s28 = smov 256   ;;  %s7102_s30 = smov 16  }
0x10fd   : > { %6460 = dma.vmem_to_hbm [thread:$0]  (%p8080_p1), %s7961_s15, 1024, %s7966_s18, %s7975_s17, %s7101_s28, %s7101_s28, %s7102_s30  }
0x10fe PF: > { %s8081_s21 = sld [smem:[#allocation22_spill]]  ;;  %s8082_s29 = sld [smem:[#allocation19_spill]] }
0x10ff   : > { %s8083_s27 = sld [smem:[#allocation26_spill]] }
0x1104   : > { %p6497_p5 = scmp.ge.s32.totalorder %s8081_s21, 2  ;;  %s5456_s26 = sand.u32 1, %s8082_s29  }
0x1105   : > { %p8084_p0 = scmp.ne.s32.totalorder %s8083_s27, 0  ;;  %s5457_s13 = scalar_lea.sflag [#allocation4], %s5456_s26 }
0x1107   : > { %p6482_p10 = pnand %p6497_p5, %p8084_p0 }
0x1109   : > { %7068 = dma.done.wait (!%p6482_p10), %s5457_s13, 1024  }
0x110a   : > { %7070 = vsyncadd (!%p6482_p10), %s5457_s13, 4294966272  ;;  %s8085_s16 = sld [smem:[#allocation23_spill]]  ;;  %s8086_s29 = sld [smem:[#allocation20_spill]] }
0x110b   : > { %s8087_s30 = sld [smem:[#allocation21_spill]]  ;;  %s8088_s15 = sld [smem:[#allocation24_spill]] }
0x1110   : > { %p28_p2 = scmp.ge.s32.totalorder %s8085_s16, 4  }
0x1112   :  { %30 = sbr.rel (!%p28_p2) target bundleno = 10 (0xa), region = 139 }
0x1119   :  { %5462 = vsyncpa [#allocation3], 1 }
0x111a   :  { %5464 = vsyncpa [#allocation3 + $0x1], 1 }
0x111b   :  { %5465 = vsyncpa [#allocation6], 1 }
0x111c   :  { %5466 = vsyncpa [#allocation9], 1 }
0x111d   :  { %5467 = vsyncpa [#allocation12], 1 }
0x111e   :  { %5468 = vsyncpa [#allocation4], 1 }
0x111f   :  { %5470 = vsyncpa [#allocation4 + $0x1], 1 }

</bundles_post_ra>
